<compile_context>
chip_gen: v7x
topology: tpu7x:2x2x1
jax: 0.10.0
libtpu: 0.0.40
codegen_flags: <defaults>
</compile_context>

<pallas_src>
import functools

import jax
import jax.numpy as jnp
from jax.experimental import pallas as pl
from jax.experimental.pallas import tpu as pltpu

BN_EPS = 1e-5
LEAKY_SLOPE = 0.2
MAX_TILE_M = 512          # conv M tile (rows); bf16-friendly (multiple of 16)
HEAD_TILE_M = 256         # head M tile
STATS_ROWS = 8            # sublane-padded partial-stats block height (f32 tile rule)
VMEM_LIMIT = 48 * 1024 * 1024  # explicit scoped-VMEM budget; < v7x 64 MiB physical


def _round_up(x, m):
    return ((x + m - 1) // m) * m


def _tile_and_pad_rows(x, max_tile):
    """cdiv-style tiling: pick tm and zero-pad rows so the grid is dense.

    Padded rows are all-zero, so they produce zero conv outputs and contribute
    nothing to the fused BN sums; callers slice back to the true M afterwards.
    """
    M = x.shape[0]
    if M <= max_tile:
        return x, M, M
    mp = _round_up(M, max_tile)
    if mp != M:
        x = jnp.pad(x, ((0, mp - M), (0, 0)))
    return x, max_tile, mp


# ----------------------------------------------------------------------------
# Pallas kernels
# ----------------------------------------------------------------------------
def _conv_mm_kernel(x_ref, w_ref, o_ref, *, act):
    """MXU matmul tile (bf16 in, f32 accumulate), optional fused LeakyReLU."""
    y = jnp.dot(x_ref[...], w_ref[...], preferred_element_type=jnp.float32)
    if act == "leaky":
        y = jnp.where(y > 0, y, LEAKY_SLOPE * y)
    o_ref[...] = y.astype(o_ref.dtype)


def _conv_mm_stats_kernel(x_ref, w_ref, o_ref, sum_ref, sq_ref):
    """MXU matmul tile + per-tile partial BN statistics (f32).

    Each M-tile writes its own (STATS_ROWS, C) stats block (data in row 0,
    zeros elsewhere), so the M grid axis stays "parallel" (megacore-safe); the
    final reduction over tiles happens in plain jnp outside the kernel.
    """
    y = jnp.dot(x_ref[...], w_ref[...], preferred_element_type=jnp.float32)
    o_ref[...] = y.astype(o_ref.dtype)

    rows = jax.lax.broadcasted_iota(jnp.int32, sum_ref.shape, 0)
    colsum = jnp.sum(y, axis=0, keepdims=True)
    colsq = jnp.sum(y * y, axis=0, keepdims=True)
    sum_ref[...] = jnp.where(rows == 0, colsum, 0.0)
    sq_ref[...] = jnp.where(rows == 0, colsq, 0.0)


def conv_mm(x, w, *, act="none", with_stats=False, out_dtype=jnp.bfloat16):
    """(M, K) @ (K, N) on the MXU, tiled over M; fused activation or BN stats."""
    M, K = x.shape
    K2, N = w.shape
    assert K == K2
    xp, tm, mp = _tile_and_pad_rows(x, MAX_TILE_M)
    grid_m = mp // tm

    x_spec = pl.BlockSpec((tm, K), lambda i: (i, 0))
    w_spec = pl.BlockSpec((K, N), lambda i: (0, 0))
    y_spec = pl.BlockSpec((tm, N), lambda i: (i, 0))

    in_bytes = jnp.dtype(x.dtype).itemsize
    out_bytes = jnp.dtype(out_dtype).itemsize
    cost = pl.CostEstimate(
        flops=2 * mp * K * N,
        transcendentals=0,
        bytes_accessed=(mp * K + K * N) * in_bytes + mp * N * out_bytes,
    )
    params = pltpu.CompilerParams(
        dimension_semantics=("parallel",), vmem_limit_bytes=VMEM_LIMIT)

    if with_stats:
        y, psum, psq = pl.pallas_call(
            _conv_mm_stats_kernel,
            grid=(grid_m,),
            in_specs=[x_spec, w_spec],
            out_specs=(
                y_spec,
                pl.BlockSpec((STATS_ROWS, N), lambda i: (i, 0)),
                pl.BlockSpec((STATS_ROWS, N), lambda i: (i, 0)),
            ),
            out_shape=(
                jax.ShapeDtypeStruct((mp, N), out_dtype),
                jax.ShapeDtypeStruct((grid_m * STATS_ROWS, N), jnp.float32),
                jax.ShapeDtypeStruct((grid_m * STATS_ROWS, N), jnp.float32),
            ),
            compiler_params=params,
            cost_estimate=cost,
        )(xp, w)
        return y[:M], psum, psq

    y = pl.pallas_call(
        functools.partial(_conv_mm_kernel, act=act),
        grid=(grid_m,),
        in_specs=[x_spec, w_spec],
        out_specs=y_spec,
        out_shape=jax.ShapeDtypeStruct((mp, N), out_dtype),
        compiler_params=params,
        cost_estimate=cost,
    )(xp, w)
    return y[:M]


def _head_kernel(x_ref, w_ref, o_ref):
    # N=1 output: VPU multiply + row-sum + sigmoid in f32 (an MXU pass would be
    # ~99% idle lanes).
    xf = x_ref[...].astype(jnp.float32)
    wf = w_ref[...].astype(jnp.float32)
    s = jnp.sum(xf * wf, axis=1, keepdims=True)
    o_ref[...] = 1.0 / (1.0 + jnp.exp(-s))


def head_sigmoid(x, w):
    """(M, K) row-wise dot with one K-length weight vector + sigmoid, tiled over M."""
    M, K = x.shape
    xp, tm, mp = _tile_and_pad_rows(x, HEAD_TILE_M)
    grid_m = mp // tm
    out = pl.pallas_call(
        _head_kernel,
        grid=(grid_m,),
        in_specs=[
            pl.BlockSpec((tm, K), lambda i: (i, 0)),
            pl.BlockSpec((1, K), lambda i: (0, 0)),
        ],
        out_specs=pl.BlockSpec((tm, 1), lambda i: (i, 0)),
        out_shape=jax.ShapeDtypeStruct((mp, 1), jnp.float32),
        compiler_params=pltpu.CompilerParams(
            dimension_semantics=("parallel",), vmem_limit_bytes=VMEM_LIMIT),
    )(xp, w.reshape(1, K))
    return out[:M]


# ----------------------------------------------------------------------------
# Glue: channels-last im2col (pure XLA pad/slice/concat; fuses with the
# preceding elementwise affine+LeakyReLU)
# ----------------------------------------------------------------------------
def im2col_nhwc(x, k, stride, pad, cin=None):
    """(N, H, W, C) -> (N*Ho*Wo, k*k*cin); patch column order = (ki, kj, c).

    `cin` (if set) slices the leading channels during window extraction — used
    to drop block-1's zero-padded lanes without a standalone copy.
    Torch weight equivalent: weight.permute(2, 3, 1, 0).reshape(k*k*Cin, Cout).
    """
    N, H, W, C = x.shape
    if cin is None:
        cin = C
    Ho = (H + 2 * pad - k) // stride + 1
    Wo = (W + 2 * pad - k) // stride + 1
    xp = jnp.pad(x, ((0, 0), (pad, pad), (pad, pad), (0, 0))) if pad else x
    cols = []
    for ki in range(k):
        for kj in range(k):
            cols.append(xp[:, ki:ki + stride * Ho:stride,
                           kj:kj + stride * Wo:stride, :cin])
    patches = jnp.concatenate(cols, axis=-1)            # (N, Ho, Wo, k*k*cin)
    return patches.reshape(N * Ho * Wo, k * k * cin), (N, Ho, Wo)


# ----------------------------------------------------------------------------
# Parameters (deterministic DCGAN-style init: N(0, 0.02) conv weights)
# ----------------------------------------------------------------------------
def init_params(key):
    ks = jax.random.split(key, 8)

    def conv_w(k, cin, cout):
        # Stored (k*k*cin, cout), row order (ki, kj, cin) to match im2col_nhwc.
        w = 0.02 * jax.random.normal(k, (16 * cin, cout), jnp.float32)
        return w.astype(jnp.bfloat16)

    return {
        "w1": conv_w(ks[0], 3, 64),
        "w2": conv_w(ks[1], 64, 128),
        "g2": 1.0 + 0.02 * jax.random.normal(ks[2], (128,), jnp.float32),
        "b2": 0.02 * jax.random.normal(ks[3], (128,), jnp.float32),
        "w3": conv_w(ks[4], 128, 256),
        "g3": 1.0 + 0.02 * jax.random.normal(ks[5], (256,), jnp.float32),
        "b3": 0.02 * jax.random.normal(ks[6], (256,), jnp.float32),
        "w4": conv_w(ks[7], 256, 1),
    }


# ----------------------------------------------------------------------------
# BN (training-mode batch stats, biased variance) + LeakyReLU — all f32 math.
# ----------------------------------------------------------------------------
def _bn_scale_shift(psum, psq, m_rows, gamma, beta):
    s = jnp.sum(psum, axis=0, keepdims=True)          # (1, C) f32
    q = jnp.sum(psq, axis=0, keepdims=True)
    mean = s / m_rows
    var = jnp.maximum(q / m_rows - mean * mean, 0.0)  # clamp f32 cancellation
    scale = gamma.reshape(1, -1) * jax.lax.rsqrt(var + BN_EPS)
    shift = beta.reshape(1, -1) - mean * scale
    return scale, shift


def _affine_leaky(y, scale, shift):
    # Plain jnp (f32) so XLA fuses it into the next block's im2col pad/slice/concat.
    v = y.astype(jnp.float32) * scale + shift
    return jnp.where(v > 0, v, LEAKY_SLOPE * v).astype(jnp.bfloat16)


# ----------------------------------------------------------------------------
# Forward
# ----------------------------------------------------------------------------
def discriminator_forward(params, x):
    # Module boundary is NCHW (PyTorch); go channels-last + bf16 once, stay there.
    x = jnp.transpose(x, (0, 2, 3, 1)).astype(jnp.bfloat16)

    # Block 1: Conv(3->64, s2, p1) + LeakyReLU.
    # Cout zero-padded 64 -> 128 so the store is lane-dense; padded channels are
    # exactly 0 and get dropped by block-2's im2col channel slice (no copy).
    p1, (n, ho, wo) = im2col_nhwc(x, 4, 2, 1)
    w1p = jnp.pad(params["w1"], ((0, 0), (0, 64)))
    y1 = conv_mm(p1, w1p, act="leaky")
    a1 = y1.reshape(n, ho, wo, 128)

    # Block 2: Conv(64->128, s2, p1) + BN(128) + LeakyReLU (stats fused in matmul).
    p2, (n, ho, wo) = im2col_nhwc(a1, 4, 2, 1, cin=64)
    y2, s2, q2 = conv_mm(p2, params["w2"], with_stats=True)
    scale, shift = _bn_scale_shift(s2, q2, y2.shape[0], params["g2"], params["b2"])
    a2 = _affine_leaky(y2, scale, shift).reshape(n, ho, wo, 128)

    # Block 3: Conv(128->256, s2, p1) + BN(256) + LeakyReLU.
    p3, (n, ho, wo) = im2col_nhwc(a2, 4, 2, 1)
    y3, s3, q3 = conv_mm(p3, params["w3"], with_stats=True)
    scale, shift = _bn_scale_shift(s3, q3, y3.shape[0], params["g3"], params["b3"])
    a3 = _affine_leaky(y3, scale, shift).reshape(n, ho, wo, 256)

    # Block 4: Conv(256->1, s1, p0) + Sigmoid (tiled VPU reduction).
    p4, (n, ho, wo) = im2col_nhwc(a3, 4, 1, 0)        # ho = wo = 1
    out = head_sigmoid(p4, params["w4"])
    return out.reshape(n, 1, ho, wo)


if __name__ == "__main__":
    key = jax.random.PRNGKey(0)
    pkey, xkey = jax.random.split(key)
    params = init_params(pkey)
    # CIFAR-10 sized input (spatial 32 is required by the final 4x4 valid conv -> 1x1).
    x = jax.random.normal(xkey, (2, 3, 32, 32), jnp.float32)

    out = jax.jit(discriminator_forward)(params, x)
    out = jax.block_until_ready(out)

    assert out.shape == (2, 1, 1, 1), out.shape
    assert bool(jnp.all(jnp.isfinite(out)))
    assert bool(jnp.all((out >= 0.0) & (out <= 1.0)))
    print("KERNEL_OK")
</pallas_src>

<mosaic_0001>
module attributes {stable_mosaic.version = 11 : i64} {
  func.func @_conv_mm_kernel(%arg0: i32, %arg1: memref<512x48xbf16, #tpu.memory_space<vmem>>, %arg2: memref<48x128xbf16, #tpu.memory_space<vmem>>, %arg3: memref<512x128xbf16, #tpu.memory_space<vmem>>) attributes {dimension_semantics = [#tpu.dimension_semantics<parallel>], iteration_bounds = array<i64: 1>, scalar_prefetch = 0 : i64, scratch_operands = 0 : i64, tpu.core_type = #tpu.core_type<tc>, window_params = [{transform_indices = @transform_0, window_bounds = array<i64: 512, 48>}, {pipeline_mode = #tpu.pipeline_mode<synchronous>, transform_indices = @transform_1, window_bounds = array<i64: 48, 128>}, {transform_indices = @transform_2, window_bounds = array<i64: 512, 128>}]} {
    %c0 = arith.constant 0 : index
    %c0_0 = arith.constant 0 : index
    %0 = vector.load %arg1[%c0, %c0_0] : memref<512x48xbf16, #tpu.memory_space<vmem>>, vector<512x48xbf16>
    %c0_1 = arith.constant 0 : index
    %c0_2 = arith.constant 0 : index
    %1 = vector.load %arg2[%c0_1, %c0_2] : memref<48x128xbf16, #tpu.memory_space<vmem>>, vector<48x128xbf16>
    %cst = arith.constant dense<0.000000e+00> : vector<512x128xf32>
    %2 = tpu.matmul %0, %1, %cst {dimension_numbers = #tpu.dot_dimension_numbers<[1], [0], [0], [1], [0, 0, 1, 1], [], []>} : vector<512x48xbf16>, vector<48x128xbf16>, vector<512x128xf32> -> vector<512x128xf32>
    %cst_3 = arith.constant 0.000000e+00 : f32
    %3 = vector.broadcast %cst_3 : f32 to vector<512x128xf32>
    %4 = arith.cmpf ogt, %2, %3 : vector<512x128xf32>
    %cst_4 = arith.constant 2.000000e-01 : f32
    %5 = vector.broadcast %cst_4 : f32 to vector<512x128xf32>
    %6 = arith.mulf %5, %2 : vector<512x128xf32>
    %7 = arith.select %4, %2, %6 : vector<512x128xi1>, vector<512x128xf32>
    %8 = arith.truncf %7 : vector<512x128xf32> to vector<512x128xbf16>
    %c0_5 = arith.constant 0 : index
    %c0_6 = arith.constant 0 : index
    %9 = vector.load %arg3[%c0_5, %c0_6] : memref<512x128xbf16, #tpu.memory_space<vmem>>, vector<512x128xbf16>
    tpu.vector_store %arg3[%c0_5, %c0_6], %8 {strides = array<i32>} : memref<512x128xbf16, #tpu.memory_space<vmem>>, vector<512x128xbf16>,
    return
  }
  func.func @transform_0(%arg0: i32) -> (i32, i32) {
    %c0_i32 = arith.constant 0 : i32
    %c0_i32_0 = arith.constant 0 : i32
    return %arg0, %c0_i32 : i32, i32
  }
  func.func @transform_1(%arg0: i32) -> (i32, i32) {
    %c0_i32 = arith.constant 0 : i32
    %c0_i32_0 = arith.constant 0 : i32
    %c0_i32_1 = arith.constant 0 : i32
    return %c0_i32, %c0_i32_0 : i32, i32
  }
  func.func @transform_2(%arg0: i32) -> (i32, i32) {
    %c0_i32 = arith.constant 0 : i32
    %c0_i32_0 = arith.constant 0 : i32
    return %arg0, %c0_i32 : i32, i32
  }
}

module attributes {stable_mosaic.version = 11 : i64} {
  func.func @_conv_mm_stats_kernel(%arg0: i32, %arg1: memref<128x1024xbf16, #tpu.memory_space<vmem>>, %arg2: memref<1024x128xbf16, #tpu.memory_space<vmem>>, %arg3: memref<128x128xbf16, #tpu.memory_space<vmem>>, %arg4: memref<8x128xf32, #tpu.memory_space<vmem>>, %arg5: memref<8x128xf32, #tpu.memory_space<vmem>>) attributes {dimension_semantics = [#tpu.dimension_semantics<parallel>], iteration_bounds = array<i64: 1>, scalar_prefetch = 0 : i64, scratch_operands = 0 : i64, tpu.core_type = #tpu.core_type<tc>, window_params = [{transform_indices = @transform_0, window_bounds = array<i64: 128, 1024>}, {pipeline_mode = #tpu.pipeline_mode<synchronous>, transform_indices = @transform_1, window_bounds = array<i64: 1024, 128>}, {transform_indices = @transform_2, window_bounds = array<i64: 128, 128>}, {transform_indices = @transform_3, window_bounds = array<i64: 8, 128>}, {transform_indices = @transform_4, window_bounds = array<i64: 8, 128>}]} {
    %c0 = arith.constant 0 : index
    %c0_0 = arith.constant 0 : index
    %0 = vector.load %arg1[%c0, %c0_0] : memref<128x1024xbf16, #tpu.memory_space<vmem>>, vector<128x1024xbf16>
    %c0_1 = arith.constant 0 : index
    %c0_2 = arith.constant 0 : index
    %1 = vector.load %arg2[%c0_1, %c0_2] : memref<1024x128xbf16, #tpu.memory_space<vmem>>, vector<1024x128xbf16>
    %cst = arith.constant dense<0.000000e+00> : vector<128x128xf32>
    %2 = tpu.matmul %0, %1, %cst {dimension_numbers = #tpu.dot_dimension_numbers<[1], [0], [0], [1], [0, 0, 1, 1], [], []>} : vector<128x1024xbf16>, vector<1024x128xbf16>, vector<128x128xf32> -> vector<128x128xf32>
    %3 = arith.truncf %2 : vector<128x128xf32> to vector<128x128xbf16>
    %c0_3 = arith.constant 0 : index
    %c0_4 = arith.constant 0 : index
    %4 = vector.load %arg3[%c0_3, %c0_4] : memref<128x128xbf16, #tpu.memory_space<vmem>>, vector<128x128xbf16>
    tpu.vector_store %arg3[%c0_3, %c0_4], %3 {strides = array<i32>} : memref<128x128xbf16, #tpu.memory_space<vmem>>, vector<128x128xbf16>,
    %5 = tpu.iota {dimensions = array<i32: 0>} : vector<8x128xi32>
    %cst_5 = arith.constant dense<0.000000e+00> : vector<128xf32>
    %6 = vector.multi_reduction <add>, %2, %cst_5 [0] : vector<128x128xf32> to vector<128xf32>
    %7 = vector.shape_cast %6 : vector<128xf32> to vector<1x128xf32>
    %8 = arith.mulf %2, %2 : vector<128x128xf32>
    %cst_6 = arith.constant dense<0.000000e+00> : vector<128xf32>
    %9 = vector.multi_reduction <add>, %8, %cst_6 [0] : vector<128x128xf32> to vector<128xf32>
    %10 = vector.shape_cast %9 : vector<128xf32> to vector<1x128xf32>
    %c0_i32 = arith.constant 0 : i32
    %11 = vector.broadcast %c0_i32 : i32 to vector<8x128xi32>
    %12 = arith.cmpi eq, %5, %11 : vector<8x128xi32>
    %cst_7 = arith.constant 0.000000e+00 : f32
    %13 = vector.shape_cast %7 : vector<1x128xf32> to vector<1x128xf32>
    %14 = vector.broadcast %13 : vector<1x128xf32> to vector<8x128xf32>
    %15 = vector.broadcast %cst_7 : f32 to vector<8x128xf32>
    %16 = arith.select %12, %14, %15 : vector<8x128xi1>, vector<8x128xf32>
    %c0_8 = arith.constant 0 : index
    %c0_9 = arith.constant 0 : index
    %17 = vector.load %arg4[%c0_8, %c0_9] : memref<8x128xf32, #tpu.memory_space<vmem>>, vector<8x128xf32>
    tpu.vector_store %arg4[%c0_8, %c0_9], %16 {strides = array<i32>} : memref<8x128xf32, #tpu.memory_space<vmem>>, vector<8x128xf32>,
    %c0_i32_10 = arith.constant 0 : i32
    %18 = vector.broadcast %c0_i32_10 : i32 to vector<8x128xi32>
    %19 = arith.cmpi eq, %5, %18 : vector<8x128xi32>
    %cst_11 = arith.constant 0.000000e+00 : f32
    %20 = vector.shape_cast %10 : vector<1x128xf32> to vector<1x128xf32>
    %21 = vector.broadcast %20 : vector<1x128xf32> to vector<8x128xf32>
    %22 = vector.broadcast %cst_11 : f32 to vector<8x128xf32>
    %23 = arith.select %19, %21, %22 : vector<8x128xi1>, vector<8x128xf32>
    %c0_12 = arith.constant 0 : index
    %c0_13 = arith.constant 0 : index
    %24 = vector.load %arg5[%c0_12, %c0_13] : memref<8x128xf32, #tpu.memory_space<vmem>>, vector<8x128xf32>
    tpu.vector_store %arg5[%c0_12, %c0_13], %23 {strides = array<i32>} : memref<8x128xf32, #tpu.memory_space<vmem>>, vector<8x128xf32>,
    return
  }
  func.func @transform_0(%arg0: i32) -> (i32, i32) {
    %c0_i32 = arith.constant 0 : i32
    %c0_i32_0 = arith.constant 0 : i32
    return %arg0, %c0_i32 : i32, i32
  }
  func.func @transform_1(%arg0: i32) -> (i32, i32) {
    %c0_i32 = arith.constant 0 : i32
    %c0_i32_0 = arith.constant 0 : i32
    %c0_i32_1 = arith.constant 0 : i32
    return %c0_i32, %c0_i32_0 : i32, i32
  }
  func.func @transform_2(%arg0: i32) -> (i32, i32) {
    %c0_i32 = arith.constant 0 : i32
    %c0_i32_0 = arith.constant 0 : i32
    return %arg0, %c0_i32 : i32, i32
  }
  func.func @transform_3(%arg0: i32) -> (i32, i32) {
    %c0_i32 = arith.constant 0 : i32
    %c0_i32_0 = arith.constant 0 : i32
    return %arg0, %c0_i32 : i32, i32
  }
  func.func @transform_4(%arg0: i32) -> (i32, i32) {
    %c0_i32 = arith.constant 0 : i32
    %c0_i32_0 = arith.constant 0 : i32
    return %arg0, %c0_i32 : i32, i32
  }
}

module attributes {stable_mosaic.version = 11 : i64} {
  func.func @_conv_mm_stats_kernel(%arg0: i32, %arg1: memref<32x2048xbf16, #tpu.memory_space<vmem>>, %arg2: memref<2048x256xbf16, #tpu.memory_space<vmem>>, %arg3: memref<32x256xbf16, #tpu.memory_space<vmem>>, %arg4: memref<8x256xf32, #tpu.memory_space<vmem>>, %arg5: memref<8x256xf32, #tpu.memory_space<vmem>>) attributes {dimension_semantics = [#tpu.dimension_semantics<parallel>], iteration_bounds = array<i64: 1>, scalar_prefetch = 0 : i64, scratch_operands = 0 : i64, tpu.core_type = #tpu.core_type<tc>, window_params = [{transform_indices = @transform_0, window_bounds = array<i64: 32, 2048>}, {pipeline_mode = #tpu.pipeline_mode<synchronous>, transform_indices = @transform_1, window_bounds = array<i64: 2048, 256>}, {transform_indices = @transform_2, window_bounds = array<i64: 32, 256>}, {transform_indices = @transform_3, window_bounds = array<i64: 8, 256>}, {transform_indices = @transform_4, window_bounds = array<i64: 8, 256>}]} {
    %c0 = arith.constant 0 : index
    %c0_0 = arith.constant 0 : index
    %0 = vector.load %arg1[%c0, %c0_0] : memref<32x2048xbf16, #tpu.memory_space<vmem>>, vector<32x2048xbf16>
    %c0_1 = arith.constant 0 : index
    %c0_2 = arith.constant 0 : index
    %1 = vector.load %arg2[%c0_1, %c0_2] : memref<2048x256xbf16, #tpu.memory_space<vmem>>, vector<2048x256xbf16>
    %cst = arith.constant dense<0.000000e+00> : vector<32x256xf32>
    %2 = tpu.matmul %0, %1, %cst {dimension_numbers = #tpu.dot_dimension_numbers<[1], [0], [0], [1], [0, 0, 1, 1], [], []>} : vector<32x2048xbf16>, vector<2048x256xbf16>, vector<32x256xf32> -> vector<32x256xf32>
    %3 = arith.truncf %2 : vector<32x256xf32> to vector<32x256xbf16>
    %c0_3 = arith.constant 0 : index
    %c0_4 = arith.constant 0 : index
    %4 = vector.load %arg3[%c0_3, %c0_4] : memref<32x256xbf16, #tpu.memory_space<vmem>>, vector<32x256xbf16>
    tpu.vector_store %arg3[%c0_3, %c0_4], %3 {strides = array<i32>} : memref<32x256xbf16, #tpu.memory_space<vmem>>, vector<32x256xbf16>,
    %5 = tpu.iota {dimensions = array<i32: 0>} : vector<8x256xi32>
    %cst_5 = arith.constant dense<0.000000e+00> : vector<256xf32>
    %6 = vector.multi_reduction <add>, %2, %cst_5 [0] : vector<32x256xf32> to vector<256xf32>
    %7 = vector.shape_cast %6 : vector<256xf32> to vector<1x256xf32>
    %8 = arith.mulf %2, %2 : vector<32x256xf32>
    %cst_6 = arith.constant dense<0.000000e+00> : vector<256xf32>
    %9 = vector.multi_reduction <add>, %8, %cst_6 [0] : vector<32x256xf32> to vector<256xf32>
    %10 = vector.shape_cast %9 : vector<256xf32> to vector<1x256xf32>
    %c0_i32 = arith.constant 0 : i32
    %11 = vector.broadcast %c0_i32 : i32 to vector<8x256xi32>
    %12 = arith.cmpi eq, %5, %11 : vector<8x256xi32>
    %cst_7 = arith.constant 0.000000e+00 : f32
    %13 = vector.shape_cast %7 : vector<1x256xf32> to vector<1x256xf32>
    %14 = vector.broadcast %13 : vector<1x256xf32> to vector<8x256xf32>
    %15 = vector.broadcast %cst_7 : f32 to vector<8x256xf32>
    %16 = arith.select %12, %14, %15 : vector<8x256xi1>, vector<8x256xf32>
    %c0_8 = arith.constant 0 : index
    %c0_9 = arith.constant 0 : index
    %17 = vector.load %arg4[%c0_8, %c0_9] : memref<8x256xf32, #tpu.memory_space<vmem>>, vector<8x256xf32>
    tpu.vector_store %arg4[%c0_8, %c0_9], %16 {strides = array<i32>} : memref<8x256xf32, #tpu.memory_space<vmem>>, vector<8x256xf32>,
    %c0_i32_10 = arith.constant 0 : i32
    %18 = vector.broadcast %c0_i32_10 : i32 to vector<8x256xi32>
    %19 = arith.cmpi eq, %5, %18 : vector<8x256xi32>
    %cst_11 = arith.constant 0.000000e+00 : f32
    %20 = vector.shape_cast %10 : vector<1x256xf32> to vector<1x256xf32>
    %21 = vector.broadcast %20 : vector<1x256xf32> to vector<8x256xf32>
    %22 = vector.broadcast %cst_11 : f32 to vector<8x256xf32>
    %23 = arith.select %19, %21, %22 : vector<8x256xi1>, vector<8x256xf32>
    %c0_12 = arith.constant 0 : index
    %c0_13 = arith.constant 0 : index
    %24 = vector.load %arg5[%c0_12, %c0_13] : memref<8x256xf32, #tpu.memory_space<vmem>>, vector<8x256xf32>
    tpu.vector_store %arg5[%c0_12, %c0_13], %23 {strides = array<i32>} : memref<8x256xf32, #tpu.memory_space<vmem>>, vector<8x256xf32>,
    return
  }
  func.func @transform_0(%arg0: i32) -> (i32, i32) {
    %c0_i32 = arith.constant 0 : i32
    %c0_i32_0 = arith.constant 0 : i32
    return %arg0, %c0_i32 : i32, i32
  }
  func.func @transform_1(%arg0: i32) -> (i32, i32) {
    %c0_i32 = arith.constant 0 : i32
    %c0_i32_0 = arith.constant 0 : i32
    %c0_i32_1 = arith.constant 0 : i32
    return %c0_i32, %c0_i32_0 : i32, i32
  }
  func.func @transform_2(%arg0: i32) -> (i32, i32) {
    %c0_i32 = arith.constant 0 : i32
    %c0_i32_0 = arith.constant 0 : i32
    return %arg0, %c0_i32 : i32, i32
  }
  func.func @transform_3(%arg0: i32) -> (i32, i32) {
    %c0_i32 = arith.constant 0 : i32
    %c0_i32_0 = arith.constant 0 : i32
    return %arg0, %c0_i32 : i32, i32
  }
  func.func @transform_4(%arg0: i32) -> (i32, i32) {
    %c0_i32 = arith.constant 0 : i32
    %c0_i32_0 = arith.constant 0 : i32
    return %arg0, %c0_i32 : i32, i32
  }
}

module attributes {stable_mosaic.version = 11 : i64} {
  func.func @_head_kernel(%arg0: i32, %arg1: memref<2x4096xbf16, #tpu.memory_space<vmem>>, %arg2: memref<1x4096xbf16, #tpu.memory_space<vmem>>, %arg3: memref<2x1xf32, #tpu.memory_space<vmem>>) attributes {dimension_semantics = [#tpu.dimension_semantics<parallel>], iteration_bounds = array<i64: 1>, scalar_prefetch = 0 : i64, scratch_operands = 0 : i64, tpu.core_type = #tpu.core_type<tc>, window_params = [{transform_indices = @transform_0, window_bounds = array<i64: 2, 4096>}, {pipeline_mode = #tpu.pipeline_mode<synchronous>, transform_indices = @transform_1, window_bounds = array<i64: 1, 4096>}, {transform_indices = @transform_2, window_bounds = array<i64: 2, 1>}]} {
    %c0 = arith.constant 0 : index
    %c0_0 = arith.constant 0 : index
    %0 = vector.load %arg1[%c0, %c0_0] : memref<2x4096xbf16, #tpu.memory_space<vmem>>, vector<2x4096xbf16>
    %1 = arith.extf %0 : vector<2x4096xbf16> to vector<2x4096xf32>
    %c0_1 = arith.constant 0 : index
    %c0_2 = arith.constant 0 : index
    %2 = vector.load %arg2[%c0_1, %c0_2] : memref<1x4096xbf16, #tpu.memory_space<vmem>>, vector<1x4096xbf16>
    %3 = arith.extf %2 : vector<1x4096xbf16> to vector<1x4096xf32>
    %4 = vector.broadcast %3 : vector<1x4096xf32> to vector<2x4096xf32>
    %5 = arith.mulf %1, %4 : vector<2x4096xf32>
    %cst = arith.constant dense<0.000000e+00> : vector<2xf32>
    %6 = vector.multi_reduction <add>, %5, %cst [1] : vector<2x4096xf32> to vector<2xf32>
    %7 = vector.shape_cast %6 : vector<2xf32> to vector<2x1xf32>
    %cst_3 = arith.constant 0.000000e+00 : f32
    %8 = vector.broadcast %cst_3 : f32 to vector<2x1xf32>
    %9 = arith.subf %8, %7 : vector<2x1xf32>
    %10 = math.exp %9 : vector<2x1xf32>
    %cst_4 = arith.constant 1.000000e+00 : f32
    %11 = vector.broadcast %cst_4 : f32 to vector<2x1xf32>
    %12 = arith.addf %11, %10 : vector<2x1xf32>
    %cst_5 = arith.constant 1.000000e+00 : f32
    %13 = vector.broadcast %cst_5 : f32 to vector<2x1xf32>
    %14 = arith.divf %13, %12 : vector<2x1xf32>
    %c0_6 = arith.constant 0 : index
    %c0_7 = arith.constant 0 : index
    %15 = vector.load %arg3[%c0_6, %c0_7] : memref<2x1xf32, #tpu.memory_space<vmem>>, vector<2x1xf32>
    tpu.vector_store %arg3[%c0_6, %c0_7], %14 {strides = array<i32>} : memref<2x1xf32, #tpu.memory_space<vmem>>, vector<2x1xf32>,
    return
  }
  func.func @transform_0(%arg0: i32) -> (i32, i32) {
    %c0_i32 = arith.constant 0 : i32
    %c0_i32_0 = arith.constant 0 : i32
    return %arg0, %c0_i32 : i32, i32
  }
  func.func @transform_1(%arg0: i32) -> (i32, i32) {
    %c0_i32 = arith.constant 0 : i32
    %c0_i32_0 = arith.constant 0 : i32
    %c0_i32_1 = arith.constant 0 : i32
    return %c0_i32, %c0_i32_0 : i32, i32
  }
  func.func @transform_2(%arg0: i32) -> (i32, i32) {
    %c0_i32 = arith.constant 0 : i32
    %c0_i32_0 = arith.constant 0 : i32
    return %arg0, %c0_i32 : i32, i32
  }
}

</mosaic_0001>

<bundles_post_ra>
// kernel: discriminator_forward.4
= control target key start
LH: loop header
LB: loop body
LE: loop exit
PB: predicated region body
PF: predicated region fallthrough
CT: control target
= control target key end

     0   :  { %vm260_vm0 = vcmask 392192   ;;  %s1949_s1 = inlined_call_operand.vmem [shape: bf16[48,128], index: 1, kind: input, shape index: {}]   ;;  %s1950_s0 = inlined_call_operand.vmem [shape: bf16[512,48], index: 0, kind: input, shape index: {}]   ;;  %s1951_s2 = inlined_call_operand.vmem [shape: bf16[512,128], index: 2, kind: output, shape index: {}]  }
   0x1   :  { %v1659_v0 = vld [vmem:[%s1949_s1] sm:$0xff]   ;;  %v1660_v1 = vld [vmem:[%s1949_s1 + $0x8] sm:$0xff]   ;;  %v1661_v2 = vld [vmem:[%s1949_s1 + $0x10] sm:$0xff]  }
   0x2   :  { %1583 = vmatprep.subr.bf16.mxu0 %v1659_v0  ;;  %1653 = vmatprep.subr.bf16.mxu1 %v1659_v0  ;;  %v1662_v3 = vld [vmem:[%s1950_s0] sm:$0xff]   ;;  %v1664_v5 = vld [vmem:[%s1950_s0 + $0x8] sm:$0xff]   ;;  %v1666_v7 = vld [vmem:[%s1950_s0 + $0x10] sm:$0xff]  }
   0x3   :  { %1584 = vmatpush3.bf16.msra.mxu0 %v1659_v0  ;;  %1656 = vmatpush3.bf16.msra.mxu1 %v1659_v0  ;;  %v1663_v4 = vld [vmem:[%s1950_s0 + $0x80] sm:$0xff]   ;;  %v1665_v6 = vld [vmem:[%s1950_s0 + $0x88] sm:$0xff]   ;;  %v1667_v8 = vld [vmem:[%s1950_s0 + $0x90] sm:$0xff]  }
   0x4   :  { %1585 = vmatprep.subr.bf16.mxu0 %v1660_v1  ;;  %1654 = vmatprep.subr.bf16.mxu1 %v1660_v1  ;;  %v1668_v9 = vld [vmem:[%s1950_s0 + $0x18] sm:$0xff]   ;;  %v1670_v11 = vld [vmem:[%s1950_s0 + $0x20] sm:$0xff]   ;;  %v1672_v13 = vld [vmem:[%s1950_s0 + $0x28] sm:$0xff]  }
   0x5   :  { %1589 = vmatprep.mubr.msk.bf16.mxu0 %vm260_vm0, %v1662_v3  ;;  %1621 = vmatprep.mubr.msk.bf16.mxu1 %vm260_vm0, %v1663_v4  ;;  %v1669_v10 = vld [vmem:[%s1950_s0 + $0x98] sm:$0xff]   ;;  %v1671_v12 = vld [vmem:[%s1950_s0 + $0xa0] sm:$0xff]   ;;  %v1673_v14 = vld [vmem:[%s1950_s0 + $0xa8] sm:$0xff]  }
   0x6   :  { %v1674_v15 = vld [vmem:[%s1950_s0 + $0x30] sm:$0xff]   ;;  %v1676_v17 = vld [vmem:[%s1950_s0 + $0x38] sm:$0xff]   ;;  %v1678_v19 = vld [vmem:[%s1950_s0 + $0x40] sm:$0xff]  }
   0x7   :  { %1586 = vmatpush3.bf16.msra.mxu0 %v1660_v1  ;;  %1657 = vmatpush3.bf16.msra.mxu1 %v1660_v1  ;;  %v1675_v16 = vld [vmem:[%s1950_s0 + $0xb0] sm:$0xff]   ;;  %v1677_v18 = vld [vmem:[%s1950_s0 + $0xb8] sm:$0xff]   ;;  %v1679_v20 = vld [vmem:[%s1950_s0 + $0xc0] sm:$0xff]  }
   0x8   :  { %1587 = vmatprep.subr.bf16.mxu0 %v1661_v2  ;;  %1655 = vmatprep.subr.bf16.mxu1 %v1661_v2  ;;  %v1680_v21 = vld [vmem:[%s1950_s0 + $0x48] sm:$0xff]   ;;  %v1682_v23 = vld [vmem:[%s1950_s0 + $0x50] sm:$0xff]   ;;  %v1684_v25 = vld [vmem:[%s1950_s0 + $0x58] sm:$0xff]  }
   0x9   :  { %v1681_v22 = vld [vmem:[%s1950_s0 + $0xc8] sm:$0xff]   ;;  %v1683_v24 = vld [vmem:[%s1950_s0 + $0xd0] sm:$0xff]   ;;  %v1685_v26 = vld [vmem:[%s1950_s0 + $0xd8] sm:$0xff]  }
   0xa   :  { %v1686_v27 = vld [vmem:[%s1950_s0 + $0x60] sm:$0xff]   ;;  %v1688_v29 = vld [vmem:[%s1950_s0 + $0x68] sm:$0xff]   ;;  %v1690_v31 = vld [vmem:[%s1950_s0 + $0x70] sm:$0xff]  }
   0xb   :  { %1588 = vmatpush3.bf16.msra.mxu0 %v1661_v2  ;;  %1658 = vmatpush3.bf16.msra.mxu1 %v1661_v2  ;;  %v1687_v28 = vld [vmem:[%s1950_s0 + $0xe0] sm:$0xff]   ;;  %v1689_v30 = vld [vmem:[%s1950_s0 + $0xe8] sm:$0xff]   ;;  %v1691_v32 = vld [vmem:[%s1950_s0 + $0xf0] sm:$0xff]  }
   0xc   :  { %v1692_v33 = vld [vmem:[%s1950_s0 + $0x78] sm:$0xff]  }
   0xd   :  { %v1693_v34 = vld [vmem:[%s1950_s0 + $0xf8] sm:$0xff]  }
   0xe   :  { %1590 = vmatmul.mubr.msk.bf16.vlgmr.msra.gmra.mrb[0].mxu0 %vm260_vm0, %v1664_v5  ;;  %1622 = vmatmul.mubr.msk.bf16.vlgmr.msra.gmra.mrb[0].mxu1 %vm260_vm0, %v1665_v6 }
   0xf   :  { %1593 = vmatprep.mubr.msk.bf16.mxu0 %vm260_vm0, %v1666_v7  ;;  %1625 = vmatprep.mubr.msk.bf16.mxu1 %vm260_vm0, %v1667_v8 }
  0x16   :  { %1594 = vmatmul.mubr.msk.bf16.gmra.mrb[4].mxu0 %vm260_vm0, %v1668_v9  ;;  %1626 = vmatmul.mubr.msk.bf16.gmra.mrb[4].mxu1 %vm260_vm0, %v1669_v10 }
  0x17   :  { %1597 = vmatprep.mubr.msk.bf16.mxu0 %vm260_vm0, %v1670_v11  ;;  %1629 = vmatprep.mubr.msk.bf16.mxu1 %vm260_vm0, %v1671_v12 }
  0x1e   :  { %1598 = vmatmul.mubr.msk.bf16.gmra.mrb[8].mxu0 %vm260_vm0, %v1672_v13  ;;  %1630 = vmatmul.mubr.msk.bf16.gmra.mrb[8].mxu1 %vm260_vm0, %v1673_v14 }
  0x1f   :  { %1601 = vmatprep.mubr.msk.bf16.mxu0 %vm260_vm0, %v1674_v15  ;;  %1633 = vmatprep.mubr.msk.bf16.mxu1 %vm260_vm0, %v1675_v16 }
  0x26   :  { %1602 = vmatmul.mubr.msk.bf16.gmra.mrb[12].mxu0 %vm260_vm0, %v1676_v17  ;;  %1634 = vmatmul.mubr.msk.bf16.gmra.mrb[12].mxu1 %vm260_vm0, %v1677_v18 }
  0x27   :  { %1605 = vmatprep.mubr.msk.bf16.mxu0 %vm260_vm0, %v1678_v19  ;;  %1637 = vmatprep.mubr.msk.bf16.mxu1 %vm260_vm0, %v1679_v20 }
  0x2e   :  { %1606 = vmatmul.mubr.msk.bf16.gmra.mrb[16].mxu0 %vm260_vm0, %v1680_v21  ;;  %1638 = vmatmul.mubr.msk.bf16.gmra.mrb[16].mxu1 %vm260_vm0, %v1681_v22 }
  0x2f   :  { %1609 = vmatprep.mubr.msk.bf16.mxu0 %vm260_vm0, %v1682_v23  ;;  %1641 = vmatprep.mubr.msk.bf16.mxu1 %vm260_vm0, %v1683_v24 }
  0x36   :  { %1610 = vmatmul.mubr.msk.bf16.gmra.mrb[20].mxu0 %vm260_vm0, %v1684_v25  ;;  %1642 = vmatmul.mubr.msk.bf16.gmra.mrb[20].mxu1 %vm260_vm0, %v1685_v26 }
  0x37   :  { %1613 = vmatprep.mubr.msk.bf16.mxu0 %vm260_vm0, %v1686_v27  ;;  %1645 = vmatprep.mubr.msk.bf16.mxu1 %vm260_vm0, %v1687_v28 }
  0x3e   :  { %1614 = vmatmul.mubr.msk.bf16.gmra.mrb[24].mxu0 %vm260_vm0, %v1688_v29  ;;  %1646 = vmatmul.mubr.msk.bf16.gmra.mrb[24].mxu1 %vm260_vm0, %v1689_v30 }
  0x3f   :  { %1617 = vmatprep.mubr.msk.bf16.mxu0 %vm260_vm0, %v1690_v31  ;;  %1649 = vmatprep.mubr.msk.bf16.mxu1 %vm260_vm0, %v1691_v32 }
  0x46   :  { %1618 = vmatmul.mubr.msk.bf16.gmra.mrb[28].mxu0 %vm260_vm0, %v1692_v33  ;;  %1650 = vmatmul.mubr.msk.bf16.gmra.mrb[28].mxu1 %vm260_vm0, %v1693_v34 }
  0xe1   :  { %v1591_v35 = vpop.f32.mrb[0].mxu0  ;;  %v1623_v36 = vpop.f32.mrb[0].mxu1 }
  0xe2   :  { %vm648_vm1 = vcmp.gt.f32.partialorder %v1591_v35, 0.0  ;;  %v712_v37 = vmul.f32 0.2, %v1591_v35  ;;  %v744_v38 = vmul.f32 0.2, %v1623_v36  ;;  %vm680_vm2 = vcmp.gt.f32.partialorder %v1623_v36, 0.0 }
  0xe3   :  { %v391_v39 = vpop.f32.mrb[1].mxu0  ;;  %v519_v40 = vpop.f32.mrb[1].mxu1 }
  0xe4   :  { %v710_v41 = vmul.f32 0.2, %v391_v39  ;;  %v1592_v42 = vpop.f32.mrb[2].mxu0  ;;  %v1624_v43 = vpop.f32.mrb[2].mxu1  ;;  %v776_v44 = vsel %vm648_vm1, %v1591_v35, %v712_v37  ;;  %v742_v45 = vmul.f32 0.2, %v519_v40  ;;  %v808_v47 = vsel %vm680_vm2, %v1623_v36, %v744_v38 }
  0xe5   :  { %vm649_vm3 = vcmp.gt.f32.partialorder %v1592_v42, 0.0  ;;  %v713_v46 = vmul.f32 0.2, %v1592_v42  ;;  %vm646_vm4 = vcmp.gt.f32.partialorder %v391_v39, 0.0  ;;  %vm681_vm5 = vcmp.gt.f32.partialorder %v1624_v43, 0.0  ;;  %v394_v49 = vpop.f32.mrb[3].mxu0 }
  0xe6   :  { %v745_v48 = vmul.f32 0.2, %v1624_v43  ;;  %v522_v50 = vpop.f32.mrb[3].mxu1  ;;  %vm678_vm6 = vcmp.gt.f32.partialorder %v519_v40, 0.0  ;;  %vm647_vm7 = vcmp.gt.f32.partialorder %v394_v49, 0.0  ;;  %v774_v56 = vsel %vm646_vm4, %v391_v39, %v710_v41 }
  0xe7   :  { %v777_v51 = vsel %vm649_vm3, %v1592_v42, %v713_v46  ;;  %v711_v52 = vmul.f32 0.2, %v394_v49  ;;  %vm679_vm8 = vcmp.gt.f32.partialorder %v522_v50, 0.0  ;;  %v743_v55 = vmul.f32 0.2, %v522_v50 }
  0xe8   :  { %v1365_v53 = vpack.c.bf16 %v777_v51, %v776_v44  ;;  %v809_v54 = vsel %vm681_vm5, %v1624_v43, %v745_v48  ;;  %v806_v61 = vsel %vm678_vm6, %v519_v40, %v742_v45 }
  0xe9   :  { %v1445_v57 = vpack.c.bf16 %v809_v54, %v808_v47  ;;  %v775_v58 = vsel %vm647_vm7, %v394_v49, %v711_v52  ;;  %v1595_v59 = vpop.f32.mrb[4].mxu0  ;;  %v1627_v60 = vpop.f32.mrb[4].mxu1  ;;  %v807_v63 = vsel %vm679_vm8, %v522_v50, %v743_v55 }
  0xea   :  { %1517 = vst [vmem:[%s1951_s2 + $0x8] sm:$0xff] %v1365_v53   ;;  %v1360_v62 = vpack.c.bf16 %v775_v58, %v774_v56  ;;  %v716_v0 = vmul.f32 0.2, %v1595_v59  ;;  %v407_v1 = vpop.f32.mrb[5].mxu0  ;;  %v535_v2 = vpop.f32.mrb[5].mxu1  ;;  %v1440_v3 = vpack.c.bf16 %v807_v63, %v806_v61  ;;  %vm652_vm9 = vcmp.gt.f32.partialorder %v1595_v59, 0.0 }
  0xeb   :  { %1533 = vst [vmem:[%s1951_s2 + $0x88] sm:$0xff] %v1445_v57   ;;  %v748_v4 = vmul.f32 0.2, %v1627_v60  ;;  %v1596_v5 = vpop.f32.mrb[6].mxu0  ;;  %v1628_v6 = vpop.f32.mrb[6].mxu1  ;;  %vm684_vm10 = vcmp.gt.f32.partialorder %v1627_v60, 0.0 }
  0xec   :  { %1361 = vst [vmem:[%s1951_s2] sm:$0xff] %v1360_v62   ;;  %v714_v7 = vmul.f32 0.2, %v407_v1  ;;  %v746_v8 = vmul.f32 0.2, %v535_v2  ;;  %v410_v9 = vpop.f32.mrb[7].mxu0  ;;  %1532 = vst [vmem:[%s1951_s2 + $0x80] sm:$0xff] %v1440_v3   ;;  %v780_v12 = vsel %vm652_vm9, %v1595_v59, %v716_v0 }
  0xed   :  { %vm650_vm11 = vcmp.gt.f32.partialorder %v407_v1, 0.0  ;;  %vm653_vm12 = vcmp.gt.f32.partialorder %v1596_v5, 0.0  ;;  %v717_v10 = vmul.f32 0.2, %v1596_v5  ;;  %vm685_vm13 = vcmp.gt.f32.partialorder %v1628_v6, 0.0  ;;  %v538_v11 = vpop.f32.mrb[7].mxu1 }
  0xee   :  { %vm682_vm14 = vcmp.gt.f32.partialorder %v535_v2, 0.0  ;;  %v749_v13 = vmul.f32 0.2, %v1628_v6  ;;  %vm651_vm15 = vcmp.gt.f32.partialorder %v410_v9, 0.0  ;;  %v715_v15 = vmul.f32 0.2, %v410_v9 }
  0xef   :  { %v781_v14 = vsel %vm653_vm12, %v1596_v5, %v717_v10  ;;  %vm683_vm0 = vcmp.gt.f32.partialorder %v538_v11, 0.0  ;;  %v747_v16 = vmul.f32 0.2, %v538_v11  ;;  %v812_v17 = vsel %vm684_vm10, %v1627_v60, %v748_v4 }
  0xf0   :  { %v778_v18 = vsel %vm650_vm11, %v407_v1, %v714_v7  ;;  %v1375_v19 = vpack.c.bf16 %v781_v14, %v780_v12  ;;  %v813_v20 = vsel %vm685_vm13, %v1628_v6, %v749_v13  ;;  %v810_v21 = vsel %vm682_vm14, %v535_v2, %v746_v8 }
  0xf1   :  { %v1455_v22 = vpack.c.bf16 %v813_v20, %v812_v17  ;;  %v779_v23 = vsel %vm651_vm15, %v410_v9, %v715_v15  ;;  %v811_v24 = vsel %vm683_vm0, %v538_v11, %v747_v16  ;;  %v1599_v25 = vpop.f32.mrb[8].mxu0  ;;  %v1631_v26 = vpop.f32.mrb[8].mxu1 }
  0xf2   :  { %1519 = vst [vmem:[%s1951_s2 + $0x18] sm:$0xff] %v1375_v19   ;;  %v1370_v27 = vpack.c.bf16 %v779_v23, %v778_v18  ;;  %v1450_v28 = vpack.c.bf16 %v811_v24, %v810_v21  ;;  %vm656_vm1 = vcmp.gt.f32.partialorder %v1599_v25, 0.0  ;;  %v720_v29 = vmul.f32 0.2, %v1599_v25  ;;  %v423_v30 = vpop.f32.mrb[9].mxu0  ;;  %v551_v31 = vpop.f32.mrb[9].mxu1 }
  0xf3   :  { %1535 = vst [vmem:[%s1951_s2 + $0x98] sm:$0xff] %v1455_v22   ;;  %vm688_vm2 = vcmp.gt.f32.partialorder %v1631_v26, 0.0  ;;  %v752_v32 = vmul.f32 0.2, %v1631_v26  ;;  %v718_v33 = vmul.f32 0.2, %v423_v30 }
  0xf4   :  { %1518 = vst [vmem:[%s1951_s2 + $0x10] sm:$0xff] %v1370_v27   ;;  %1534 = vst [vmem:[%s1951_s2 + $0x90] sm:$0xff] %v1450_v28   ;;  %v750_v34 = vmul.f32 0.2, %v551_v31  ;;  %v1600_v35 = vpop.f32.mrb[10].mxu0  ;;  %v1632_v36 = vpop.f32.mrb[10].mxu1  ;;  %v784_v37 = vsel %vm656_vm1, %v1599_v25, %v720_v29 }
  0xf5   :  { %vm654_vm3 = vcmp.gt.f32.partialorder %v423_v30, 0.0  ;;  %vm657_vm4 = vcmp.gt.f32.partialorder %v1600_v35, 0.0  ;;  %v721_v38 = vmul.f32 0.2, %v1600_v35  ;;  %v426_v39 = vpop.f32.mrb[11].mxu0  ;;  %v554_v40 = vpop.f32.mrb[11].mxu1  ;;  %v816_v45 = vsel %vm688_vm2, %v1631_v26, %v752_v32 }
  0xf6   :  { %vm686_vm5 = vcmp.gt.f32.partialorder %v551_v31, 0.0  ;;  %vm689_vm6 = vcmp.gt.f32.partialorder %v1632_v36, 0.0  ;;  %v753_v41 = vmul.f32 0.2, %v1632_v36  ;;  %vm655_vm7 = vcmp.gt.f32.partialorder %v426_v39, 0.0 }
  0xf7   :  { %v785_v42 = vsel %vm657_vm4, %v1600_v35, %v721_v38  ;;  %v719_v43 = vmul.f32 0.2, %v426_v39  ;;  %vm687_vm8 = vcmp.gt.f32.partialorder %v554_v40, 0.0  ;;  %v751_v44 = vmul.f32 0.2, %v554_v40 }
  0xf8   :  { %v782_v46 = vsel %vm654_vm3, %v423_v30, %v718_v33  ;;  %v1385_v47 = vpack.c.bf16 %v785_v42, %v784_v37  ;;  %v817_v48 = vsel %vm689_vm6, %v1632_v36, %v753_v41  ;;  %v814_v49 = vsel %vm686_vm5, %v551_v31, %v750_v34 }
  0xf9   :  { %v1465_v50 = vpack.c.bf16 %v817_v48, %v816_v45  ;;  %v783_v51 = vsel %vm655_vm7, %v426_v39, %v719_v43  ;;  %v815_v52 = vsel %vm687_vm8, %v554_v40, %v751_v44  ;;  %v1603_v53 = vpop.f32.mrb[12].mxu0  ;;  %v1635_v54 = vpop.f32.mrb[12].mxu1 }
  0xfa   :  { %1521 = vst [vmem:[%s1951_s2 + $0x28] sm:$0xff] %v1385_v47   ;;  %v1380_v55 = vpack.c.bf16 %v783_v51, %v782_v46  ;;  %v1460_v56 = vpack.c.bf16 %v815_v52, %v814_v49  ;;  %vm660_vm9 = vcmp.gt.f32.partialorder %v1603_v53, 0.0  ;;  %v724_v57 = vmul.f32 0.2, %v1603_v53  ;;  %v439_v58 = vpop.f32.mrb[13].mxu0  ;;  %v567_v59 = vpop.f32.mrb[13].mxu1 }
  0xfb   :  { %1537 = vst [vmem:[%s1951_s2 + $0xa8] sm:$0xff] %v1465_v50   ;;  %vm692_vm10 = vcmp.gt.f32.partialorder %v1635_v54, 0.0  ;;  %v756_v60 = vmul.f32 0.2, %v1635_v54  ;;  %v722_v61 = vmul.f32 0.2, %v439_v58 }
  0xfc   :  { %1520 = vst [vmem:[%s1951_s2 + $0x20] sm:$0xff] %v1380_v55   ;;  %1536 = vst [vmem:[%s1951_s2 + $0xa0] sm:$0xff] %v1460_v56   ;;  %v754_v62 = vmul.f32 0.2, %v567_v59  ;;  %v1604_v63 = vpop.f32.mrb[14].mxu0  ;;  %v1636_v0 = vpop.f32.mrb[14].mxu1  ;;  %v788_v1 = vsel %vm660_vm9, %v1603_v53, %v724_v57 }
  0xfd   :  { %vm658_vm11 = vcmp.gt.f32.partialorder %v439_v58, 0.0  ;;  %vm661_vm12 = vcmp.gt.f32.partialorder %v1604_v63, 0.0  ;;  %v725_v2 = vmul.f32 0.2, %v1604_v63  ;;  %v442_v3 = vpop.f32.mrb[15].mxu0  ;;  %v570_v4 = vpop.f32.mrb[15].mxu1  ;;  %v820_v9 = vsel %vm692_vm10, %v1635_v54, %v756_v60 }
  0xfe   :  { %vm690_vm13 = vcmp.gt.f32.partialorder %v567_v59, 0.0  ;;  %vm693_vm14 = vcmp.gt.f32.partialorder %v1636_v0, 0.0  ;;  %v757_v5 = vmul.f32 0.2, %v1636_v0  ;;  %vm659_vm15 = vcmp.gt.f32.partialorder %v442_v3, 0.0 }
  0xff   :  { %v789_v6 = vsel %vm661_vm12, %v1604_v63, %v725_v2  ;;  %v723_v7 = vmul.f32 0.2, %v442_v3  ;;  %vm691_vm0 = vcmp.gt.f32.partialorder %v570_v4, 0.0  ;;  %v755_v8 = vmul.f32 0.2, %v570_v4 }
 0x100   :  { %v786_v10 = vsel %vm658_vm11, %v439_v58, %v722_v61  ;;  %v1395_v11 = vpack.c.bf16 %v789_v6, %v788_v1  ;;  %v821_v12 = vsel %vm693_vm14, %v1636_v0, %v757_v5  ;;  %v818_v13 = vsel %vm690_vm13, %v567_v59, %v754_v62 }
 0x101   :  { %v1475_v14 = vpack.c.bf16 %v821_v12, %v820_v9  ;;  %v787_v15 = vsel %vm659_vm15, %v442_v3, %v723_v7  ;;  %v819_v16 = vsel %vm691_vm0, %v570_v4, %v755_v8  ;;  %v1607_v17 = vpop.f32.mrb[16].mxu0  ;;  %v1639_v18 = vpop.f32.mrb[16].mxu1 }
 0x102   :  { %1523 = vst [vmem:[%s1951_s2 + $0x38] sm:$0xff] %v1395_v11   ;;  %v1390_v19 = vpack.c.bf16 %v787_v15, %v786_v10  ;;  %v1470_v20 = vpack.c.bf16 %v819_v16, %v818_v13  ;;  %vm664_vm1 = vcmp.gt.f32.partialorder %v1607_v17, 0.0  ;;  %v728_v21 = vmul.f32 0.2, %v1607_v17  ;;  %v455_v22 = vpop.f32.mrb[17].mxu0  ;;  %v583_v23 = vpop.f32.mrb[17].mxu1 }
 0x103   :  { %1539 = vst [vmem:[%s1951_s2 + $0xb8] sm:$0xff] %v1475_v14   ;;  %vm696_vm2 = vcmp.gt.f32.partialorder %v1639_v18, 0.0  ;;  %v760_v24 = vmul.f32 0.2, %v1639_v18  ;;  %v726_v25 = vmul.f32 0.2, %v455_v22 }
 0x104   :  { %1522 = vst [vmem:[%s1951_s2 + $0x30] sm:$0xff] %v1390_v19   ;;  %1538 = vst [vmem:[%s1951_s2 + $0xb0] sm:$0xff] %v1470_v20   ;;  %v758_v26 = vmul.f32 0.2, %v583_v23  ;;  %v1608_v27 = vpop.f32.mrb[18].mxu0  ;;  %v1640_v28 = vpop.f32.mrb[18].mxu1  ;;  %v792_v29 = vsel %vm664_vm1, %v1607_v17, %v728_v21 }
 0x105   :  { %vm662_vm3 = vcmp.gt.f32.partialorder %v455_v22, 0.0  ;;  %vm665_vm4 = vcmp.gt.f32.partialorder %v1608_v27, 0.0  ;;  %v729_v30 = vmul.f32 0.2, %v1608_v27  ;;  %v458_v31 = vpop.f32.mrb[19].mxu0  ;;  %v586_v32 = vpop.f32.mrb[19].mxu1  ;;  %v824_v37 = vsel %vm696_vm2, %v1639_v18, %v760_v24 }
 0x106   :  { %vm694_vm5 = vcmp.gt.f32.partialorder %v583_v23, 0.0  ;;  %vm697_vm6 = vcmp.gt.f32.partialorder %v1640_v28, 0.0  ;;  %v761_v33 = vmul.f32 0.2, %v1640_v28  ;;  %vm663_vm7 = vcmp.gt.f32.partialorder %v458_v31, 0.0 }
 0x107   :  { %v793_v34 = vsel %vm665_vm4, %v1608_v27, %v729_v30  ;;  %v727_v35 = vmul.f32 0.2, %v458_v31  ;;  %vm695_vm8 = vcmp.gt.f32.partialorder %v586_v32, 0.0  ;;  %v759_v36 = vmul.f32 0.2, %v586_v32 }
 0x108   :  { %v790_v38 = vsel %vm662_vm3, %v455_v22, %v726_v25  ;;  %v1405_v39 = vpack.c.bf16 %v793_v34, %v792_v29  ;;  %v825_v40 = vsel %vm697_vm6, %v1640_v28, %v761_v33  ;;  %v822_v41 = vsel %vm694_vm5, %v583_v23, %v758_v26 }
 0x109   :  { %v1485_v42 = vpack.c.bf16 %v825_v40, %v824_v37  ;;  %v791_v43 = vsel %vm663_vm7, %v458_v31, %v727_v35  ;;  %v823_v44 = vsel %vm695_vm8, %v586_v32, %v759_v36  ;;  %v1611_v45 = vpop.f32.mrb[20].mxu0  ;;  %v1643_v46 = vpop.f32.mrb[20].mxu1 }
 0x10a   :  { %1525 = vst [vmem:[%s1951_s2 + $0x48] sm:$0xff] %v1405_v39   ;;  %v1400_v47 = vpack.c.bf16 %v791_v43, %v790_v38  ;;  %v1480_v48 = vpack.c.bf16 %v823_v44, %v822_v41  ;;  %vm668_vm9 = vcmp.gt.f32.partialorder %v1611_v45, 0.0  ;;  %v732_v49 = vmul.f32 0.2, %v1611_v45  ;;  %v471_v50 = vpop.f32.mrb[21].mxu0  ;;  %v599_v51 = vpop.f32.mrb[21].mxu1 }
 0x10b   :  { %1541 = vst [vmem:[%s1951_s2 + $0xc8] sm:$0xff] %v1485_v42   ;;  %vm700_vm10 = vcmp.gt.f32.partialorder %v1643_v46, 0.0  ;;  %v764_v52 = vmul.f32 0.2, %v1643_v46  ;;  %v730_v53 = vmul.f32 0.2, %v471_v50 }
 0x10c   :  { %1524 = vst [vmem:[%s1951_s2 + $0x40] sm:$0xff] %v1400_v47   ;;  %1540 = vst [vmem:[%s1951_s2 + $0xc0] sm:$0xff] %v1480_v48   ;;  %v762_v54 = vmul.f32 0.2, %v599_v51  ;;  %v1612_v55 = vpop.f32.mrb[22].mxu0  ;;  %v1644_v56 = vpop.f32.mrb[22].mxu1  ;;  %v796_v57 = vsel %vm668_vm9, %v1611_v45, %v732_v49 }
 0x10d   :  { %vm666_vm11 = vcmp.gt.f32.partialorder %v471_v50, 0.0  ;;  %vm669_vm12 = vcmp.gt.f32.partialorder %v1612_v55, 0.0  ;;  %v733_v58 = vmul.f32 0.2, %v1612_v55  ;;  %v474_v59 = vpop.f32.mrb[23].mxu0  ;;  %v602_v60 = vpop.f32.mrb[23].mxu1  ;;  %v828_v1 = vsel %vm700_vm10, %v1643_v46, %v764_v52 }
 0x10e   :  { %vm698_vm13 = vcmp.gt.f32.partialorder %v599_v51, 0.0  ;;  %vm701_vm14 = vcmp.gt.f32.partialorder %v1644_v56, 0.0  ;;  %v765_v61 = vmul.f32 0.2, %v1644_v56  ;;  %vm667_vm15 = vcmp.gt.f32.partialorder %v474_v59, 0.0 }
 0x10f   :  { %v797_v62 = vsel %vm669_vm12, %v1612_v55, %v733_v58  ;;  %v731_v63 = vmul.f32 0.2, %v474_v59  ;;  %vm699_vm0 = vcmp.gt.f32.partialorder %v602_v60, 0.0  ;;  %v763_v0 = vmul.f32 0.2, %v602_v60 }
 0x110   :  { %v794_v2 = vsel %vm666_vm11, %v471_v50, %v730_v53  ;;  %v1415_v3 = vpack.c.bf16 %v797_v62, %v796_v57  ;;  %v829_v4 = vsel %vm701_vm14, %v1644_v56, %v765_v61  ;;  %v826_v5 = vsel %vm698_vm13, %v599_v51, %v762_v54 }
 0x111   :  { %v1495_v6 = vpack.c.bf16 %v829_v4, %v828_v1  ;;  %v795_v7 = vsel %vm667_vm15, %v474_v59, %v731_v63  ;;  %v827_v8 = vsel %vm699_vm0, %v602_v60, %v763_v0  ;;  %v1615_v9 = vpop.f32.mrb[24].mxu0  ;;  %v1647_v10 = vpop.f32.mrb[24].mxu1 }
 0x112   :  { %1527 = vst [vmem:[%s1951_s2 + $0x58] sm:$0xff] %v1415_v3   ;;  %v1410_v11 = vpack.c.bf16 %v795_v7, %v794_v2  ;;  %v1490_v12 = vpack.c.bf16 %v827_v8, %v826_v5  ;;  %vm672_vm1 = vcmp.gt.f32.partialorder %v1615_v9, 0.0  ;;  %v736_v13 = vmul.f32 0.2, %v1615_v9  ;;  %v487_v14 = vpop.f32.mrb[25].mxu0  ;;  %v615_v15 = vpop.f32.mrb[25].mxu1 }
 0x113   :  { %1543 = vst [vmem:[%s1951_s2 + $0xd8] sm:$0xff] %v1495_v6   ;;  %vm704_vm2 = vcmp.gt.f32.partialorder %v1647_v10, 0.0  ;;  %v768_v16 = vmul.f32 0.2, %v1647_v10  ;;  %v734_v17 = vmul.f32 0.2, %v487_v14 }
 0x114   :  { %1526 = vst [vmem:[%s1951_s2 + $0x50] sm:$0xff] %v1410_v11   ;;  %1542 = vst [vmem:[%s1951_s2 + $0xd0] sm:$0xff] %v1490_v12   ;;  %v766_v18 = vmul.f32 0.2, %v615_v15  ;;  %v1616_v19 = vpop.f32.mrb[26].mxu0  ;;  %v1648_v20 = vpop.f32.mrb[26].mxu1  ;;  %v800_v21 = vsel %vm672_vm1, %v1615_v9, %v736_v13 }
 0x115   :  { %vm670_vm3 = vcmp.gt.f32.partialorder %v487_v14, 0.0  ;;  %vm673_vm4 = vcmp.gt.f32.partialorder %v1616_v19, 0.0  ;;  %v737_v22 = vmul.f32 0.2, %v1616_v19  ;;  %v490_v23 = vpop.f32.mrb[27].mxu0  ;;  %v618_v24 = vpop.f32.mrb[27].mxu1  ;;  %v832_v29 = vsel %vm704_vm2, %v1647_v10, %v768_v16 }
 0x116   :  { %vm702_vm5 = vcmp.gt.f32.partialorder %v615_v15, 0.0  ;;  %vm705_vm6 = vcmp.gt.f32.partialorder %v1648_v20, 0.0  ;;  %v769_v25 = vmul.f32 0.2, %v1648_v20  ;;  %vm671_vm7 = vcmp.gt.f32.partialorder %v490_v23, 0.0 }
 0x117   :  { %v801_v26 = vsel %vm673_vm4, %v1616_v19, %v737_v22  ;;  %v735_v27 = vmul.f32 0.2, %v490_v23  ;;  %vm703_vm8 = vcmp.gt.f32.partialorder %v618_v24, 0.0  ;;  %v767_v28 = vmul.f32 0.2, %v618_v24 }
 0x118   :  { %v798_v30 = vsel %vm670_vm3, %v487_v14, %v734_v17  ;;  %v1425_v31 = vpack.c.bf16 %v801_v26, %v800_v21  ;;  %v833_v32 = vsel %vm705_vm6, %v1648_v20, %v769_v25  ;;  %v830_v33 = vsel %vm702_vm5, %v615_v15, %v766_v18 }
 0x119   :  { %v1505_v34 = vpack.c.bf16 %v833_v32, %v832_v29  ;;  %v799_v35 = vsel %vm671_vm7, %v490_v23, %v735_v27  ;;  %v831_v36 = vsel %vm703_vm8, %v618_v24, %v767_v28  ;;  %v1619_v37 = vpop.f32.mrb[28].mxu0  ;;  %v1651_v38 = vpop.f32.mrb[28].mxu1 }
 0x11a   :  { %1529 = vst [vmem:[%s1951_s2 + $0x68] sm:$0xff] %v1425_v31   ;;  %v1420_v39 = vpack.c.bf16 %v799_v35, %v798_v30  ;;  %v1500_v40 = vpack.c.bf16 %v831_v36, %v830_v33  ;;  %vm676_vm9 = vcmp.gt.f32.partialorder %v1619_v37, 0.0  ;;  %v740_v41 = vmul.f32 0.2, %v1619_v37  ;;  %v503_v42 = vpop.f32.mrb[29].mxu0  ;;  %v631_v43 = vpop.f32.mrb[29].mxu1 }
 0x11b   :  { %1545 = vst [vmem:[%s1951_s2 + $0xe8] sm:$0xff] %v1505_v34   ;;  %vm708_vm10 = vcmp.gt.f32.partialorder %v1651_v38, 0.0  ;;  %v772_v44 = vmul.f32 0.2, %v1651_v38  ;;  %v738_v45 = vmul.f32 0.2, %v503_v42 }
 0x11c   :  { %1528 = vst [vmem:[%s1951_s2 + $0x60] sm:$0xff] %v1420_v39   ;;  %1544 = vst [vmem:[%s1951_s2 + $0xe0] sm:$0xff] %v1500_v40   ;;  %v770_v46 = vmul.f32 0.2, %v631_v43  ;;  %v1620_v47 = vpop.f32.mrb[30].mxu0  ;;  %v1652_v48 = vpop.f32.mrb[30].mxu1  ;;  %v804_v49 = vsel %vm676_vm9, %v1619_v37, %v740_v41 }
 0x11d   :  { %vm674_vm11 = vcmp.gt.f32.partialorder %v503_v42, 0.0  ;;  %vm677_vm12 = vcmp.gt.f32.partialorder %v1620_v47, 0.0  ;;  %v741_v50 = vmul.f32 0.2, %v1620_v47  ;;  %v506_v51 = vpop.f32.mrb[31].mxu0  ;;  %v634_v52 = vpop.f32.mrb[31].mxu1  ;;  %v836_v57 = vsel %vm708_vm10, %v1651_v38, %v772_v44 }
 0x11e   :  { %vm706_vm13 = vcmp.gt.f32.partialorder %v631_v43, 0.0  ;;  %vm709_vm14 = vcmp.gt.f32.partialorder %v1652_v48, 0.0  ;;  %v773_v53 = vmul.f32 0.2, %v1652_v48  ;;  %vm675_vm15 = vcmp.gt.f32.partialorder %v506_v51, 0.0 }
 0x11f   :  { %v805_v54 = vsel %vm677_vm12, %v1620_v47, %v741_v50  ;;  %v739_v55 = vmul.f32 0.2, %v506_v51  ;;  %vm707_vm0 = vcmp.gt.f32.partialorder %v634_v52, 0.0  ;;  %v771_v56 = vmul.f32 0.2, %v634_v52 }
 0x120   :  { %v802_v58 = vsel %vm674_vm11, %v503_v42, %v738_v45  ;;  %v1435_v59 = vpack.c.bf16 %v805_v54, %v804_v49  ;;  %v837_v60 = vsel %vm709_vm14, %v1652_v48, %v773_v53  ;;  %v834_v61 = vsel %vm706_vm13, %v631_v43, %v770_v46 }
 0x121   :  { %v1515_v62 = vpack.c.bf16 %v837_v60, %v836_v57  ;;  %v803_v63 = vsel %vm675_vm15, %v506_v51, %v739_v55  ;;  %v835_v0 = vsel %vm707_vm0, %v634_v52, %v771_v56 }
 0x122   :  { %1531 = vst [vmem:[%s1951_s2 + $0x78] sm:$0xff] %v1435_v59   ;;  %v1430_v1 = vpack.c.bf16 %v803_v63, %v802_v58  ;;  %v1510_v2 = vpack.c.bf16 %v835_v0, %v834_v61 }
 0x123   :  { %1547 = vst [vmem:[%s1951_s2 + $0xf8] sm:$0xff] %v1515_v62  }
 0x124   :  { %1530 = vst [vmem:[%s1951_s2 + $0x70] sm:$0xff] %v1430_v1   ;;  %1546 = vst [vmem:[%s1951_s2 + $0xf0] sm:$0xff] %v1510_v2  }

// kernel: discriminator_forward.5
= control target key start
LH: loop header
LB: loop body
LE: loop exit
PB: predicated region body
PF: predicated region fallthrough
CT: control target
= control target key end

     0   :  { %s2470_s1 = inlined_call_operand.vmem [shape: bf16[1024,128], index: 1, kind: input, shape index: {}]   ;;  %s2471_s0 = inlined_call_operand.vmem [shape: bf16[128,1024], index: 0, kind: input, shape index: {}]   ;;  %s2472_s2 = inlined_call_operand.vmem [shape: bf16[128,128], index: 2, kind: output, shape index: {0}]   ;;  %s2473_s3 = inlined_call_operand.vmem [shape: f32[8,128], index: 3, kind: output, shape index: {1}]   ;;  %s2474_s4 = inlined_call_operand.vmem [shape: f32[8,128], index: 4, kind: output, shape index: {2}]  }
   0x1   :  { %v1919_v0 = vld [vmem:[%s2470_s1 + $0x40] sm:$0xff]   ;;  %v1923_v4 = vld [vmem:[%s2470_s1 + $0x48] sm:$0xff]   ;;  %v1927_v8 = vld [vmem:[%s2470_s1 + $0x50] sm:$0xff]  }
   0x2   :  { %v1920_v1 = vld [vmem:[%s2470_s1 + $0xc0] sm:$0xff]   ;;  %1663 = vmatprep.subr.bf16.mxu0 %v1919_v0  ;;  %v1924_v5 = vld [vmem:[%s2470_s1 + $0xc8] sm:$0xff]   ;;  %v1928_v9 = vld [vmem:[%s2470_s1 + $0xd0] sm:$0xff]  }
   0x3   :  { %v1921_v2 = vld [vmem:[%s2470_s1] sm:$0xff]   ;;  %1727 = vmatprep.subr.bf16.mxu1 %v1920_v1  ;;  %v1925_v6 = vld [vmem:[%s2470_s1 + $0x8] sm:$0xff]   ;;  %v1929_v10 = vld [vmem:[%s2470_s1 + $0x10] sm:$0xff]  }
   0x4   :  { %v1922_v3 = vld [vmem:[%s2470_s1 + $0x80] sm:$0xff]   ;;  %1664 = vmatpush3.bf16.msra.mxu0 %v1921_v2  ;;  %v1926_v7 = vld [vmem:[%s2470_s1 + $0x88] sm:$0xff]   ;;  %v1930_v11 = vld [vmem:[%s2470_s1 + $0x90] sm:$0xff]  }
   0x5   :  { %1728 = vmatpush3.bf16.msra.mxu1 %v1922_v3  ;;  %1665 = vmatprep.subr.bf16.mxu0 %v1923_v4  ;;  %v1931_v12 = vld [vmem:[%s2470_s1 + $0x58] sm:$0xff]   ;;  %v1935_v16 = vld [vmem:[%s2470_s1 + $0x60] sm:$0xff]   ;;  %v1939_v20 = vld [vmem:[%s2470_s1 + $0x68] sm:$0xff]  }
   0x6   :  { %1729 = vmatprep.subr.bf16.mxu1 %v1924_v5  ;;  %v1932_v13 = vld [vmem:[%s2470_s1 + $0xd8] sm:$0xff]   ;;  %v1936_v17 = vld [vmem:[%s2470_s1 + $0xe0] sm:$0xff]   ;;  %v1940_v21 = vld [vmem:[%s2470_s1 + $0xe8] sm:$0xff]  }
   0x7   :  { %v1933_v14 = vld [vmem:[%s2470_s1 + $0x18] sm:$0xff]   ;;  %v1937_v18 = vld [vmem:[%s2470_s1 + $0x20] sm:$0xff]   ;;  %v1941_v22 = vld [vmem:[%s2470_s1 + $0x28] sm:$0xff]  }
   0x8   :  { %1666 = vmatpush3.bf16.msra.mxu0 %v1925_v6  ;;  %v1934_v15 = vld [vmem:[%s2470_s1 + $0x98] sm:$0xff]   ;;  %v1938_v19 = vld [vmem:[%s2470_s1 + $0xa0] sm:$0xff]   ;;  %v1942_v23 = vld [vmem:[%s2470_s1 + $0xa8] sm:$0xff]  }
   0x9   :  { %1730 = vmatpush3.bf16.msra.mxu1 %v1926_v7  ;;  %1667 = vmatprep.subr.bf16.mxu0 %v1927_v8  ;;  %v1943_v24 = vld [vmem:[%s2470_s1 + $0x70] sm:$0xff]   ;;  %v1947_v28 = vld [vmem:[%s2470_s1 + $0x78] sm:$0xff]   ;;  %v15_v32 = vld [vmem:[%s2471_s0] sm:$0xff] }
   0xa   :  { %1731 = vmatprep.subr.bf16.mxu1 %v1928_v9  ;;  %v1944_v25 = vld [vmem:[%s2470_s1 + $0xf0] sm:$0xff]   ;;  %v1948_v29 = vld [vmem:[%s2470_s1 + $0xf8] sm:$0xff]   ;;  %v19_v33 = vld [vmem:[%s2471_s0 + $0x20] sm:$0xff] }
   0xb   :  { %v1945_v26 = vld [vmem:[%s2470_s1 + $0x30] sm:$0xff]   ;;  %v1949_v30 = vld [vmem:[%s2470_s1 + $0x38] sm:$0xff]   ;;  %v16_v34 = vld [vmem:[%s2471_s0 + $0x8] sm:$0xff]  ;;  %v1456_v35 = vcombine.low %v15_v32, %v19_v33  ;;  %v1457_v36 = vcombine.high %v15_v32, %v19_v33 }
   0xc   :  { %1668 = vmatpush3.bf16.msra.mxu0 %v1929_v10  ;;  %v1946_v27 = vld [vmem:[%s2470_s1 + $0xb0] sm:$0xff]   ;;  %v1950_v31 = vld [vmem:[%s2470_s1 + $0xb8] sm:$0xff]   ;;  %v20_v37 = vld [vmem:[%s2471_s0 + $0x28] sm:$0xff] }
   0xd   :  { %1732 = vmatpush3.bf16.msra.mxu1 %v1930_v11  ;;  %1669 = vmatprep.subr.bf16.mxu0 %v1931_v12  ;;  %v1458_v38 = vcombine.low %v16_v34, %v20_v37  ;;  %v1459_v39 = vcombine.high %v16_v34, %v20_v37  ;;  %v1951_v40 = vld [vmem:[%s2470_s1 + $0x140] sm:$0xff]   ;;  %v24_v47 = vld [vmem:[%s2471_s0 + $0x48] sm:$0xff]  ;;  %v1959_v62 = vld [vmem:[%s2470_s1 + $0x150] sm:$0xff]  }
   0xe   :  { %1733 = vmatprep.subr.bf16.mxu1 %v1932_v13  ;;  %943 = vmatprep.mubr.bf16.mxu0 %v1457_v36  ;;  %v1952_v41 = vld [vmem:[%s2470_s1 + $0x100] sm:$0xff]   ;;  %v28_v48 = vld [vmem:[%s2471_s0 + $0x68] sm:$0xff]  ;;  %v1960_v63 = vld [vmem:[%s2470_s1 + $0x110] sm:$0xff]  }
   0xf   :  { %1040 = vmatprep.mubr.bf16.mxu1 %v1459_v39  ;;  %v1953_v42 = vld [vmem:[%s2470_s1 + $0x1c0] sm:$0xff]   ;;  %v1467_v49 = vcombine.high %v24_v47, %v28_v48  ;;  %v1955_v50 = vld [vmem:[%s2470_s1 + $0x148] sm:$0xff]   ;;  %v1466_v53 = vcombine.low %v24_v47, %v28_v48  ;;  %v1961_v0 = vld [vmem:[%s2470_s1 + $0x1d0] sm:$0xff]  }
  0x10   :  { %1670 = vmatpush3.bf16.msra.mxu0 %v1933_v14  ;;  %v1954_v43 = vld [vmem:[%s2470_s1 + $0x180] sm:$0xff]   ;;  %v1956_v52 = vld [vmem:[%s2470_s1 + $0x108] sm:$0xff]   ;;  %v1962_v1 = vld [vmem:[%s2470_s1 + $0x190] sm:$0xff]  }
  0x11   :  { %1734 = vmatpush3.bf16.msra.mxu1 %v1934_v15  ;;  %1671 = vmatprep.subr.bf16.mxu0 %v1935_v16  ;;  %v23_v44 = vld [vmem:[%s2471_s0 + $0x40] sm:$0xff]  ;;  %v1957_v54 = vld [vmem:[%s2470_s1 + $0x1c8] sm:$0xff]   ;;  %v1963_v10 = vld [vmem:[%s2470_s1 + $0x158] sm:$0xff]  }
  0x12   :  { %1735 = vmatprep.subr.bf16.mxu1 %v1936_v17  ;;  %v27_v45 = vld [vmem:[%s2471_s0 + $0x60] sm:$0xff]  ;;  %v1958_v55 = vld [vmem:[%s2470_s1 + $0x188] sm:$0xff]   ;;  %v1964_v11 = vld [vmem:[%s2470_s1 + $0x118] sm:$0xff]  }
  0x13   :  { %v1465_v46 = vcombine.high %v23_v44, %v27_v45  ;;  %v1464_v51 = vcombine.low %v23_v44, %v27_v45  ;;  %v31_v56 = vld [vmem:[%s2471_s0 + $0x80] sm:$0xff]  ;;  %v32_v58 = vld [vmem:[%s2471_s0 + $0x88] sm:$0xff]  ;;  %v1965_v12 = vld [vmem:[%s2470_s1 + $0x1d8] sm:$0xff]  }
  0x14   :  { %1672 = vmatpush3.bf16.msra.mxu0 %v1937_v18  ;;  %v35_v57 = vld [vmem:[%s2471_s0 + $0xa0] sm:$0xff]  ;;  %v36_v59 = vld [vmem:[%s2471_s0 + $0xa8] sm:$0xff]  ;;  %v1966_v13 = vld [vmem:[%s2470_s1 + $0x198] sm:$0xff]  }
  0x15   :  { %1736 = vmatpush3.bf16.msra.mxu1 %v1938_v19  ;;  %1673 = vmatprep.subr.bf16.mxu0 %v1939_v20  ;;  %v1473_v60 = vcombine.high %v31_v56, %v35_v57  ;;  %v1475_v61 = vcombine.high %v32_v58, %v36_v59  ;;  %v1472_v2 = vcombine.low %v31_v56, %v35_v57  ;;  %v39_v3 = vld [vmem:[%s2471_s0 + $0xc0] sm:$0xff]  ;;  %v40_v5 = vld [vmem:[%s2471_s0 + $0xc8] sm:$0xff]  ;;  %v1976_v39 = vld [vmem:[%s2470_s1 + $0x130] sm:$0xff]  }
  0x16   :  { %1737 = vmatprep.subr.bf16.mxu1 %v1940_v21  ;;  %v43_v4 = vld [vmem:[%s2471_s0 + $0xe0] sm:$0xff]  ;;  %v1474_v6 = vcombine.low %v32_v58, %v36_v59  ;;  %v44_v8 = vld [vmem:[%s2471_s0 + $0xe8] sm:$0xff]  ;;  %v1980_v48 = vld [vmem:[%s2470_s1 + $0x138] sm:$0xff]  }
  0x17   :  { %v1481_v7 = vcombine.high %v39_v3, %v43_v4  ;;  %v1483_v9 = vcombine.high %v40_v5, %v44_v8  ;;  %v47_v14 = vld [vmem:[%s2471_s0 + $0x100] sm:$0xff]  ;;  %v48_v16 = vld [vmem:[%s2471_s0 + $0x108] sm:$0xff]  ;;  %v1480_v19 = vcombine.low %v39_v3, %v43_v4  ;;  %v1482_v21 = vcombine.low %v40_v5, %v44_v8  ;;  %v26_v8 = vld [vmem:[%s2471_s0 + $0x58] sm:$0xff] }
  0x18   :  { %1674 = vmatpush3.bf16.msra.mxu0 %v1941_v22  ;;  %v51_v15 = vld [vmem:[%s2471_s0 + $0x120] sm:$0xff]  ;;  %v52_v17 = vld [vmem:[%s2471_s0 + $0x128] sm:$0xff] }
  0x19   :  { %1738 = vmatpush3.bf16.msra.mxu1 %v1942_v23  ;;  %1675 = vmatprep.subr.bf16.mxu0 %v1943_v24  ;;  %v1967_v18 = vld [vmem:[%s2470_s1 + $0x160] sm:$0xff]   ;;  %v1489_v22 = vcombine.high %v47_v14, %v51_v15  ;;  %v1491_v24 = vcombine.high %v48_v16, %v52_v17  ;;  %v1973_v32 = vld [vmem:[%s2470_s1 + $0x1e8] sm:$0xff]   ;;  %v1488_v34 = vcombine.low %v47_v14, %v51_v15  ;;  %v33_v14 = vld [vmem:[%s2471_s0 + $0x90] sm:$0xff] }
  0x1a   :  { %1739 = vmatprep.subr.bf16.mxu1 %v1944_v25  ;;  %v1968_v20 = vld [vmem:[%s2470_s1 + $0x120] sm:$0xff]   ;;  %v1974_v33 = vld [vmem:[%s2470_s1 + $0x1a8] sm:$0xff]   ;;  %v37_v15 = vld [vmem:[%s2471_s0 + $0xb0] sm:$0xff] }
  0x1b   :  { %v1969_v23 = vld [vmem:[%s2470_s1 + $0x1e0] sm:$0xff]   ;;  %v64_v44 = vld [vmem:[%s2471_s0 + $0x188] sm:$0xff] }
  0x1c   :  { %1676 = vmatpush3.bf16.msra.mxu0 %v1945_v26  ;;  %v1970_v25 = vld [vmem:[%s2470_s1 + $0x1a0] sm:$0xff]   ;;  %v68_v45 = vld [vmem:[%s2471_s0 + $0x1a8] sm:$0xff] }
  0x1d   :  { %1740 = vmatpush3.bf16.msra.mxu1 %v1946_v27  ;;  %1677 = vmatprep.subr.bf16.mxu0 %v1947_v28  ;;  %v55_v26 = vld [vmem:[%s2471_s0 + $0x140] sm:$0xff]  ;;  %v1971_v28 = vld [vmem:[%s2470_s1 + $0x168] sm:$0xff]   ;;  %v1506_v59 = vcombine.low %v64_v44, %v68_v45 }
  0x1e   :  { %1741 = vmatprep.subr.bf16.mxu1 %v1948_v29  ;;  %v59_v27 = vld [vmem:[%s2471_s0 + $0x160] sm:$0xff]  ;;  %v56_v29 = vld [vmem:[%s2471_s0 + $0x148] sm:$0xff] }
  0x1f   :  { %v1497_v36 = vcombine.high %v55_v26, %v59_v27  ;;  %v1496_v47 = vcombine.low %v55_v26, %v59_v27  ;;  %v72_v56 = vld [vmem:[%s2471_s0 + $0x1c8] sm:$0xff]  ;;  %v1476_v26 = vcombine.low %v33_v14, %v37_v15 }
  0x20   :  { %1678 = vmatpush3.bf16.msra.mxu0 %v1949_v30  ;;  %v60_v30 = vld [vmem:[%s2471_s0 + $0x168] sm:$0xff] }
  0x21   :  { %1742 = vmatpush3.bf16.msra.mxu1 %v1950_v31  ;;  %1791 = vmatprep.subr.bf16.mxu0 %v1951_v40  ;;  %v1972_v31 = vld [vmem:[%s2470_s1 + $0x128] sm:$0xff]   ;;  %v1499_v37 = vcombine.high %v56_v29, %v60_v30  ;;  %v1977_v40 = vld [vmem:[%s2470_s1 + $0x1f0] sm:$0xff]  }
  0x22   :  { %1855 = vmatprep.subr.bf16.mxu1 %v1953_v42  ;;  %v67_v42 = vld [vmem:[%s2471_s0 + $0x1a0] sm:$0xff]  ;;  %v76_v57 = vld [vmem:[%s2471_s0 + $0x1e8] sm:$0xff] }
  0x23   :  { %944 = vmatmul.mubr.bf16.vlgmr.msra.gmra.mrb[0].mxu0 %v1456_v35  ;;  %v1490_v35 = vcombine.low %v48_v16, %v52_v17  ;;  %v1514_v3 = vcombine.low %v72_v56, %v76_v57  ;;  %v34_v16 = vld [vmem:[%s2471_s0 + $0x98] sm:$0xff] }
  0x24   :  { %1041 = vmatmul.mubr.bf16.vlgmr.msra.gmra.mrb[0].mxu1 %v1458_v38  ;;  %1792 = vmatpush3.bf16.msra.mxu0 %v1952_v41  ;;  %v1975_v38 = vld [vmem:[%s2470_s1 + $0x170] sm:$0xff]   ;;  %v63_v41 = vld [vmem:[%s2471_s0 + $0x180] sm:$0xff]  ;;  %v38_v17 = vld [vmem:[%s2471_s0 + $0xb8] sm:$0xff] }
  0x25   :  { %1856 = vmatpush3.bf16.msra.mxu1 %v1954_v43  ;;  %951 = vmatprep.mubr.bf16.mxu0 %v1465_v46  ;;  %v1978_v43 = vld [vmem:[%s2470_s1 + $0x1b0] sm:$0xff]   ;;  %v1979_v46 = vld [vmem:[%s2470_s1 + $0x178] sm:$0xff]   ;;  %v1504_v58 = vcombine.low %v63_v41, %v67_v42  ;;  %v1478_v27 = vcombine.low %v34_v16, %v38_v17 }
  0x26   :  { %1048 = vmatprep.mubr.bf16.mxu1 %v1467_v49  ;;  %1793 = vmatprep.subr.bf16.mxu0 %v1955_v50  ;;  %v1498_v49 = vcombine.low %v56_v29, %v60_v30  ;;  %v1505_v50 = vcombine.high %v63_v41, %v67_v42  ;;  %v49_v30 = vld [vmem:[%s2471_s0 + $0x110] sm:$0xff]  ;;  %v62_v41 = vld [vmem:[%s2471_s0 + $0x178] sm:$0xff] }
  0x27   :  { %1857 = vmatprep.subr.bf16.mxu1 %v1957_v54  ;;  %v71_v54 = vld [vmem:[%s2471_s0 + $0x1c0] sm:$0xff] }
  0x28   :  { %1794 = vmatpush3.bf16.msra.mxu0 %v1956_v52  ;;  %v1507_v52 = vcombine.high %v64_v44, %v68_v45 }
  0x29   :  { %1858 = vmatpush3.bf16.msra.mxu1 %v1958_v55  ;;  %1795 = vmatprep.subr.bf16.mxu0 %v1959_v62  ;;  %v75_v55 = vld [vmem:[%s2471_s0 + $0x1e0] sm:$0xff]  ;;  %v17_v62 = vld [vmem:[%s2471_s0 + $0x10] sm:$0xff] }
  0x2a   :  { %1859 = vmatprep.subr.bf16.mxu1 %v1961_v0  ;;  %v18_v0 = vld [vmem:[%s2471_s0 + $0x18] sm:$0xff] }
  0x2b   :  { %952 = vmatmul.mubr.bf16.gmra.mrb[4].mxu0 %v1464_v51  ;;  %v1981_v51 = vld [vmem:[%s2470_s1 + $0x1f8] sm:$0xff]  }
  0x2c   :  { %1049 = vmatmul.mubr.bf16.gmra.mrb[4].mxu1 %v1466_v53  ;;  %959 = vmatprep.mubr.bf16.mxu0 %v1473_v60  ;;  %v1982_v53 = vld [vmem:[%s2470_s1 + $0x1b8] sm:$0xff]   ;;  %v1513_v60 = vcombine.high %v71_v54, %v75_v55 }
  0x2d   :  { %1056 = vmatprep.mubr.bf16.mxu1 %v1475_v61  ;;  %1796 = vmatpush3.bf16.msra.mxu0 %v1960_v63  ;;  %v1515_v61 = vcombine.high %v72_v56, %v76_v57  ;;  %v21_v63 = vld [vmem:[%s2471_s0 + $0x30] sm:$0xff]  ;;  %v74_v56 = vld [vmem:[%s2471_s0 + $0x1d8] sm:$0xff] }
  0x2e   :  { %1860 = vmatpush3.bf16.msra.mxu1 %v1962_v1  ;;  %1797 = vmatprep.subr.bf16.mxu0 %v1963_v10  ;;  %v22_v1 = vld [vmem:[%s2471_s0 + $0x38] sm:$0xff]  ;;  %v1461_v4 = vcombine.high %v17_v62, %v21_v63  ;;  %v1460_v10 = vcombine.low %v17_v62, %v21_v63 }
  0x2f   :  { %1861 = vmatprep.subr.bf16.mxu1 %v1965_v12  ;;  %v1463_v5 = vcombine.high %v18_v0, %v22_v1  ;;  %v78_v57 = vld [vmem:[%s2471_s0 + $0x1f8] sm:$0xff] }
  0x30   :  { %v1518_v63 = vcombine.low %v74_v56, %v78_v57 }
  0x31   :  { %1798 = vmatpush3.bf16.msra.mxu0 %v1964_v11  ;;  %v1462_v11 = vcombine.low %v18_v0, %v22_v1 }
  0x32   :  { %1862 = vmatpush3.bf16.msra.mxu1 %v1966_v13  ;;  %1799 = vmatprep.subr.bf16.mxu0 %v1967_v18 }
  0x33   :  { %960 = vmatmul.mubr.bf16.gmra.mrb[8].mxu0 %v1472_v2  ;;  %1863 = vmatprep.subr.bf16.mxu1 %v1969_v23  ;;  %v1512_v2 = vcombine.low %v71_v54, %v75_v55  ;;  %v45_v23 = vld [vmem:[%s2471_s0 + $0xf0] sm:$0xff] }
  0x34   :  { %1057 = vmatmul.mubr.bf16.gmra.mrb[8].mxu1 %v1474_v6  ;;  %967 = vmatprep.mubr.bf16.mxu0 %v1481_v7  ;;  %v25_v6 = vld [vmem:[%s2471_s0 + $0x50] sm:$0xff] }
  0x35   :  { %1064 = vmatprep.mubr.bf16.mxu1 %v1483_v9  ;;  %1800 = vmatpush3.bf16.msra.mxu0 %v1968_v20  ;;  %v29_v7 = vld [vmem:[%s2471_s0 + $0x70] sm:$0xff]  ;;  %v30_v9 = vld [vmem:[%s2471_s0 + $0x78] sm:$0xff]  ;;  %v1477_v20 = vcombine.high %v33_v14, %v37_v15 }
  0x36   :  { %1864 = vmatpush3.bf16.msra.mxu1 %v1970_v25  ;;  %1801 = vmatprep.subr.bf16.mxu0 %v1971_v28  ;;  %v1469_v12 = vcombine.high %v25_v6, %v29_v7  ;;  %v1471_v13 = vcombine.high %v26_v8, %v30_v9  ;;  %v1468_v18 = vcombine.low %v25_v6, %v29_v7  ;;  %v46_v25 = vld [vmem:[%s2471_s0 + $0xf8] sm:$0xff]  ;;  %v73_v54 = vld [vmem:[%s2471_s0 + $0x1d0] sm:$0xff] }
  0x37   :  { %1865 = vmatprep.subr.bf16.mxu1 %v1973_v32  ;;  %v50_v32 = vld [vmem:[%s2471_s0 + $0x118] sm:$0xff]  ;;  %v77_v55 = vld [vmem:[%s2471_s0 + $0x1f0] sm:$0xff] }
  0x38   :  { %v1516_v62 = vcombine.low %v73_v54, %v77_v55 }
  0x39   :  { %1802 = vmatpush3.bf16.msra.mxu0 %v1972_v31  ;;  %v53_v31 = vld [vmem:[%s2471_s0 + $0x130] sm:$0xff] }
  0x3a   :  { %1866 = vmatpush3.bf16.msra.mxu1 %v1974_v33  ;;  %1803 = vmatprep.subr.bf16.mxu0 %v1975_v38  ;;  %v54_v33 = vld [vmem:[%s2471_s0 + $0x138] sm:$0xff]  ;;  %v57_v38 = vld [vmem:[%s2471_s0 + $0x150] sm:$0xff]  ;;  %v1492_v42 = vcombine.low %v49_v30, %v53_v31 }
  0x3b   :  { %968 = vmatmul.mubr.bf16.gmra.mrb[12].mxu0 %v1480_v19  ;;  %1867 = vmatprep.subr.bf16.mxu1 %v1977_v40  ;;  %v1470_v19 = vcombine.low %v26_v8, %v30_v9  ;;  %v58_v40 = vld [vmem:[%s2471_s0 + $0x158] sm:$0xff] }
  0x3c   :  { %1065 = vmatmul.mubr.bf16.gmra.mrb[12].mxu1 %v1482_v21  ;;  %975 = vmatprep.mubr.bf16.mxu0 %v1489_v22  ;;  %v1479_v21 = vcombine.high %v34_v16, %v38_v17  ;;  %v41_v22 = vld [vmem:[%s2471_s0 + $0xd0] sm:$0xff]  ;;  %v1503_v45 = vcombine.high %v58_v40, %v62_v41 }
  0x3d   :  { %1072 = vmatprep.mubr.bf16.mxu1 %v1491_v24  ;;  %1804 = vmatpush3.bf16.msra.mxu0 %v1976_v39  ;;  %v42_v24 = vld [vmem:[%s2471_s0 + $0xd8] sm:$0xff]  ;;  %v1485_v28 = vcombine.high %v41_v22, %v45_v23  ;;  %v61_v39 = vld [vmem:[%s2471_s0 + $0x170] sm:$0xff] }
  0x3e   :  { %1868 = vmatpush3.bf16.msra.mxu1 %v1978_v43  ;;  %1805 = vmatprep.subr.bf16.mxu0 %v1979_v46  ;;  %v1487_v29 = vcombine.high %v42_v24, %v46_v25  ;;  %v1494_v43 = vcombine.low %v50_v32, %v54_v33  ;;  %v1501_v44 = vcombine.high %v57_v38, %v61_v39  ;;  %v65_v46 = vld [vmem:[%s2471_s0 + $0x190] sm:$0xff] }
  0x3f   :  { %1869 = vmatprep.subr.bf16.mxu1 %v1981_v51  ;;  %v1502_v51 = vcombine.low %v58_v40, %v62_v41 }
  0x41   :  { %1806 = vmatpush3.bf16.msra.mxu0 %v1980_v48  ;;  %v66_v48 = vld [vmem:[%s2471_s0 + $0x198] sm:$0xff] }
  0x42   :  { %1870 = vmatpush3.bf16.msra.mxu1 %v1982_v53 }
  0x43   :  { %976 = vmatmul.mubr.bf16.gmra.mrb[16].mxu0 %v1488_v34  ;;  %v1484_v34 = vcombine.low %v41_v22, %v45_v23 }
  0x44   :  { %1073 = vmatmul.mubr.bf16.gmra.mrb[16].mxu1 %v1490_v35  ;;  %983 = vmatprep.mubr.bf16.mxu0 %v1497_v36  ;;  %v1486_v35 = vcombine.low %v42_v24, %v46_v25  ;;  %v1493_v36 = vcombine.high %v49_v30, %v53_v31 }
  0x45   :  { %1080 = vmatprep.mubr.bf16.mxu1 %v1499_v37  ;;  %v1495_v37 = vcombine.high %v50_v32, %v54_v33 }
  0x4b   :  { %984 = vmatmul.mubr.bf16.gmra.mrb[20].mxu0 %v1496_v47  ;;  %v69_v47 = vld [vmem:[%s2471_s0 + $0x1b0] sm:$0xff] }
  0x4c   :  { %1081 = vmatmul.mubr.bf16.gmra.mrb[20].mxu1 %v1498_v49  ;;  %991 = vmatprep.mubr.bf16.mxu0 %v1505_v50  ;;  %v70_v49 = vld [vmem:[%s2471_s0 + $0x1b8] sm:$0xff]  ;;  %v1500_v50 = vcombine.low %v57_v38, %v61_v39 }
  0x4d   :  { %1088 = vmatprep.mubr.bf16.mxu1 %v1507_v52  ;;  %v1509_v52 = vcombine.high %v65_v46, %v69_v47  ;;  %v1511_v53 = vcombine.high %v66_v48, %v70_v49 }
  0x53   :  { %992 = vmatmul.mubr.bf16.gmra.mrb[24].mxu0 %v1504_v58  ;;  %v1508_v58 = vcombine.low %v65_v46, %v69_v47 }
  0x54   :  { %1089 = vmatmul.mubr.bf16.gmra.mrb[24].mxu1 %v1506_v59  ;;  %999 = vmatprep.mubr.bf16.mxu0 %v1513_v60  ;;  %v1510_v59 = vcombine.low %v66_v48, %v70_v49  ;;  %v1517_v60 = vcombine.high %v73_v54, %v77_v55 }
  0x55   :  { %1096 = vmatprep.mubr.bf16.mxu1 %v1515_v61  ;;  %v1519_v61 = vcombine.high %v74_v56, %v78_v57 }
  0x5b   :  { %1000 = vmatmul.mubr.bf16.gmra.mrb[28].mxu0 %v1512_v2 }
  0x5c   :  { %1097 = vmatmul.mubr.bf16.gmra.mrb[28].mxu1 %v1514_v3  ;;  %1137 = vmatprep.mubr.bf16.mxu0 %v1461_v4 }
  0x5d   :  { %1234 = vmatprep.mubr.bf16.mxu1 %v1463_v5 }
  0x63   :  { %1138 = vmatmul.mubr.bf16.vlgmr.msra.gmra.mrb[32].mxu0 %v1460_v10 }
  0x64   :  { %1235 = vmatmul.mubr.bf16.vlgmr.msra.gmra.mrb[32].mxu1 %v1462_v11  ;;  %1145 = vmatprep.mubr.bf16.mxu0 %v1469_v12 }
  0x65   :  { %1242 = vmatprep.mubr.bf16.mxu1 %v1471_v13 }
  0x6b   :  { %1146 = vmatmul.mubr.bf16.gmra.mrb[36].mxu0 %v1468_v18 }
  0x6c   :  { %1243 = vmatmul.mubr.bf16.gmra.mrb[36].mxu1 %v1470_v19  ;;  %1153 = vmatprep.mubr.bf16.mxu0 %v1477_v20 }
  0x6d   :  { %1250 = vmatprep.mubr.bf16.mxu1 %v1479_v21 }
  0x73   :  { %1154 = vmatmul.mubr.bf16.gmra.mrb[40].mxu0 %v1476_v26 }
  0x74   :  { %1251 = vmatmul.mubr.bf16.gmra.mrb[40].mxu1 %v1478_v27  ;;  %1161 = vmatprep.mubr.bf16.mxu0 %v1485_v28 }
  0x75   :  { %1258 = vmatprep.mubr.bf16.mxu1 %v1487_v29 }
  0x7b   :  { %1162 = vmatmul.mubr.bf16.gmra.mrb[44].mxu0 %v1484_v34 }
  0x7c   :  { %1259 = vmatmul.mubr.bf16.gmra.mrb[44].mxu1 %v1486_v35  ;;  %1169 = vmatprep.mubr.bf16.mxu0 %v1493_v36 }
  0x7d   :  { %1266 = vmatprep.mubr.bf16.mxu1 %v1495_v37 }
  0x83   :  { %1170 = vmatmul.mubr.bf16.gmra.mrb[48].mxu0 %v1492_v42 }
  0x84   :  { %1267 = vmatmul.mubr.bf16.gmra.mrb[48].mxu1 %v1494_v43  ;;  %1177 = vmatprep.mubr.bf16.mxu0 %v1501_v44 }
  0x85   :  { %1274 = vmatprep.mubr.bf16.mxu1 %v1503_v45 }
  0x8b   :  { %1178 = vmatmul.mubr.bf16.gmra.mrb[52].mxu0 %v1500_v50 }
  0x8c   :  { %1275 = vmatmul.mubr.bf16.gmra.mrb[52].mxu1 %v1502_v51  ;;  %1185 = vmatprep.mubr.bf16.mxu0 %v1509_v52 }
  0x8d   :  { %1282 = vmatprep.mubr.bf16.mxu1 %v1511_v53 }
  0x93   :  { %1186 = vmatmul.mubr.bf16.gmra.mrb[56].mxu0 %v1508_v58 }
  0x94   :  { %1283 = vmatmul.mubr.bf16.gmra.mrb[56].mxu1 %v1510_v59  ;;  %1193 = vmatprep.mubr.bf16.mxu0 %v1517_v60 }
  0x95   :  { %1290 = vmatprep.mubr.bf16.mxu1 %v1519_v61 }
  0x9b   :  { %1194 = vmatmul.mubr.bf16.gmra.mrb[60].mxu0 %v1516_v62 }
  0x9c   :  { %1291 = vmatmul.mubr.bf16.gmra.mrb[60].mxu1 %v1518_v63 }
  0xf6   :  { %v1679_v0 = vpop.f32.mrb[0].mxu0 }
  0xf7   :  { %v1743_v1 = vpop.f32.mrb[0].mxu1  ;;  %v1680_v2 = vpop.f32.mrb[1].mxu0 }
  0xf8   :  { %v1681_v3 = vadd.f32 %v1680_v2, %v1679_v0  ;;  %v1744_v4 = vpop.f32.mrb[1].mxu1  ;;  %v1682_v5 = vpop.f32.mrb[2].mxu0 }
  0xf9   :  { %v1745_v6 = vadd.f32 %v1744_v4, %v1743_v1  ;;  %v1746_v7 = vpop.f32.mrb[2].mxu1  ;;  %v1683_v8 = vpop.f32.mrb[3].mxu0 }
  0xfa   :  { %v1684_v9 = vadd.f32 %v1683_v8, %v1682_v5  ;;  %v1747_v10 = vpop.f32.mrb[3].mxu1 }
  0xfb   :  { %v2392_v11 = vadd.f32 %v1745_v6, %v1681_v3  ;;  %v1748_v12 = vadd.f32 %v1747_v10, %v1746_v7 }
  0xfd   :  { %v2394_v13 = vadd.f32 %v1748_v12, %v1684_v9 }
  0xfe   :  { %v1685_v14 = vpop.f32.mrb[4].mxu0 }
  0xff   :  { %v1749_v15 = vpop.f32.mrb[4].mxu1  ;;  %v1686_v16 = vpop.f32.mrb[5].mxu0 }
 0x100   :  { %v1687_v17 = vadd.f32 %v1686_v16, %v1685_v14  ;;  %v1750_v18 = vpop.f32.mrb[5].mxu1  ;;  %v1688_v19 = vpop.f32.mrb[6].mxu0 }
 0x101   :  { %v1751_v20 = vadd.f32 %v1750_v18, %v1749_v15  ;;  %v1752_v21 = vpop.f32.mrb[6].mxu1  ;;  %v1689_v22 = vpop.f32.mrb[7].mxu0 }
 0x102   :  { %v1690_v23 = vadd.f32 %v1689_v22, %v1688_v19  ;;  %v1753_v24 = vpop.f32.mrb[7].mxu1 }
 0x103   :  { %v2396_v25 = vadd.f32 %v1751_v20, %v1687_v17  ;;  %v1754_v26 = vadd.f32 %v1753_v24, %v1752_v21 }
 0x105   :  { %v2398_v27 = vadd.f32 %v1754_v26, %v1690_v23 }
 0x106   :  { %v1691_v28 = vpop.f32.mrb[8].mxu0 }
 0x107   :  { %v1755_v29 = vpop.f32.mrb[8].mxu1  ;;  %v1692_v30 = vpop.f32.mrb[9].mxu0 }
 0x108   :  { %v1693_v31 = vadd.f32 %v1692_v30, %v1691_v28  ;;  %v1756_v32 = vpop.f32.mrb[9].mxu1  ;;  %v1694_v33 = vpop.f32.mrb[10].mxu0 }
 0x109   :  { %v1757_v34 = vadd.f32 %v1756_v32, %v1755_v29  ;;  %v1758_v35 = vpop.f32.mrb[10].mxu1  ;;  %v1695_v36 = vpop.f32.mrb[11].mxu0 }
 0x10a   :  { %v1696_v37 = vadd.f32 %v1695_v36, %v1694_v33  ;;  %v1759_v38 = vpop.f32.mrb[11].mxu1 }
 0x10b   :  { %v2400_v39 = vadd.f32 %v1757_v34, %v1693_v31  ;;  %v1760_v40 = vadd.f32 %v1759_v38, %v1758_v35 }
 0x10d   :  { %v2402_v41 = vadd.f32 %v1760_v40, %v1696_v37 }
 0x10e   :  { %v1697_v42 = vpop.f32.mrb[12].mxu0 }
 0x10f   :  { %v1761_v43 = vpop.f32.mrb[12].mxu1  ;;  %v1698_v44 = vpop.f32.mrb[13].mxu0 }
 0x110   :  { %v1699_v45 = vadd.f32 %v1698_v44, %v1697_v42  ;;  %v1762_v46 = vpop.f32.mrb[13].mxu1  ;;  %v1700_v47 = vpop.f32.mrb[14].mxu0 }
 0x111   :  { %v1763_v48 = vadd.f32 %v1762_v46, %v1761_v43  ;;  %v1764_v49 = vpop.f32.mrb[14].mxu1  ;;  %v1701_v50 = vpop.f32.mrb[15].mxu0 }
 0x112   :  { %v1702_v51 = vadd.f32 %v1701_v50, %v1700_v47  ;;  %v1765_v52 = vpop.f32.mrb[15].mxu1 }
 0x113   :  { %v2404_v53 = vadd.f32 %v1763_v48, %v1699_v45  ;;  %v1766_v54 = vadd.f32 %v1765_v52, %v1764_v49 }
 0x115   :  { %v2406_v55 = vadd.f32 %v1766_v54, %v1702_v51 }
 0x116   :  { %v1703_v56 = vpop.f32.mrb[16].mxu0 }
 0x117   :  { %v1767_v57 = vpop.f32.mrb[16].mxu1  ;;  %v1704_v58 = vpop.f32.mrb[17].mxu0 }
 0x118   :  { %v1705_v59 = vadd.f32 %v1704_v58, %v1703_v56  ;;  %v1768_v60 = vpop.f32.mrb[17].mxu1  ;;  %v1706_v61 = vpop.f32.mrb[18].mxu0 }
 0x119   :  { %v1769_v62 = vadd.f32 %v1768_v60, %v1767_v57  ;;  %v1770_v63 = vpop.f32.mrb[18].mxu1  ;;  %v1707_v0 = vpop.f32.mrb[19].mxu0 }
 0x11a   :  { %v1708_v1 = vadd.f32 %v1707_v0, %v1706_v61  ;;  %v1771_v2 = vpop.f32.mrb[19].mxu1 }
 0x11b   :  { %v2408_v3 = vadd.f32 %v1769_v62, %v1705_v59  ;;  %v1772_v4 = vadd.f32 %v1771_v2, %v1770_v63 }
 0x11d   :  { %v2410_v5 = vadd.f32 %v1772_v4, %v1708_v1 }
 0x11e   :  { %v1709_v6 = vpop.f32.mrb[20].mxu0 }
 0x11f   :  { %v1773_v7 = vpop.f32.mrb[20].mxu1  ;;  %v1710_v8 = vpop.f32.mrb[21].mxu0 }
 0x120   :  { %v1711_v9 = vadd.f32 %v1710_v8, %v1709_v6  ;;  %v1774_v10 = vpop.f32.mrb[21].mxu1  ;;  %v1712_v12 = vpop.f32.mrb[22].mxu0 }
 0x121   :  { %v1775_v14 = vadd.f32 %v1774_v10, %v1773_v7  ;;  %v1776_v15 = vpop.f32.mrb[22].mxu1  ;;  %v1713_v16 = vpop.f32.mrb[23].mxu0 }
 0x122   :  { %v1714_v17 = vadd.f32 %v1713_v16, %v1712_v12  ;;  %v1777_v18 = vpop.f32.mrb[23].mxu1 }
 0x123   :  { %v2412_v19 = vadd.f32 %v1775_v14, %v1711_v9  ;;  %v1778_v20 = vadd.f32 %v1777_v18, %v1776_v15 }
 0x125   :  { %v2414_v21 = vadd.f32 %v1778_v20, %v1714_v17 }
 0x126   :  { %v1715_v22 = vpop.f32.mrb[24].mxu0 }
 0x127   :  { %v1779_v23 = vpop.f32.mrb[24].mxu1  ;;  %v1716_v24 = vpop.f32.mrb[25].mxu0 }
 0x128   :  { %v1717_v26 = vadd.f32 %v1716_v24, %v1715_v22  ;;  %v1780_v28 = vpop.f32.mrb[25].mxu1  ;;  %v1718_v29 = vpop.f32.mrb[26].mxu0 }
 0x129   :  { %v1781_v30 = vadd.f32 %v1780_v28, %v1779_v23  ;;  %v1782_v31 = vpop.f32.mrb[26].mxu1  ;;  %v1719_v32 = vpop.f32.mrb[27].mxu0 }
 0x12a   :  { %v1720_v33 = vadd.f32 %v1719_v32, %v1718_v29  ;;  %v1783_v34 = vpop.f32.mrb[27].mxu1 }
 0x12b   :  { %v2416_v35 = vadd.f32 %v1781_v30, %v1717_v26  ;;  %v1784_v36 = vadd.f32 %v1783_v34, %v1782_v31 }
 0x12d   :  { %v2418_v37 = vadd.f32 %v1784_v36, %v1720_v33 }
 0x12e   :  { %v1721_v38 = vpop.f32.mrb[28].mxu0 }
 0x12f   :  { %v1785_v40 = vpop.f32.mrb[28].mxu1  ;;  %v1722_v42 = vpop.f32.mrb[29].mxu0 }
 0x130   :  { %v1723_v43 = vadd.f32 %v1722_v42, %v1721_v38  ;;  %v1786_v44 = vpop.f32.mrb[29].mxu1  ;;  %v1724_v45 = vpop.f32.mrb[30].mxu0 }
 0x131   :  { %v1787_v46 = vadd.f32 %v1786_v44, %v1785_v40  ;;  %v1788_v47 = vpop.f32.mrb[30].mxu1  ;;  %v1725_v48 = vpop.f32.mrb[31].mxu0 }
 0x132   :  { %v1726_v49 = vadd.f32 %v1725_v48, %v1724_v45  ;;  %v1789_v50 = vpop.f32.mrb[31].mxu1 }
 0x133   :  { %v2420_v51 = vadd.f32 %v1787_v46, %v1723_v43  ;;  %v1790_v52 = vadd.f32 %v1789_v50, %v1788_v47 }
 0x135   :  { %v2422_v54 = vadd.f32 %v1790_v52, %v1726_v49 }
 0x136   :  { %v1807_v56 = vpop.f32.mrb[32].mxu0 }
 0x137   :  { %v1871_v57 = vpop.f32.mrb[32].mxu1  ;;  %v1808_v58 = vpop.f32.mrb[33].mxu0 }
 0x138   :  { %v1809_v59 = vadd.f32 %v1808_v58, %v1807_v56  ;;  %v1872_v60 = vpop.f32.mrb[33].mxu1  ;;  %v1810_v61 = vpop.f32.mrb[34].mxu0 }
 0x139   :  { %v1873_v62 = vadd.f32 %v1872_v60, %v1871_v57  ;;  %v1874_v63 = vpop.f32.mrb[34].mxu1  ;;  %v1811_v0 = vpop.f32.mrb[35].mxu0 }
 0x13a   :  { %v1140_v1 = vadd.f32 %v1809_v59, %v2392_v11  ;;  %v1812_v2 = vadd.f32 %v1811_v0, %v1810_v61  ;;  %v1875_v4 = vpop.f32.mrb[35].mxu1 }
 0x13b   :  { %v1876_v6 = vadd.f32 %v1875_v4, %v1874_v63 }
 0x13c   :  { %v1237_v7 = vadd.f32 %v1873_v62, %v1140_v1  ;;  %v1143_v8 = vadd.f32 %v1812_v2, %v2394_v13 }
 0x13e   :  { %v1240_v9 = vadd.f32 %v1876_v6, %v1143_v8  ;;  %v1813_v10 = vpop.f32.mrb[36].mxu0  ;;  %v1402_v12 = vmul.f32 %v1237_v7, %v1237_v7 }
 0x13f   :  { %v1877_v14 = vpop.f32.mrb[36].mxu1  ;;  %v1814_v15 = vpop.f32.mrb[37].mxu0 }
 0x140   :  { %v1619_v16 = vpack.c.bf16 %v1240_v9, %v1237_v7  ;;  %v1381_v17 = vadd.f32 %v1240_v9, %v1237_v7  ;;  %v1403_v18 = vmul.f32 %v1240_v9, %v1240_v9  ;;  %v1815_v20 = vadd.f32 %v1814_v15, %v1813_v10  ;;  %v1878_v22 = vpop.f32.mrb[37].mxu1  ;;  %v1816_v23 = vpop.f32.mrb[38].mxu0 }
 0x141   :  { %v1879_v24 = vadd.f32 %v1878_v22, %v1877_v14  ;;  %v1880_v26 = vpop.f32.mrb[38].mxu1  ;;  %v1817_v11 = vpop.f32.mrb[39].mxu0 }
 0x142   :  { %1620 = vst [vmem:[%s2472_s2] sm:$0xff] %v1619_v16   ;;  %v1418_v28 = vadd.f32 %v1403_v18, %v1402_v12  ;;  %v1148_v13 = vadd.f32 %v1815_v20, %v2396_v25  ;;  %v1818_v29 = vadd.f32 %v1817_v11, %v1816_v23  ;;  %v1881_v30 = vpop.f32.mrb[39].mxu1 }
 0x143   :  { %v1882_v31 = vadd.f32 %v1881_v30, %v1880_v26 }
 0x144   :  { %v1245_v32 = vadd.f32 %v1879_v24, %v1148_v13  ;;  %v1151_v33 = vadd.f32 %v1818_v29, %v2398_v27 }
 0x146   :  { %v1382_v34 = vadd.f32 %v1381_v17, %v1245_v32  ;;  %v1404_v36 = vmul.f32 %v1245_v32, %v1245_v32  ;;  %v1248_v38 = vadd.f32 %v1882_v31, %v1151_v33  ;;  %v1819_v40 = vpop.f32.mrb[40].mxu0 }
 0x147   :  { %v1883_v42 = vpop.f32.mrb[40].mxu1  ;;  %v1820_v43 = vpop.f32.mrb[41].mxu0 }
 0x148   :  { %v1419_v44 = vadd.f32 %v1418_v28, %v1404_v36  ;;  %v1624_v45 = vpack.c.bf16 %v1248_v38, %v1245_v32  ;;  %v1383_v46 = vadd.f32 %v1382_v34, %v1248_v38  ;;  %v1405_v47 = vmul.f32 %v1248_v38, %v1248_v38  ;;  %v1884_v48 = vpop.f32.mrb[41].mxu1  ;;  %v1822_v49 = vpop.f32.mrb[42].mxu0 }
 0x149   :  { %v1821_v50 = vadd.f32 %v1820_v43, %v1819_v40  ;;  %v1885_v25 = vadd.f32 %v1884_v48, %v1883_v42  ;;  %v1886_v52 = vpop.f32.mrb[42].mxu1  ;;  %v1823_v56 = vpop.f32.mrb[43].mxu0 }
 0x14a   :  { %1656 = vst [vmem:[%s2472_s2 + $0x8] sm:$0xff] %v1624_v45   ;;  %v1420_v27 = vadd.f32 %v1419_v44, %v1405_v47  ;;  %v1824_v57 = vadd.f32 %v1823_v56, %v1822_v49  ;;  %v1887_v58 = vpop.f32.mrb[43].mxu1 }
 0x14b   :  { %v1156_v59 = vadd.f32 %v1821_v50, %v2400_v39  ;;  %v1888_v60 = vadd.f32 %v1887_v58, %v1886_v52 }
 0x14c   :  { %v1159_v61 = vadd.f32 %v1824_v57, %v2402_v41 }
 0x14d   :  { %v1253_v62 = vadd.f32 %v1885_v25, %v1156_v59 }
 0x14e   :  { %v1256_v63 = vadd.f32 %v1888_v60, %v1159_v61  ;;  %v1825_v0 = vpop.f32.mrb[44].mxu0 }
 0x14f   :  { %v1384_v1 = vadd.f32 %v1383_v46, %v1253_v62  ;;  %v1406_v2 = vmul.f32 %v1253_v62, %v1253_v62  ;;  %v1889_v4 = vpop.f32.mrb[44].mxu1  ;;  %v1826_v6 = vpop.f32.mrb[45].mxu0 }
 0x150   :  { %v1629_v7 = vpack.c.bf16 %v1256_v63, %v1253_v62  ;;  %v1407_v8 = vmul.f32 %v1256_v63, %v1256_v63  ;;  %v1827_v9 = vadd.f32 %v1826_v6, %v1825_v0  ;;  %v1890_v10 = vpop.f32.mrb[45].mxu1  ;;  %v1828_v12 = vpop.f32.mrb[46].mxu0 }
 0x151   :  { %v1421_v14 = vadd.f32 %v1420_v27, %v1406_v2  ;;  %v1385_v15 = vadd.f32 %v1384_v1, %v1256_v63  ;;  %v1891_v16 = vadd.f32 %v1890_v10, %v1889_v4  ;;  %v1892_v17 = vpop.f32.mrb[46].mxu1  ;;  %v1829_v39 = vpop.f32.mrb[47].mxu0 }
 0x152   :  { %1657 = vst [vmem:[%s2472_s2 + $0x10] sm:$0xff] %v1629_v7   ;;  %v1164_v41 = vadd.f32 %v1827_v9, %v2404_v53  ;;  %v1830_v18 = vadd.f32 %v1829_v39, %v1828_v12  ;;  %v1893_v20 = vpop.f32.mrb[47].mxu1 }
 0x153   :  { %v1422_v22 = vadd.f32 %v1421_v14, %v1407_v8  ;;  %v1894_v23 = vadd.f32 %v1893_v20, %v1892_v17 }
 0x154   :  { %v1261_v24 = vadd.f32 %v1891_v16, %v1164_v41  ;;  %v1167_v26 = vadd.f32 %v1830_v18, %v2406_v55 }
 0x156   :  { %v1386_v11 = vadd.f32 %v1385_v15, %v1261_v24  ;;  %v1408_v28 = vmul.f32 %v1261_v24, %v1261_v24  ;;  %v1264_v13 = vadd.f32 %v1894_v23, %v1167_v26  ;;  %v1831_v29 = vpop.f32.mrb[48].mxu0 }
 0x157   :  { %v1895_v30 = vpop.f32.mrb[48].mxu1  ;;  %v1832_v31 = vpop.f32.mrb[49].mxu0 }
 0x158   :  { %v1423_v32 = vadd.f32 %v1422_v22, %v1408_v28  ;;  %v1634_v33 = vpack.c.bf16 %v1264_v13, %v1261_v24  ;;  %v1387_v34 = vadd.f32 %v1386_v11, %v1264_v13  ;;  %v1409_v36 = vmul.f32 %v1264_v13, %v1264_v13  ;;  %v1896_v38 = vpop.f32.mrb[49].mxu1  ;;  %v1834_v40 = vpop.f32.mrb[50].mxu0 }
 0x159   :  { %v1833_v53 = vadd.f32 %v1832_v31, %v1831_v29  ;;  %v1897_v42 = vadd.f32 %v1896_v38, %v1895_v30  ;;  %v1898_v43 = vpop.f32.mrb[50].mxu1  ;;  %v1835_v44 = vpop.f32.mrb[51].mxu0 }
 0x15a   :  { %1658 = vst [vmem:[%s2472_s2 + $0x18] sm:$0xff] %v1634_v33   ;;  %v1424_v55 = vadd.f32 %v1423_v32, %v1409_v36  ;;  %v1836_v45 = vadd.f32 %v1835_v44, %v1834_v40  ;;  %v1899_v46 = vpop.f32.mrb[51].mxu1 }
 0x15b   :  { %v1172_v47 = vadd.f32 %v1833_v53, %v2408_v3  ;;  %v1900_v48 = vadd.f32 %v1899_v46, %v1898_v43 }
 0x15c   :  { %v1175_v49 = vadd.f32 %v1836_v45, %v2410_v5 }
 0x15d   :  { %v1269_v50 = vadd.f32 %v1897_v42, %v1172_v47 }
 0x15e   :  { %v1272_v25 = vadd.f32 %v1900_v48, %v1175_v49  ;;  %v1837_v52 = vpop.f32.mrb[52].mxu0 }
 0x15f   :  { %v1388_v56 = vadd.f32 %v1387_v34, %v1269_v50  ;;  %v1410_v27 = vmul.f32 %v1269_v50, %v1269_v50  ;;  %v1901_v57 = vpop.f32.mrb[52].mxu1  ;;  %v1838_v58 = vpop.f32.mrb[53].mxu0 }
 0x160   :  { %v1639_v59 = vpack.c.bf16 %v1272_v25, %v1269_v50  ;;  %v1411_v60 = vmul.f32 %v1272_v25, %v1272_v25  ;;  %v1839_v61 = vadd.f32 %v1838_v58, %v1837_v52  ;;  %v1902_v62 = vpop.f32.mrb[53].mxu1  ;;  %v1840_v63 = vpop.f32.mrb[54].mxu0 }
 0x161   :  { %v1425_v0 = vadd.f32 %v1424_v55, %v1410_v27  ;;  %v1389_v1 = vadd.f32 %v1388_v56, %v1272_v25  ;;  %v1903_v2 = vadd.f32 %v1902_v62, %v1901_v57  ;;  %v1904_v4 = vpop.f32.mrb[54].mxu1  ;;  %v1841_v3 = vpop.f32.mrb[55].mxu0 }
 0x162   :  { %1659 = vst [vmem:[%s2472_s2 + $0x20] sm:$0xff] %v1639_v59   ;;  %v1180_v5 = vadd.f32 %v1839_v61, %v2412_v19  ;;  %v1842_v6 = vadd.f32 %v1841_v3, %v1840_v63  ;;  %v1905_v7 = vpop.f32.mrb[55].mxu1  ;;  %v1379_v3 = vlaneseq }
 0x163   :  { %v1426_v8 = vadd.f32 %v1425_v0, %v1411_v60  ;;  %v1906_v9 = vadd.f32 %v1905_v7, %v1904_v4 }
 0x164   :  { %v1277_v10 = vadd.f32 %v1903_v2, %v1180_v5  ;;  %v1183_v12 = vadd.f32 %v1842_v6, %v2414_v21 }
 0x166   :  { %v1390_v14 = vadd.f32 %v1389_v1, %v1277_v10  ;;  %v1412_v15 = vmul.f32 %v1277_v10, %v1277_v10  ;;  %v1280_v16 = vadd.f32 %v1906_v9, %v1183_v12  ;;  %v1843_v17 = vpop.f32.mrb[56].mxu0  ;;  %v1380_v9 = vshrl.u32 %v1379_v3, 7 }
 0x167   :  { %v1907_v39 = vpop.f32.mrb[56].mxu1  ;;  %v1844_v41 = vpop.f32.mrb[57].mxu0 }
 0x168   :  { %v1427_v18 = vadd.f32 %v1426_v8, %v1412_v15  ;;  %v1644_v20 = vpack.c.bf16 %v1280_v16, %v1277_v10  ;;  %v1391_v22 = vadd.f32 %v1390_v14, %v1280_v16  ;;  %v1413_v23 = vmul.f32 %v1280_v16, %v1280_v16  ;;  %v1908_v24 = vpop.f32.mrb[57].mxu1  ;;  %v1846_v26 = vpop.f32.mrb[58].mxu0 }
 0x169   :  { %v1845_v19 = vadd.f32 %v1844_v41, %v1843_v17  ;;  %v1909_v11 = vadd.f32 %v1908_v24, %v1907_v39  ;;  %v1910_v28 = vpop.f32.mrb[58].mxu1  ;;  %v1847_v13 = vpop.f32.mrb[59].mxu0  ;;  %vm1439_vm0 = vcmp.eq.s32.totalorder %v1380_v9, 0 }
 0x16a   :  { %1660 = vst [vmem:[%s2472_s2 + $0x28] sm:$0xff] %v1644_v20   ;;  %v1428_v21 = vadd.f32 %v1427_v18, %v1413_v23  ;;  %v1848_v29 = vadd.f32 %v1847_v13, %v1846_v26  ;;  %v1911_v30 = vpop.f32.mrb[59].mxu1 }
 0x16b   :  { %v1188_v31 = vadd.f32 %v1845_v19, %v2416_v35  ;;  %v1912_v32 = vadd.f32 %v1911_v30, %v1910_v28 }
 0x16c   :  { %v1191_v33 = vadd.f32 %v1848_v29, %v2418_v37 }
 0x16d   :  { %v1285_v34 = vadd.f32 %v1909_v11, %v1188_v31 }
 0x16e   :  { %v1288_v36 = vadd.f32 %v1912_v32, %v1191_v33  ;;  %v1849_v38 = vpop.f32.mrb[60].mxu0 }
 0x16f   :  { %v1392_v40 = vadd.f32 %v1391_v22, %v1285_v34  ;;  %v1414_v53 = vmul.f32 %v1285_v34, %v1285_v34  ;;  %v1913_v42 = vpop.f32.mrb[60].mxu1  ;;  %v1850_v43 = vpop.f32.mrb[61].mxu0 }
 0x170   :  { %v1649_v44 = vpack.c.bf16 %v1288_v36, %v1285_v34  ;;  %v1415_v55 = vmul.f32 %v1288_v36, %v1288_v36  ;;  %v1851_v45 = vadd.f32 %v1850_v43, %v1849_v38  ;;  %v1914_v46 = vpop.f32.mrb[61].mxu1  ;;  %v1852_v47 = vpop.f32.mrb[62].mxu0 }
 0x171   :  { %v1429_v48 = vadd.f32 %v1428_v21, %v1414_v53  ;;  %v1393_v49 = vadd.f32 %v1392_v40, %v1288_v36  ;;  %v1915_v50 = vadd.f32 %v1914_v46, %v1913_v42  ;;  %v1916_v25 = vpop.f32.mrb[62].mxu1  ;;  %v1853_v35 = vpop.f32.mrb[63].mxu0 }
 0x172   :  { %1661 = vst [vmem:[%s2472_s2 + $0x30] sm:$0xff] %v1649_v44   ;;  %v1196_v37 = vadd.f32 %v1851_v45, %v2420_v51  ;;  %v1854_v52 = vadd.f32 %v1853_v35, %v1852_v47  ;;  %v1917_v56 = vpop.f32.mrb[63].mxu1 }
 0x173   :  { %v1430_v27 = vadd.f32 %v1429_v48, %v1415_v55  ;;  %v1918_v57 = vadd.f32 %v1917_v56, %v1916_v25 }
 0x174   :  { %v1293_v58 = vadd.f32 %v1915_v50, %v1196_v37  ;;  %v1199_v59 = vadd.f32 %v1854_v52, %v2422_v54 }
 0x176   :  { %v1394_v60 = vadd.f32 %v1393_v49, %v1293_v58  ;;  %v1416_v61 = vmul.f32 %v1293_v58, %v1293_v58  ;;  %v1296_v62 = vadd.f32 %v1918_v57, %v1199_v59 }
 0x178   :  { %v1431_v63 = vadd.f32 %v1430_v27, %v1416_v61  ;;  %v1654_v0 = vpack.c.bf16 %v1296_v62, %v1293_v58  ;;  %v1395_v1 = vadd.f32 %v1394_v60, %v1296_v62  ;;  %v1417_v2 = vmul.f32 %v1296_v62, %v1296_v62 }
 0x17a   :  { %1662 = vst [vmem:[%s2472_s2 + $0x38] sm:$0xff] %v1654_v0   ;;  %v1396_v4 = vrot.slane %v1395_v1, 4  ;;  %v1432_v51 = vadd.f32 %v1431_v63, %v1417_v2 }
 0x17c   :  { %v1397_v5 = vadd.f32 %v1396_v4, %v1395_v1  ;;  %v1433_v6 = vrot.slane %v1432_v51, 4 }
 0x17e   :  { %v1398_v7 = vrot.slane %v1397_v5, 2  ;;  %v1434_v8 = vadd.f32 %v1433_v6, %v1432_v51 }
 0x180   :  { %v1399_v54 = vadd.f32 %v1398_v7, %v1397_v5  ;;  %v1435_v10 = vrot.slane %v1434_v8, 2 }
 0x182   :  { %v1400_v12 = vrot.slane %v1399_v54, 1  ;;  %v1436_v14 = vadd.f32 %v1435_v10, %v1434_v8 }
 0x184   :  { %v1401_v15 = vadd.f32 %v1400_v12, %v1399_v54  ;;  %v1437_v16 = vrot.slane %v1436_v14, 1 }
 0x186   :  { %v1438_v17 = vadd.f32 %v1437_v16, %v1436_v14  ;;  %v1440_v39 = vsel %vm1439_vm0, %v1401_v15, 0.0 }
 0x187   :  { %1441 = vst [vmem:[%s2473_s3] sm:$0xff] %v1440_v39 }
 0x188   :  { %v1442_v41 = vsel %vm1439_vm0, %v1438_v17, 0.0 }
 0x189   :  { %1443 = vst [vmem:[%s2474_s4] sm:$0xff] %v1442_v41 }

// kernel: discriminator_forward.7
= control target key start
LH: loop header
LB: loop body
LE: loop exit
PB: predicated region body
PF: predicated region fallthrough
CT: control target
= control target key end

     0   :  { %v43_v0 = vlaneseq  ;;  %v774_v8 = vmov 1983009808   ;;  %vm691_vm0 = vcmask 1041408   ;;  %vm763_vm1 = vcmask 1024   ;;  %s959_s1 = inlined_call_operand.vmem [shape: bf16[1,4096], index: 1, kind: input, shape index: {}]   ;;  %s960_s0 = inlined_call_operand.vmem [shape: bf16[2,4096], index: 0, kind: input, shape index: {}]   ;;  %s961_s2 = inlined_call_operand.vmem [shape: f32[2,1], index: 2, kind: output, shape index: {}]  }
   0x1   :  { %v23_v1 = vld [vmem:[%s959_s1] sm:$0xff]  ;;  %v366_v9 = vunpack.c.l.s4 %v774_v8  ;;  %v24_v16 = vld [vmem:[%s959_s1 + $0x8] sm:$0xff]  ;;  %v25_v52 = vld [vmem:[%s959_s1 + $0x10] sm:$0xff] }
   0x2   :  { %v44_v2 = vshrl.u32 %v43_v0, 7  ;;  %v27_v3 = vunpack.c.l.bf16 %v23_v1  ;;  %v28_v10 = vunpack.c.h.bf16 %v23_v1  ;;  %v29_v25 = vunpack.c.l.bf16 %v24_v16  ;;  %v11_v33 = vld [vmem:[%s960_s0] sm:$0xff]  ;;  %v12_v8 = vld [vmem:[%s960_s0 + $0x8] sm:$0xff] }
   0x3   :  { %v367_v15 = vunpack.c.0.s8 %v366_v9  ;;  %v15_v42 = vunpack.c.l.bf16 %v11_v33  ;;  %v30_v44 = vunpack.c.h.bf16 %v24_v16  ;;  %v16_v51 = vunpack.c.h.bf16 %v11_v33 }
   0x4   :  { %v793_v4 = vsub.s32 0, %v44_v2  ;;  %v795_v5 = vsub.s32 2, %v44_v2  ;;  %v797_v6 = vsub.s32 4, %v44_v2  ;;  %v799_v7 = vsub.s32 6, %v44_v2 }
   0x5   :  { %v816_v26 = vsub.s32 %v367_v15, %v44_v2  ;;  %v31_v62 = vunpack.c.l.bf16 %v25_v52 }
   0x6   :  { %v46_v11 = vrot.slane %v27_v3, %v793_v4  ;;  %v50_v12 = vrot.slane %v27_v3, %v795_v5  ;;  %v54_v13 = vrot.slane %v27_v3, %v797_v6  ;;  %v58_v14 = vrot.slane %v27_v3, %v799_v7 }
   0x7   :  { %v62_v17 = vrot.slane %v28_v10, %v793_v4  ;;  %v66_v18 = vrot.slane %v28_v10, %v795_v5  ;;  %v70_v19 = vrot.slane %v28_v10, %v797_v6  ;;  %v74_v20 = vrot.slane %v28_v10, %v799_v7 }
   0x8   :  { %v206_v21 = vrot.slane %v46_v11, %v793_v4  ;;  %v210_v22 = vrot.slane %v50_v12, %v793_v4  ;;  %v214_v23 = vrot.slane %v54_v13, %v793_v4  ;;  %v218_v24 = vrot.slane %v58_v14, %v793_v4 }
   0x9   :  { %v222_v27 = vrot.slane %v62_v17, %v793_v4  ;;  %v226_v28 = vrot.slane %v66_v18, %v793_v4  ;;  %v230_v29 = vrot.slane %v70_v19, %v793_v4  ;;  %v234_v30 = vrot.slane %v74_v20, %v793_v4 }
   0xa   :  { %v363_v31 = vcombine.low %v206_v21, %v210_v22  ;;  %v364_v32 = vcombine.low %v214_v23, %v218_v24  ;;  %v78_v34 = vrot.slane %v29_v25, %v793_v4  ;;  %v82_v35 = vrot.slane %v29_v25, %v795_v5 }
   0xb   :  { %v86_v38 = vrot.slane %v29_v25, %v797_v6  ;;  %v90_v39 = vrot.slane %v29_v25, %v799_v7  ;;  %v380_v40 = vcombine.low %v222_v27, %v226_v28  ;;  %v381_v41 = vcombine.low %v230_v29, %v234_v30 }
   0xc   :  { %v371_v36 = vrot.slane %v363_v31, %v816_v26  ;;  %v378_v37 = vrot.slane %v364_v32, %v816_v26  ;;  %v238_v45 = vrot.slane %v78_v34, %v793_v4  ;;  %v242_v46 = vrot.slane %v82_v35, %v793_v4 }
   0xd   :  { %v246_v47 = vrot.slane %v86_v38, %v793_v4  ;;  %v250_v48 = vrot.slane %v90_v39, %v793_v4  ;;  %v388_v49 = vrot.slane %v380_v40, %v816_v26  ;;  %v395_v50 = vrot.slane %v381_v41, %v816_v26 }
   0xe   :  { %v379_v43 = vcombine.low %v371_v36, %v378_v37  ;;  %v94_v54 = vrot.slane %v30_v44, %v793_v4  ;;  %v98_v55 = vrot.slane %v30_v44, %v795_v5  ;;  %v102_v56 = vrot.slane %v30_v44, %v797_v6 }
   0xf   :  { %v106_v57 = vrot.slane %v30_v44, %v799_v7  ;;  %v396_v58 = vcombine.low %v388_v49, %v395_v50  ;;  %v397_v59 = vcombine.low %v238_v45, %v242_v46  ;;  %v398_v60 = vcombine.low %v246_v47, %v250_v48  ;;  %v26_v44 = vld [vmem:[%s959_s1 + $0x18] sm:$0xff] }
  0x10   :  { %v507_v53 = vmul.f32 %v379_v43, %v15_v42  ;;  %v254_v0 = vrot.slane %v94_v54, %v793_v4  ;;  %v258_v1 = vrot.slane %v98_v55, %v793_v4  ;;  %v262_v2 = vrot.slane %v102_v56, %v793_v4 }
  0x11   :  { %v266_v3 = vrot.slane %v106_v57, %v793_v4  ;;  %v405_v9 = vrot.slane %v397_v59, %v816_v26  ;;  %v412_v10 = vrot.slane %v398_v60, %v816_v26  ;;  %v508_v11 = vmul.f32 %v396_v58, %v16_v51  ;;  %v884_v59 = vld [vmem:[%s960_s0 + $0x10] sm:$0xff] }
  0x12   :  { %v523_v61 = vcombine.high %v507_v53, %v507_v53  ;;  %v530_v63 = vrot.slane %v507_v53, %v816_v26  ;;  %v110_v13 = vrot.slane %v31_v62, %v793_v4  ;;  %v114_v14 = vrot.slane %v31_v62, %v795_v5 }
  0x13   :  { %v118_v15 = vrot.slane %v31_v62, %v797_v6  ;;  %v17_v17 = vunpack.c.l.bf16 %v12_v8  ;;  %v122_v18 = vrot.slane %v31_v62, %v799_v7  ;;  %v414_v19 = vcombine.low %v254_v0, %v258_v1 }
  0x14   :  { %v537_v12 = vrot.slane %v523_v61, %v816_v26  ;;  %v538_v16 = vcombine.high %v530_v63, %v530_v63  ;;  %v415_v20 = vcombine.low %v262_v2, %v266_v3  ;;  %v413_v21 = vcombine.low %v405_v9, %v412_v10 }
  0x15   :  { %v540_v23 = vcombine.high %v508_v11, %v508_v11  ;;  %v547_v24 = vrot.slane %v508_v11, %v816_v26  ;;  %v32_v25 = vunpack.c.h.bf16 %v25_v52  ;;  %v270_v27 = vrot.slane %v110_v13, %v793_v4 }
  0x16   :  { %v539_v22 = vcombine.high %v537_v12, %v537_v12  ;;  %v692_v28 = vsel %vm691_vm0, %v530_v63, 0.0  ;;  %v274_v29 = vrot.slane %v114_v14, %v793_v4  ;;  %v278_v30 = vrot.slane %v118_v15, %v793_v4 }
  0x17   :  { %v693_v31 = vsel %vm691_vm0, %v538_v16, 0.0  ;;  %v695_v32 = vsel %vm691_vm0, %v537_v12, 0.0  ;;  %v282_v33 = vrot.slane %v122_v18, %v793_v4  ;;  %v422_v34 = vrot.slane %v414_v19, %v816_v26 }
  0x18   :  { %v429_v35 = vrot.slane %v415_v20, %v816_v26  ;;  %v694_v36 = vadd.f32 %v693_v31, %v692_v28  ;;  %v509_v37 = vmul.f32 %v413_v21, %v17_v17  ;;  %v554_v38 = vrot.slane %v540_v23, %v816_v26 }
  0x19   :  { %v555_v39 = vcombine.high %v547_v24, %v547_v24  ;;  %v697_v40 = vsel %vm691_vm0, %v539_v22, 0.0  ;;  %v18_v41 = vunpack.c.h.bf16 %v12_v8  ;;  %v126_v42 = vrot.slane %v32_v25, %v793_v4 }
  0x1a   :  { %v696_v43 = vadd.f32 %v695_v32, %v694_v36  ;;  %v130_v45 = vrot.slane %v32_v25, %v795_v5  ;;  %v134_v46 = vrot.slane %v32_v25, %v797_v6  ;;  %v138_v47 = vrot.slane %v32_v25, %v799_v7 }
  0x1b   :  { %v699_v48 = vsel %vm691_vm0, %v547_v24, 0.0  ;;  %v430_v49 = vcombine.low %v422_v34, %v429_v35  ;;  %v431_v50 = vcombine.low %v270_v27, %v274_v29  ;;  %v432_v51 = vcombine.low %v278_v30, %v282_v33 }
  0x1c   :  { %v698_v52 = vadd.f32 %v697_v40, %v696_v43  ;;  %v556_v53 = vcombine.high %v554_v38, %v554_v38  ;;  %v557_v54 = vcombine.high %v509_v37, %v509_v37  ;;  %v564_v55 = vrot.slane %v509_v37, %v816_v26 }
  0x1d   :  { %v701_v56 = vsel %vm691_vm0, %v555_v39, 0.0  ;;  %v33_v57 = vunpack.c.l.bf16 %v26_v44  ;;  %v286_v60 = vrot.slane %v126_v42, %v793_v4  ;;  %v290_v61 = vrot.slane %v130_v45, %v793_v4 }
  0x1e   :  { %v700_v58 = vadd.f32 %v699_v48, %v698_v52  ;;  %v294_v62 = vrot.slane %v134_v46, %v793_v4  ;;  %v703_v63 = vsel %vm691_vm0, %v554_v38, 0.0  ;;  %v298_v0 = vrot.slane %v138_v47, %v793_v4 }
  0x1f   :  { %v439_v1 = vrot.slane %v431_v50, %v816_v26  ;;  %v446_v2 = vrot.slane %v432_v51, %v816_v26  ;;  %v510_v8 = vmul.f32 %v430_v49, %v18_v41  ;;  %v571_v9 = vrot.slane %v557_v54, %v816_v26 }
  0x20   :  { %v702_v3 = vadd.f32 %v701_v56, %v700_v58  ;;  %v572_v10 = vcombine.high %v564_v55, %v564_v55  ;;  %v705_v11 = vsel %vm691_vm0, %v556_v53, 0.0  ;;  %v19_v12 = vunpack.c.l.bf16 %v884_v59 }
  0x21   :  { %v142_v13 = vrot.slane %v33_v57, %v793_v4  ;;  %v146_v15 = vrot.slane %v33_v57, %v795_v5  ;;  %v150_v16 = vrot.slane %v33_v57, %v797_v6  ;;  %v154_v17 = vrot.slane %v33_v57, %v799_v7 }
  0x22   :  { %v704_v14 = vadd.f32 %v703_v63, %v702_v3  ;;  %v707_v18 = vsel %vm691_vm0, %v564_v55, 0.0  ;;  %v447_v19 = vcombine.low %v439_v1, %v446_v2  ;;  %v448_v20 = vcombine.low %v286_v60, %v290_v61 }
  0x23   :  { %v449_v21 = vcombine.low %v294_v62, %v298_v0  ;;  %v573_v23 = vcombine.high %v571_v9, %v571_v9  ;;  %v574_v24 = vcombine.high %v510_v8, %v510_v8  ;;  %v581_v25 = vrot.slane %v510_v8, %v816_v26 }
  0x24   :  { %v706_v22 = vadd.f32 %v705_v11, %v704_v14  ;;  %v709_v27 = vsel %vm691_vm0, %v572_v10, 0.0  ;;  %v34_v28 = vunpack.c.h.bf16 %v26_v44  ;;  %v302_v30 = vrot.slane %v142_v13, %v793_v4 }
  0x25   :  { %v306_v31 = vrot.slane %v146_v15, %v793_v4  ;;  %v310_v32 = vrot.slane %v150_v16, %v793_v4  ;;  %v711_v33 = vsel %vm691_vm0, %v571_v9, 0.0  ;;  %v314_v34 = vrot.slane %v154_v17, %v793_v4 }
  0x26   :  { %v708_v29 = vadd.f32 %v707_v18, %v706_v22  ;;  %v456_v35 = vrot.slane %v448_v20, %v816_v26  ;;  %v463_v36 = vrot.slane %v449_v21, %v816_v26  ;;  %v511_v38 = vmul.f32 %v447_v19, %v19_v12 }
  0x27   :  { %v588_v39 = vrot.slane %v574_v24, %v816_v26  ;;  %v589_v40 = vcombine.high %v581_v25, %v581_v25  ;;  %v713_v41 = vsel %vm691_vm0, %v573_v23, 0.0  ;;  %v20_v42 = vunpack.c.h.bf16 %v884_v59  ;;  %v14_v59 = vld [vmem:[%s960_s0 + $0x18] sm:$0xff] }
  0x28   :  { %v710_v37 = vadd.f32 %v709_v27, %v708_v29  ;;  %v158_v43 = vrot.slane %v34_v28, %v793_v4  ;;  %v162_v45 = vrot.slane %v34_v28, %v795_v5  ;;  %v166_v46 = vrot.slane %v34_v28, %v797_v6 }
  0x29   :  { %v170_v47 = vrot.slane %v34_v28, %v799_v7  ;;  %v715_v48 = vsel %vm691_vm0, %v581_v25, 0.0  ;;  %v464_v49 = vcombine.low %v456_v35, %v463_v36  ;;  %v465_v50 = vcombine.low %v302_v30, %v306_v31 }
  0x2a   :  { %v712_v44 = vadd.f32 %v711_v33, %v710_v37  ;;  %v466_v51 = vcombine.low %v310_v32, %v314_v34  ;;  %v590_v53 = vcombine.high %v588_v39, %v588_v39  ;;  %v591_v54 = vcombine.high %v511_v38, %v511_v38 }
  0x2b   :  { %v598_v55 = vrot.slane %v511_v38, %v816_v26  ;;  %v717_v56 = vsel %vm691_vm0, %v589_v40, 0.0  ;;  %v318_v58 = vrot.slane %v158_v43, %v793_v4  ;;  %v322_v5 = vrot.slane %v162_v45, %v793_v4 }
  0x2c   :  { %v714_v52 = vadd.f32 %v713_v41, %v712_v44  ;;  %v326_v6 = vrot.slane %v166_v46, %v793_v4  ;;  %v719_v7 = vsel %vm691_vm0, %v588_v39, 0.0  ;;  %v330_v60 = vrot.slane %v170_v47, %v793_v4 }
  0x2d   :  { %v473_v61 = vrot.slane %v465_v50, %v816_v26  ;;  %v480_v62 = vrot.slane %v466_v51, %v816_v26  ;;  %v512_v0 = vmul.f32 %v464_v49, %v20_v42  ;;  %v605_v1 = vrot.slane %v591_v54, %v816_v26 }
  0x2e   :  { %v716_v57 = vadd.f32 %v715_v48, %v714_v52  ;;  %v606_v2 = vcombine.high %v598_v55, %v598_v55  ;;  %v721_v3 = vsel %vm691_vm0, %v590_v53, 0.0  ;;  %v21_v9 = vunpack.c.l.bf16 %v14_v59 }
  0x2f   :  { %v723_v10 = vsel %vm691_vm0, %v598_v55, 0.0  ;;  %v481_v11 = vcombine.low %v473_v61, %v480_v62  ;;  %v482_v12 = vcombine.low %v318_v58, %v322_v5  ;;  %v483_v13 = vcombine.low %v326_v6, %v330_v60 }
  0x30   :  { %v718_v63 = vadd.f32 %v717_v56, %v716_v57  ;;  %v607_v4 = vcombine.high %v605_v1, %v605_v1  ;;  %v608_v15 = vcombine.high %v512_v0, %v512_v0  ;;  %v615_v16 = vrot.slane %v512_v0, %v816_v26 }
  0x31   :  { %v725_v17 = vsel %vm691_vm0, %v606_v2, 0.0  ;;  %v727_v19 = vsel %vm691_vm0, %v605_v1, 0.0  ;;  %v490_v20 = vrot.slane %v482_v12, %v816_v26  ;;  %v497_v21 = vrot.slane %v483_v13, %v816_v26 }
  0x32   :  { %v720_v8 = vadd.f32 %v719_v7, %v718_v63  ;;  %v513_v23 = vmul.f32 %v481_v11, %v21_v9  ;;  %v622_v24 = vrot.slane %v608_v15, %v816_v26  ;;  %v623_v25 = vcombine.high %v615_v16, %v615_v16 }
  0x33   :  { %v729_v27 = vsel %vm691_vm0, %v607_v4, 0.0  ;;  %v731_v29 = vsel %vm691_vm0, %v615_v16, 0.0  ;;  %v22_v30 = vunpack.c.h.bf16 %v14_v59  ;;  %v498_v31 = vcombine.low %v490_v20, %v497_v21 }
  0x34   :  { %v722_v14 = vadd.f32 %v721_v3, %v720_v8  ;;  %v624_v33 = vcombine.high %v622_v24, %v622_v24  ;;  %v625_v34 = vcombine.high %v513_v23, %v513_v23  ;;  %v632_v35 = vrot.slane %v513_v23, %v816_v26 }
  0x35   :  { %v733_v36 = vsel %vm691_vm0, %v623_v25, 0.0  ;;  %v735_v38 = vsel %vm691_vm0, %v622_v24, 0.0  ;;  %v514_v40 = vmul.f32 %v498_v31, %v22_v30 }
  0x36   :  { %v724_v18 = vadd.f32 %v723_v10, %v722_v14  ;;  %v639_v41 = vrot.slane %v625_v34, %v816_v26  ;;  %v640_v42 = vcombine.high %v632_v35, %v632_v35  ;;  %v737_v43 = vsel %vm691_vm0, %v624_v33, 0.0 }
  0x37   :  { %v739_v45 = vsel %vm691_vm0, %v632_v35, 0.0  ;;  %v642_v48 = vcombine.high %v514_v40, %v514_v40  ;;  %v649_v49 = vrot.slane %v514_v40, %v816_v26 }
  0x38   :  { %v726_v22 = vadd.f32 %v725_v17, %v724_v18  ;;  %v641_v47 = vcombine.high %v639_v41, %v639_v41  ;;  %v741_v50 = vsel %vm691_vm0, %v640_v42, 0.0  ;;  %v743_v52 = vsel %vm691_vm0, %v639_v41, 0.0 }
  0x39   :  { %v656_v54 = vrot.slane %v642_v48, %v816_v26  ;;  %v657_v55 = vcombine.high %v649_v49, %v649_v49  ;;  %v747_v58 = vsel %vm691_vm0, %v649_v49, 0.0 }
  0x3a   :  { %v728_v28 = vadd.f32 %v727_v19, %v726_v22  ;;  %v745_v56 = vsel %vm691_vm0, %v641_v47, 0.0 }
  0x3b   :  { %v658_v6 = vcombine.high %v656_v54, %v656_v54  ;;  %v749_v7 = vsel %vm691_vm0, %v657_v55, 0.0  ;;  %v751_v60 = vsel %vm691_vm0, %v656_v54, 0.0 }
  0x3c   :  { %v730_v32 = vadd.f32 %v729_v27, %v728_v28 }
  0x3d   :  { %v753_v62 = vsel %vm691_vm0, %v658_v6, 0.0 }
  0x3e   :  { %v732_v37 = vadd.f32 %v731_v29, %v730_v32 }
  0x40   :  { %v734_v39 = vadd.f32 %v733_v36, %v732_v37 }
  0x42   :  { %v736_v44 = vadd.f32 %v735_v38, %v734_v39 }
  0x44   :  { %v738_v46 = vadd.f32 %v737_v43, %v736_v44 }
  0x46   :  { %v740_v51 = vadd.f32 %v739_v45, %v738_v46 }
  0x48   :  { %v742_v53 = vadd.f32 %v741_v50, %v740_v51 }
  0x4a   :  { %v744_v57 = vadd.f32 %v743_v52, %v742_v53 }
  0x4c   :  { %v746_v5 = vadd.f32 %v745_v56, %v744_v57 }
  0x4e   :  { %v748_v59 = vadd.f32 %v747_v58, %v746_v5 }
  0x50   :  { %v750_v61 = vadd.f32 %v749_v7, %v748_v59 }
  0x52   :  { %v752_v63 = vadd.f32 %v751_v60, %v750_v61 }
  0x54   :  { %v754_v0 = vadd.f32 %v753_v62, %v752_v63 }
  0x56   :  { %755 = vadd.xlane.f32.xlu0 %v754_v0 }
  0xe3   :  { %v756_v26 = vpop.xlane.xlu0 %755 }
  0xe4   :  { %v757_v1 = vsub.f32 0.0, %v756_v26 }
  0xe6   :  { %v758_v2 = vmul.f32 1.442695, %v757_v1 }
  0xe8   :  { %770 = vpow2.f32 %v758_v2 }
  0xf2   :  { %v771_v3 = vpop.eup %770 }
  0xf3   :  { %v760_v8 = vadd.f32 1.0, %v771_v3 }
  0xf5   :  { %772 = vrcp.f32 %v760_v8 }
  0xff   :  { %v773_v9 = vpop.eup %772 }
 0x100   :  { %764 = vst.msk [vmem:[%s961_s2] sm:$0x3] %vm763_vm1, %v773_v9 }

// kernel: discriminator_forward.6
= control target key start
LH: loop header
LB: loop body
LE: loop exit
PB: predicated region body
PF: predicated region fallthrough
CT: control target
= control target key end

     0   :  { %s3962_s1 = inlined_call_operand.vmem [shape: bf16[2048,256], index: 1, kind: input, shape index: {}]   ;;  %s3963_s0 = inlined_call_operand.vmem [shape: bf16[32,2048], index: 0, kind: input, shape index: {}]   ;;  %s3964_s2 = inlined_call_operand.vmem [shape: bf16[32,256], index: 2, kind: output, shape index: {0}]   ;;  %s3965_s3 = inlined_call_operand.vmem [shape: f32[8,256], index: 3, kind: output, shape index: {1}]   ;;  %s3966_s4 = inlined_call_operand.vmem [shape: f32[8,256], index: 4, kind: output, shape index: {2}]  }
   0x1   :  { %v2613_v0 = vld [vmem:[%s3962_s1 + $0x4] ss:$8 sps:$4 sm:$0xff]   ;;  %v2617_v2 = vld [vmem:[%s3962_s1] ss:$8 sps:$4 sm:$0xff]   ;;  %v2619_v4 = vld [vmem:[%s3962_s1 + $0x14] ss:$8 sps:$4 sm:$0xff]  }
   0x2   :  { %v2615_v1 = vld [vmem:[%s3962_s1 + $0x404] ss:$8 sps:$4 sm:$0xff]   ;;  %1742 = vmatprep.subr.bf16.mxu1 %v2613_v0  ;;  %v2618_v3 = vld [vmem:[%s3962_s1 + $0x400] ss:$8 sps:$4 sm:$0xff]   ;;  %v2621_v5 = vld [vmem:[%s3962_s1 + $0x414] ss:$8 sps:$4 sm:$0xff]  }
   0x3   :  { %1954 = vmatprep.subr.bf16.mxu0 %v2615_v1  ;;  %1743 = vmatpush1.bf16.msra.mxu1 %v2617_v2  ;;  %v2623_v6 = vld [vmem:[%s3962_s1 + $0x10] ss:$8 sps:$4 sm:$0xff]   ;;  %v2625_v8 = vld [vmem:[%s3962_s1 + $0x24] ss:$8 sps:$4 sm:$0xff]   ;;  %v2629_v10 = vld [vmem:[%s3962_s1 + $0x20] ss:$8 sps:$4 sm:$0xff]  }
   0x4   :  { %1955 = vmatpush1.bf16.msra.mxu0 %v2618_v3  ;;  %1744 = vmatprep.subr.bf16.mxu1 %v2619_v4  ;;  %v2624_v7 = vld [vmem:[%s3962_s1 + $0x410] ss:$8 sps:$4 sm:$0xff]   ;;  %v2627_v9 = vld [vmem:[%s3962_s1 + $0x424] ss:$8 sps:$4 sm:$0xff]   ;;  %v2630_v11 = vld [vmem:[%s3962_s1 + $0x420] ss:$8 sps:$4 sm:$0xff]  }
   0x5   :  { %1956 = vmatprep.subr.bf16.mxu0 %v2621_v5  ;;  %v2631_v12 = vld [vmem:[%s3962_s1 + $0x34] ss:$8 sps:$4 sm:$0xff]   ;;  %v2635_v14 = vld [vmem:[%s3962_s1 + $0x30] ss:$8 sps:$4 sm:$0xff]   ;;  %v2637_v16 = vld [vmem:[%s3962_s1 + $0x44] ss:$8 sps:$4 sm:$0xff]  }
   0x6   :  { %v2633_v13 = vld [vmem:[%s3962_s1 + $0x434] ss:$8 sps:$4 sm:$0xff]   ;;  %v2636_v15 = vld [vmem:[%s3962_s1 + $0x430] ss:$8 sps:$4 sm:$0xff]   ;;  %v2639_v17 = vld [vmem:[%s3962_s1 + $0x444] ss:$8 sps:$4 sm:$0xff]  }
   0x7   :  { %1745 = vmatpush1.bf16.msra.mxu1 %v2623_v6  ;;  %v2641_v18 = vld [vmem:[%s3962_s1 + $0x40] ss:$8 sps:$4 sm:$0xff]   ;;  %v2643_v20 = vld [vmem:[%s3962_s1 + $0x54] ss:$8 sps:$4 sm:$0xff]   ;;  %v2647_v22 = vld [vmem:[%s3962_s1 + $0x50] ss:$8 sps:$4 sm:$0xff]  }
   0x8   :  { %1957 = vmatpush1.bf16.msra.mxu0 %v2624_v7  ;;  %1746 = vmatprep.subr.bf16.mxu1 %v2625_v8  ;;  %v2642_v19 = vld [vmem:[%s3962_s1 + $0x440] ss:$8 sps:$4 sm:$0xff]   ;;  %v2645_v21 = vld [vmem:[%s3962_s1 + $0x454] ss:$8 sps:$4 sm:$0xff]   ;;  %v2648_v23 = vld [vmem:[%s3962_s1 + $0x450] ss:$8 sps:$4 sm:$0xff]  }
   0x9   :  { %1958 = vmatprep.subr.bf16.mxu0 %v2627_v9  ;;  %v2649_v24 = vld [vmem:[%s3962_s1 + $0x64] ss:$8 sps:$4 sm:$0xff]   ;;  %v2653_v26 = vld [vmem:[%s3962_s1 + $0x60] ss:$8 sps:$4 sm:$0xff]   ;;  %v2655_v28 = vld [vmem:[%s3962_s1 + $0x74] ss:$8 sps:$4 sm:$0xff]  }
   0xa   :  { %v2651_v25 = vld [vmem:[%s3962_s1 + $0x464] ss:$8 sps:$4 sm:$0xff]   ;;  %v2654_v27 = vld [vmem:[%s3962_s1 + $0x460] ss:$8 sps:$4 sm:$0xff]   ;;  %v2657_v29 = vld [vmem:[%s3962_s1 + $0x474] ss:$8 sps:$4 sm:$0xff]  }
   0xb   :  { %1747 = vmatpush1.bf16.msra.mxu1 %v2629_v10  ;;  %v2659_v30 = vld [vmem:[%s3962_s1 + $0x70] ss:$8 sps:$4 sm:$0xff]   ;;  %v2661_v32 = vld [vmem:[%s3962_s1 + $0x84] ss:$8 sps:$4 sm:$0xff]   ;;  %v2665_v34 = vld [vmem:[%s3962_s1 + $0x80] ss:$8 sps:$4 sm:$0xff]  }
   0xc   :  { %1959 = vmatpush1.bf16.msra.mxu0 %v2630_v11  ;;  %1748 = vmatprep.subr.bf16.mxu1 %v2631_v12  ;;  %v2660_v31 = vld [vmem:[%s3962_s1 + $0x470] ss:$8 sps:$4 sm:$0xff]   ;;  %v2663_v33 = vld [vmem:[%s3962_s1 + $0x484] ss:$8 sps:$4 sm:$0xff]   ;;  %v2666_v35 = vld [vmem:[%s3962_s1 + $0x480] ss:$8 sps:$4 sm:$0xff]  }
   0xd   :  { %1960 = vmatprep.subr.bf16.mxu0 %v2633_v13  ;;  %v2667_v36 = vld [vmem:[%s3962_s1 + $0x94] ss:$8 sps:$4 sm:$0xff]   ;;  %v2671_v38 = vld [vmem:[%s3962_s1 + $0x90] ss:$8 sps:$4 sm:$0xff]   ;;  %v2673_v40 = vld [vmem:[%s3962_s1 + $0xa4] ss:$8 sps:$4 sm:$0xff]  }
   0xe   :  { %v2669_v37 = vld [vmem:[%s3962_s1 + $0x494] ss:$8 sps:$4 sm:$0xff]   ;;  %v2672_v39 = vld [vmem:[%s3962_s1 + $0x490] ss:$8 sps:$4 sm:$0xff]   ;;  %v2675_v41 = vld [vmem:[%s3962_s1 + $0x4a4] ss:$8 sps:$4 sm:$0xff]  }
   0xf   :  { %1749 = vmatpush1.bf16.msra.mxu1 %v2635_v14  ;;  %v2677_v42 = vld [vmem:[%s3962_s1 + $0xa0] ss:$8 sps:$4 sm:$0xff]   ;;  %v2679_v44 = vld [vmem:[%s3962_s1 + $0xb4] ss:$8 sps:$4 sm:$0xff]   ;;  %v2683_v46 = vld [vmem:[%s3962_s1 + $0xb0] ss:$8 sps:$4 sm:$0xff]  }
  0x10   :  { %1961 = vmatpush1.bf16.msra.mxu0 %v2636_v15  ;;  %1750 = vmatprep.subr.bf16.mxu1 %v2637_v16  ;;  %v2678_v43 = vld [vmem:[%s3962_s1 + $0x4a0] ss:$8 sps:$4 sm:$0xff]   ;;  %v2681_v45 = vld [vmem:[%s3962_s1 + $0x4b4] ss:$8 sps:$4 sm:$0xff]   ;;  %v2684_v47 = vld [vmem:[%s3962_s1 + $0x4b0] ss:$8 sps:$4 sm:$0xff]  }
  0x11   :  { %1962 = vmatprep.subr.bf16.mxu0 %v2639_v17  ;;  %v14_v48 = vld [vmem:[%s3963_s0] sm:$0xff]  ;;  %v2691_v58 = vld [vmem:[%s3962_s1 + $0xd4] ss:$8 sps:$4 sm:$0xff]   ;;  %v2695_v60 = vld [vmem:[%s3962_s1 + $0xd0] ss:$8 sps:$4 sm:$0xff]  }
  0x12   :  { %v22_v49 = vld [vmem:[%s3963_s0 + $0x40] sm:$0xff]  ;;  %v2693_v59 = vld [vmem:[%s3962_s1 + $0x4d4] ss:$8 sps:$4 sm:$0xff]   ;;  %v2696_v61 = vld [vmem:[%s3962_s1 + $0x4d0] ss:$8 sps:$4 sm:$0xff]  }
  0x13   :  { %1751 = vmatpush1.bf16.msra.mxu1 %v2641_v18  ;;  %v2685_v50 = vld [vmem:[%s3962_s1 + $0xc4] ss:$8 sps:$4 sm:$0xff]   ;;  %v2262_v52 = vcombine.high %v14_v48, %v22_v49  ;;  %v2689_v56 = vld [vmem:[%s3962_s1 + $0xc0] ss:$8 sps:$4 sm:$0xff]   ;;  %v2703_v2 = vld [vmem:[%s3962_s1 + $0xf4] ss:$8 sps:$4 sm:$0xff]   ;;  %v2261_v8 = vcombine.low %v14_v48, %v22_v49 }
  0x14   :  { %1963 = vmatpush1.bf16.msra.mxu0 %v2642_v19  ;;  %1752 = vmatprep.subr.bf16.mxu1 %v2643_v20  ;;  %v2687_v51 = vld [vmem:[%s3962_s1 + $0x4c4] ss:$8 sps:$4 sm:$0xff]   ;;  %v2690_v57 = vld [vmem:[%s3962_s1 + $0x4c0] ss:$8 sps:$4 sm:$0xff]   ;;  %v2705_v3 = vld [vmem:[%s3962_s1 + $0x4f4] ss:$8 sps:$4 sm:$0xff]  }
  0x15   :  { %1964 = vmatprep.subr.bf16.mxu0 %v2645_v21  ;;  %v18_v53 = vld [vmem:[%s3963_s0 + $0x20] sm:$0xff]  ;;  %1774 = vmatprep.mubr.bf16.mxu1 %v2262_v52  ;;  %v2707_v4 = vld [vmem:[%s3962_s1 + $0xf0] ss:$8 sps:$4 sm:$0xff]   ;;  %v2717_v12 = vld [vmem:[%s3962_s1 + $0x114] ss:$8 sps:$4 sm:$0xff]  }
  0x16   :  { %v26_v54 = vld [vmem:[%s3963_s0 + $0x60] sm:$0xff]  ;;  %v2708_v5 = vld [vmem:[%s3962_s1 + $0x4f0] ss:$8 sps:$4 sm:$0xff]   ;;  %v2720_v13 = vld [vmem:[%s3962_s1 + $0x514] ss:$8 sps:$4 sm:$0xff]  }
  0x17   :  { %1753 = vmatpush1.bf16.msra.mxu1 %v2647_v22  ;;  %v2270_v55 = vcombine.high %v18_v53, %v26_v54  ;;  %v2697_v62 = vld [vmem:[%s3962_s1 + $0xe4] ss:$8 sps:$4 sm:$0xff]   ;;  %v2701_v0 = vld [vmem:[%s3962_s1 + $0xe0] ss:$8 sps:$4 sm:$0xff]   ;;  %v2269_v10 = vcombine.low %v18_v53, %v26_v54  ;;  %v2715_v14 = vld [vmem:[%s3962_s1 + $0x110] ss:$8 sps:$4 sm:$0xff]  }
  0x18   :  { %1965 = vmatpush1.bf16.msra.mxu0 %v2648_v23  ;;  %1754 = vmatprep.subr.bf16.mxu1 %v2649_v24  ;;  %v2699_v63 = vld [vmem:[%s3962_s1 + $0x4e4] ss:$8 sps:$4 sm:$0xff]   ;;  %v2702_v1 = vld [vmem:[%s3962_s1 + $0x4e0] ss:$8 sps:$4 sm:$0xff]   ;;  %v2718_v15 = vld [vmem:[%s3962_s1 + $0x510] ss:$8 sps:$4 sm:$0xff]  }
  0x19   :  { %1966 = vmatprep.subr.bf16.mxu0 %v2651_v25  ;;  %1986 = vmatprep.mubr.bf16.mxu0 %v2270_v55  ;;  %v2711_v6 = vld [vmem:[%s3962_s1 + $0x104] ss:$8 sps:$4 sm:$0xff]   ;;  %v2709_v9 = vld [vmem:[%s3962_s1 + $0x100] ss:$8 sps:$4 sm:$0xff]   ;;  %v2729_v20 = vld [vmem:[%s3962_s1 + $0x134] ss:$8 sps:$4 sm:$0xff]  }
  0x1a   :  { %v2714_v7 = vld [vmem:[%s3962_s1 + $0x504] ss:$8 sps:$4 sm:$0xff]   ;;  %v2712_v11 = vld [vmem:[%s3962_s1 + $0x500] ss:$8 sps:$4 sm:$0xff]   ;;  %v2732_v21 = vld [vmem:[%s3962_s1 + $0x534] ss:$8 sps:$4 sm:$0xff]  }
  0x1b   :  { %1755 = vmatpush1.bf16.msra.mxu1 %v2653_v26  ;;  %v2723_v16 = vld [vmem:[%s3962_s1 + $0x124] ss:$8 sps:$4 sm:$0xff]   ;;  %v2721_v18 = vld [vmem:[%s3962_s1 + $0x120] ss:$8 sps:$4 sm:$0xff]   ;;  %v2727_v22 = vld [vmem:[%s3962_s1 + $0x130] ss:$8 sps:$4 sm:$0xff]  }
  0x1c   :  { %1967 = vmatpush1.bf16.msra.mxu0 %v2654_v27  ;;  %1756 = vmatprep.subr.bf16.mxu1 %v2655_v28  ;;  %v2726_v17 = vld [vmem:[%s3962_s1 + $0x524] ss:$8 sps:$4 sm:$0xff]   ;;  %v2724_v19 = vld [vmem:[%s3962_s1 + $0x520] ss:$8 sps:$4 sm:$0xff]   ;;  %v2730_v23 = vld [vmem:[%s3962_s1 + $0x530] ss:$8 sps:$4 sm:$0xff]  }
  0x1d   :  { %1968 = vmatprep.subr.bf16.mxu0 %v2657_v29  ;;  %v2735_v24 = vld [vmem:[%s3962_s1 + $0x144] ss:$8 sps:$4 sm:$0xff]   ;;  %v2733_v26 = vld [vmem:[%s3962_s1 + $0x140] ss:$8 sps:$4 sm:$0xff]   ;;  %v2741_v28 = vld [vmem:[%s3962_s1 + $0x154] ss:$8 sps:$4 sm:$0xff]  }
  0x1e   :  { %v2738_v25 = vld [vmem:[%s3962_s1 + $0x544] ss:$8 sps:$4 sm:$0xff]   ;;  %v2736_v27 = vld [vmem:[%s3962_s1 + $0x540] ss:$8 sps:$4 sm:$0xff]   ;;  %v2744_v29 = vld [vmem:[%s3962_s1 + $0x554] ss:$8 sps:$4 sm:$0xff]  }
  0x1f   :  { %1757 = vmatpush1.bf16.msra.mxu1 %v2659_v30  ;;  %v30_v30 = vld [vmem:[%s3963_s0 + $0x80] sm:$0xff]  ;;  %v3343_v49 = vld [vmem:[%s3963_s0 + $0x28] sm:$0xff]  ;;  %v2754_v52 = vld [vmem:[%s3962_s1 + $0x570] ss:$8 sps:$4 sm:$0xff]  }
  0x20   :  { %1969 = vmatpush1.bf16.msra.mxu0 %v2660_v31  ;;  %1758 = vmatprep.subr.bf16.mxu1 %v2661_v32  ;;  %v38_v31 = vld [vmem:[%s3963_s0 + $0xc0] sm:$0xff]  ;;  %v2739_v32 = vld [vmem:[%s3962_s1 + $0x150] ss:$8 sps:$4 sm:$0xff]  }
  0x21   :  { %1970 = vmatprep.subr.bf16.mxu0 %v2663_v33  ;;  %v2278_v33 = vcombine.high %v30_v30, %v38_v31  ;;  %v2759_v54 = vld [vmem:[%s3962_s1 + $0x184] ss:$8 sps:$4 sm:$0xff]  }
  0x22   :  { %v2762_v55 = vld [vmem:[%s3962_s1 + $0x584] ss:$8 sps:$4 sm:$0xff]  }
  0x23   :  { %1759 = vmatpush1.bf16.msra.mxu1 %v2665_v34  ;;  %v2742_v34 = vld [vmem:[%s3962_s1 + $0x550] ss:$8 sps:$4 sm:$0xff]  }
  0x24   :  { %1971 = vmatpush1.bf16.msra.mxu0 %v2666_v35  ;;  %1760 = vmatprep.subr.bf16.mxu1 %v2667_v36  ;;  %v34_v35 = vld [vmem:[%s3963_s0 + $0xa0] sm:$0xff] }
  0x25   :  { %1972 = vmatprep.subr.bf16.mxu0 %v2669_v37  ;;  %v42_v36 = vld [vmem:[%s3963_s0 + $0xe0] sm:$0xff]  ;;  %v2277_v37 = vcombine.low %v30_v30, %v38_v31  ;;  %v2813_v30 = vld [vmem:[%s3962_s1 + $0x214] ss:$8 sps:$4 sm:$0xff]  }
  0x26   :  { %v2816_v31 = vld [vmem:[%s3962_s1 + $0x614] ss:$8 sps:$4 sm:$0xff]  }
  0x27   :  { %1761 = vmatpush1.bf16.msra.mxu1 %v2671_v38  ;;  %v2747_v38 = vld [vmem:[%s3962_s1 + $0x164] ss:$8 sps:$4 sm:$0xff]  }
  0x28   :  { %1973 = vmatpush1.bf16.msra.mxu0 %v2672_v39  ;;  %1762 = vmatprep.subr.bf16.mxu1 %v2673_v40  ;;  %v2286_v39 = vcombine.high %v34_v35, %v42_v36  ;;  %v2285_v40 = vcombine.low %v34_v35, %v42_v36  ;;  %v2811_v36 = vld [vmem:[%s3962_s1 + $0x210] ss:$8 sps:$4 sm:$0xff]  }
  0x29   :  { %1974 = vmatprep.subr.bf16.mxu0 %v2675_v41  ;;  %v2750_v41 = vld [vmem:[%s3962_s1 + $0x564] ss:$8 sps:$4 sm:$0xff]  }
  0x2b   :  { %1763 = vmatpush1.bf16.msra.mxu1 %v2677_v42  ;;  %v2745_v42 = vld [vmem:[%s3962_s1 + $0x160] ss:$8 sps:$4 sm:$0xff]  }
  0x2c   :  { %1975 = vmatpush1.bf16.msra.mxu0 %v2678_v43  ;;  %1764 = vmatprep.subr.bf16.mxu1 %v2679_v44  ;;  %v2748_v43 = vld [vmem:[%s3962_s1 + $0x560] ss:$8 sps:$4 sm:$0xff]  }
  0x2d   :  { %1976 = vmatprep.subr.bf16.mxu0 %v2681_v45  ;;  %v3325_v44 = vld [vmem:[%s3963_s0 + $0x8] sm:$0xff] }
  0x2e   :  { %v3330_v45 = vld [vmem:[%s3963_s0 + $0x48] sm:$0xff] }
  0x2f   :  { %1765 = vmatpush1.bf16.msra.mxu1 %v2683_v46  ;;  %v2753_v46 = vld [vmem:[%s3962_s1 + $0x174] ss:$8 sps:$4 sm:$0xff]   ;;  %v2264_v48 = vcombine.high %v3325_v44, %v3330_v45 }
  0x30   :  { %1977 = vmatpush1.bf16.msra.mxu0 %v2684_v47  ;;  %1766 = vmatprep.subr.bf16.mxu1 %v2685_v50  ;;  %v2756_v47 = vld [vmem:[%s3962_s1 + $0x574] ss:$8 sps:$4 sm:$0xff]   ;;  %v3348_v50 = vld [vmem:[%s3963_s0 + $0x68] sm:$0xff] }
  0x31   :  { %1978 = vmatprep.subr.bf16.mxu0 %v2687_v51  ;;  %v2751_v51 = vld [vmem:[%s3962_s1 + $0x170] ss:$8 sps:$4 sm:$0xff]   ;;  %v2272_v53 = vcombine.high %v3343_v49, %v3348_v50 }
  0x33   :  { %1767 = vmatpush1.bf16.msra.mxu1 %v2689_v56  ;;  %v2757_v56 = vld [vmem:[%s3962_s1 + $0x180] ss:$8 sps:$4 sm:$0xff]  }
  0x34   :  { %1979 = vmatpush1.bf16.msra.mxu0 %v2690_v57  ;;  %1768 = vmatprep.subr.bf16.mxu1 %v2691_v58  ;;  %v2760_v57 = vld [vmem:[%s3962_s1 + $0x580] ss:$8 sps:$4 sm:$0xff]   ;;  %v2765_v58 = vld [vmem:[%s3962_s1 + $0x194] ss:$8 sps:$4 sm:$0xff]  }
  0x35   :  { %1980 = vmatprep.subr.bf16.mxu0 %v2693_v59  ;;  %v2768_v59 = vld [vmem:[%s3962_s1 + $0x594] ss:$8 sps:$4 sm:$0xff]  }
  0x37   :  { %1769 = vmatpush1.bf16.msra.mxu1 %v2695_v60  ;;  %v2763_v60 = vld [vmem:[%s3962_s1 + $0x190] ss:$8 sps:$4 sm:$0xff]  }
  0x38   :  { %1981 = vmatpush1.bf16.msra.mxu0 %v2696_v61  ;;  %1770 = vmatprep.subr.bf16.mxu1 %v2697_v62  ;;  %v2766_v61 = vld [vmem:[%s3962_s1 + $0x590] ss:$8 sps:$4 sm:$0xff]   ;;  %v2771_v62 = vld [vmem:[%s3962_s1 + $0x1a4] ss:$8 sps:$4 sm:$0xff]  }
  0x39   :  { %1982 = vmatprep.subr.bf16.mxu0 %v2699_v63  ;;  %v2774_v63 = vld [vmem:[%s3962_s1 + $0x5a4] ss:$8 sps:$4 sm:$0xff]  }
  0x3b   :  { %1771 = vmatpush1.bf16.msra.mxu1 %v2701_v0  ;;  %v2769_v0 = vld [vmem:[%s3962_s1 + $0x1a0] ss:$8 sps:$4 sm:$0xff]  }
  0x3c   :  { %1983 = vmatpush1.bf16.msra.mxu0 %v2702_v1  ;;  %1772 = vmatprep.subr.bf16.mxu1 %v2703_v2  ;;  %v2772_v1 = vld [vmem:[%s3962_s1 + $0x5a0] ss:$8 sps:$4 sm:$0xff]   ;;  %v2777_v2 = vld [vmem:[%s3962_s1 + $0x1b4] ss:$8 sps:$4 sm:$0xff]  }
  0x3d   :  { %1984 = vmatprep.subr.bf16.mxu0 %v2705_v3  ;;  %v2780_v3 = vld [vmem:[%s3962_s1 + $0x5b4] ss:$8 sps:$4 sm:$0xff]  }
  0x3f   :  { %1773 = vmatpush1.bf16.msra.mxu1 %v2707_v4  ;;  %v2775_v4 = vld [vmem:[%s3962_s1 + $0x1b0] ss:$8 sps:$4 sm:$0xff]  }
  0x40   :  { %1985 = vmatpush1.bf16.msra.mxu0 %v2708_v5  ;;  %1795 = vmatprep.subr.bf16.mxu1 %v2711_v6  ;;  %v2778_v5 = vld [vmem:[%s3962_s1 + $0x5b0] ss:$8 sps:$4 sm:$0xff]   ;;  %v2783_v6 = vld [vmem:[%s3962_s1 + $0x1c4] ss:$8 sps:$4 sm:$0xff]  }
  0x41   :  { %2007 = vmatprep.subr.bf16.mxu0 %v2714_v7  ;;  %v2786_v7 = vld [vmem:[%s3962_s1 + $0x5c4] ss:$8 sps:$4 sm:$0xff]  }
  0x42   :  { %1775 = vmatmul.mubr.bf16.vlgmr.msra.gmra.mrb[0].mxu1 %v2261_v8  ;;  %v2781_v8 = vld [vmem:[%s3962_s1 + $0x1c0] ss:$8 sps:$4 sm:$0xff]  }
  0x43   :  { %1987 = vmatmul.mubr.bf16.vlgmr.msra.gmra.mrb[0].mxu0 %v2269_v10  ;;  %1796 = vmatpush1.bf16.msra.mxu1 %v2709_v9  ;;  %v2784_v9 = vld [vmem:[%s3962_s1 + $0x5c0] ss:$8 sps:$4 sm:$0xff]   ;;  %v2789_v10 = vld [vmem:[%s3962_s1 + $0x1d4] ss:$8 sps:$4 sm:$0xff]  }
  0x44   :  { %2008 = vmatpush1.bf16.msra.mxu0 %v2712_v11  ;;  %1797 = vmatprep.subr.bf16.mxu1 %v2717_v12  ;;  %v2792_v11 = vld [vmem:[%s3962_s1 + $0x5d4] ss:$8 sps:$4 sm:$0xff]   ;;  %v2787_v12 = vld [vmem:[%s3962_s1 + $0x1d0] ss:$8 sps:$4 sm:$0xff]  }
  0x45   :  { %2009 = vmatprep.subr.bf16.mxu0 %v2720_v13  ;;  %1784 = vmatprep.mubr.bf16.mxu1 %v2278_v33  ;;  %v2790_v13 = vld [vmem:[%s3962_s1 + $0x5d0] ss:$8 sps:$4 sm:$0xff]   ;;  %v43_v33 = vld [vmem:[%s3963_s0 + $0xe8] sm:$0xff] }
  0x46   :  { %1996 = vmatprep.mubr.bf16.mxu0 %v2286_v39  ;;  %v2822_v39 = vld [vmem:[%s3962_s1 + $0x624] ss:$8 sps:$4 sm:$0xff]  }
  0x47   :  { %1798 = vmatpush1.bf16.msra.mxu1 %v2715_v14  ;;  %v2795_v14 = vld [vmem:[%s3962_s1 + $0x1e4] ss:$8 sps:$4 sm:$0xff]  }
  0x48   :  { %2010 = vmatpush1.bf16.msra.mxu0 %v2718_v15  ;;  %1799 = vmatprep.subr.bf16.mxu1 %v2723_v16  ;;  %v2798_v15 = vld [vmem:[%s3962_s1 + $0x5e4] ss:$8 sps:$4 sm:$0xff]   ;;  %v2793_v16 = vld [vmem:[%s3962_s1 + $0x1e0] ss:$8 sps:$4 sm:$0xff]  }
  0x49   :  { %2011 = vmatprep.subr.bf16.mxu0 %v2726_v17  ;;  %v2796_v17 = vld [vmem:[%s3962_s1 + $0x5e0] ss:$8 sps:$4 sm:$0xff]  }
  0x4a   :  { %1785 = vmatmul.mubr.bf16.gmra.mrb[4].mxu1 %v2277_v37  ;;  %v2814_v37 = vld [vmem:[%s3962_s1 + $0x610] ss:$8 sps:$4 sm:$0xff]  }
  0x4b   :  { %1800 = vmatpush1.bf16.msra.mxu1 %v2721_v18  ;;  %1997 = vmatmul.mubr.bf16.gmra.mrb[4].mxu0 %v2285_v40  ;;  %v2801_v18 = vld [vmem:[%s3962_s1 + $0x1f4] ss:$8 sps:$4 sm:$0xff]   ;;  %v2817_v40 = vld [vmem:[%s3962_s1 + $0x220] ss:$8 sps:$4 sm:$0xff]  }
  0x4c   :  { %2012 = vmatpush1.bf16.msra.mxu0 %v2724_v19  ;;  %1801 = vmatprep.subr.bf16.mxu1 %v2729_v20  ;;  %v2804_v19 = vld [vmem:[%s3962_s1 + $0x5f4] ss:$8 sps:$4 sm:$0xff]   ;;  %v2799_v20 = vld [vmem:[%s3962_s1 + $0x1f0] ss:$8 sps:$4 sm:$0xff]  }
  0x4d   :  { %2013 = vmatprep.subr.bf16.mxu0 %v2732_v21  ;;  %1827 = vmatprep.mubr.bf16.mxu1 %v2264_v48  ;;  %v2802_v21 = vld [vmem:[%s3962_s1 + $0x5f0] ss:$8 sps:$4 sm:$0xff]   ;;  %v2825_v48 = vld [vmem:[%s3962_s1 + $0x234] ss:$8 sps:$4 sm:$0xff]  }
  0x4e   :  { %2039 = vmatprep.mubr.bf16.mxu0 %v2272_v53  ;;  %v2826_v53 = vld [vmem:[%s3962_s1 + $0x630] ss:$8 sps:$4 sm:$0xff]  }
  0x4f   :  { %1802 = vmatpush1.bf16.msra.mxu1 %v2727_v22  ;;  %v2807_v22 = vld [vmem:[%s3962_s1 + $0x204] ss:$8 sps:$4 sm:$0xff]  }
  0x50   :  { %2014 = vmatpush1.bf16.msra.mxu0 %v2730_v23  ;;  %1803 = vmatprep.subr.bf16.mxu1 %v2735_v24  ;;  %v2810_v23 = vld [vmem:[%s3962_s1 + $0x604] ss:$8 sps:$4 sm:$0xff]   ;;  %v2805_v24 = vld [vmem:[%s3962_s1 + $0x200] ss:$8 sps:$4 sm:$0xff]  }
  0x51   :  { %2015 = vmatprep.subr.bf16.mxu0 %v2738_v25  ;;  %v2808_v25 = vld [vmem:[%s3962_s1 + $0x600] ss:$8 sps:$4 sm:$0xff]  }
  0x53   :  { %1804 = vmatpush1.bf16.msra.mxu1 %v2733_v26  ;;  %v31_v26 = vld [vmem:[%s3963_s0 + $0x88] sm:$0xff] }
  0x54   :  { %2016 = vmatpush1.bf16.msra.mxu0 %v2736_v27  ;;  %1805 = vmatprep.subr.bf16.mxu1 %v2741_v28  ;;  %v2263_v27 = vcombine.low %v3325_v44, %v3330_v45  ;;  %v2271_v28 = vcombine.low %v3343_v49, %v3348_v50  ;;  %v3514_v45 = vld [vmem:[%s3963_s0 + $0x50] sm:$0xff] }
  0x55   :  { %2017 = vmatprep.subr.bf16.mxu0 %v2744_v29  ;;  %v39_v29 = vld [vmem:[%s3963_s0 + $0xc8] sm:$0xff]  ;;  %v2828_v49 = vld [vmem:[%s3962_s1 + $0x634] ss:$8 sps:$4 sm:$0xff]  }
  0x57   :  { %1806 = vmatpush1.bf16.msra.mxu1 %v2739_v32  ;;  %v35_v32 = vld [vmem:[%s3963_s0 + $0xa8] sm:$0xff] }
  0x58   :  { %2018 = vmatpush1.bf16.msra.mxu0 %v2742_v34  ;;  %1807 = vmatprep.subr.bf16.mxu1 %v2747_v38  ;;  %v2280_v34 = vcombine.high %v31_v26, %v39_v29  ;;  %v2288_v35 = vcombine.high %v35_v32, %v43_v33  ;;  %v2819_v38 = vld [vmem:[%s3962_s1 + $0x224] ss:$8 sps:$4 sm:$0xff]   ;;  %v2287_v44 = vcombine.low %v35_v32, %v43_v33  ;;  %v2889_v32 = vld [vmem:[%s3962_s1 + $0x2e0] ss:$8 sps:$4 sm:$0xff]  }
  0x59   :  { %2019 = vmatprep.subr.bf16.mxu0 %v2750_v41  ;;  %v2820_v41 = vld [vmem:[%s3962_s1 + $0x620] ss:$8 sps:$4 sm:$0xff]  }
  0x5a   :  { %v2892_v33 = vld [vmem:[%s3962_s1 + $0x6e0] ss:$8 sps:$4 sm:$0xff]  }
  0x5b   :  { %1808 = vmatpush1.bf16.msra.mxu1 %v2745_v42  ;;  %v3509_v42 = vld [vmem:[%s3963_s0 + $0x10] sm:$0xff] }
  0x5c   :  { %2020 = vmatpush1.bf16.msra.mxu0 %v2748_v43  ;;  %1809 = vmatprep.subr.bf16.mxu1 %v2753_v46  ;;  %v2279_v43 = vcombine.low %v31_v26, %v39_v29  ;;  %v3519_v46 = vld [vmem:[%s3963_s0 + $0x30] sm:$0xff]  ;;  %v2266_v50 = vcombine.high %v3509_v42, %v3514_v45 }
  0x5d   :  { %2021 = vmatprep.subr.bf16.mxu0 %v2756_v47  ;;  %v3524_v47 = vld [vmem:[%s3963_s0 + $0x70] sm:$0xff] }
  0x5e   :  { %v2885_v26 = vld [vmem:[%s3962_s1 + $0x2d4] ss:$8 sps:$4 sm:$0xff]   ;;  %v2886_v29 = vld [vmem:[%s3962_s1 + $0x6d0] ss:$8 sps:$4 sm:$0xff]  }
  0x5f   :  { %1810 = vmatpush1.bf16.msra.mxu1 %v2751_v51  ;;  %v2274_v51 = vcombine.high %v3519_v46, %v3524_v47 }
  0x60   :  { %2022 = vmatpush1.bf16.msra.mxu0 %v2754_v52  ;;  %1811 = vmatprep.subr.bf16.mxu1 %v2759_v54  ;;  %v2823_v52 = vld [vmem:[%s3962_s1 + $0x230] ss:$8 sps:$4 sm:$0xff]   ;;  %v2831_v54 = vld [vmem:[%s3962_s1 + $0x244] ss:$8 sps:$4 sm:$0xff]  }
  0x61   :  { %2023 = vmatprep.subr.bf16.mxu0 %v2762_v55  ;;  %v2834_v55 = vld [vmem:[%s3962_s1 + $0x644] ss:$8 sps:$4 sm:$0xff]  }
  0x63   :  { %1812 = vmatpush1.bf16.msra.mxu1 %v2757_v56  ;;  %v2829_v56 = vld [vmem:[%s3962_s1 + $0x240] ss:$8 sps:$4 sm:$0xff]  }
  0x64   :  { %2024 = vmatpush1.bf16.msra.mxu0 %v2760_v57  ;;  %1813 = vmatprep.subr.bf16.mxu1 %v2765_v58  ;;  %v2832_v57 = vld [vmem:[%s3962_s1 + $0x640] ss:$8 sps:$4 sm:$0xff]   ;;  %v2837_v58 = vld [vmem:[%s3962_s1 + $0x254] ss:$8 sps:$4 sm:$0xff]  }
  0x65   :  { %2025 = vmatprep.subr.bf16.mxu0 %v2768_v59  ;;  %v2840_v59 = vld [vmem:[%s3962_s1 + $0x654] ss:$8 sps:$4 sm:$0xff]  }
  0x67   :  { %1814 = vmatpush1.bf16.msra.mxu1 %v2763_v60  ;;  %v2835_v60 = vld [vmem:[%s3962_s1 + $0x250] ss:$8 sps:$4 sm:$0xff]  }
  0x68   :  { %2026 = vmatpush1.bf16.msra.mxu0 %v2766_v61  ;;  %1815 = vmatprep.subr.bf16.mxu1 %v2771_v62  ;;  %v2838_v61 = vld [vmem:[%s3962_s1 + $0x650] ss:$8 sps:$4 sm:$0xff]   ;;  %v2843_v62 = vld [vmem:[%s3962_s1 + $0x264] ss:$8 sps:$4 sm:$0xff]  }
  0x69   :  { %2027 = vmatprep.subr.bf16.mxu0 %v2774_v63  ;;  %v2846_v63 = vld [vmem:[%s3962_s1 + $0x664] ss:$8 sps:$4 sm:$0xff]  }
  0x6b   :  { %1816 = vmatpush1.bf16.msra.mxu1 %v2769_v0  ;;  %v2841_v0 = vld [vmem:[%s3962_s1 + $0x260] ss:$8 sps:$4 sm:$0xff]  }
  0x6c   :  { %2028 = vmatpush1.bf16.msra.mxu0 %v2772_v1  ;;  %1817 = vmatprep.subr.bf16.mxu1 %v2777_v2  ;;  %v2844_v1 = vld [vmem:[%s3962_s1 + $0x660] ss:$8 sps:$4 sm:$0xff]   ;;  %v2849_v2 = vld [vmem:[%s3962_s1 + $0x274] ss:$8 sps:$4 sm:$0xff]  }
  0x6d   :  { %2029 = vmatprep.subr.bf16.mxu0 %v2780_v3  ;;  %v2852_v3 = vld [vmem:[%s3962_s1 + $0x674] ss:$8 sps:$4 sm:$0xff]  }
  0x6f   :  { %1818 = vmatpush1.bf16.msra.mxu1 %v2775_v4  ;;  %v2847_v4 = vld [vmem:[%s3962_s1 + $0x270] ss:$8 sps:$4 sm:$0xff]  }
  0x70   :  { %2030 = vmatpush1.bf16.msra.mxu0 %v2778_v5  ;;  %1819 = vmatprep.subr.bf16.mxu1 %v2783_v6  ;;  %v2850_v5 = vld [vmem:[%s3962_s1 + $0x670] ss:$8 sps:$4 sm:$0xff]   ;;  %v2855_v6 = vld [vmem:[%s3962_s1 + $0x284] ss:$8 sps:$4 sm:$0xff]  }
  0x71   :  { %2031 = vmatprep.subr.bf16.mxu0 %v2786_v7  ;;  %v2858_v7 = vld [vmem:[%s3962_s1 + $0x684] ss:$8 sps:$4 sm:$0xff]  }
  0x73   :  { %1820 = vmatpush1.bf16.msra.mxu1 %v2781_v8  ;;  %v2853_v8 = vld [vmem:[%s3962_s1 + $0x280] ss:$8 sps:$4 sm:$0xff]  }
  0x74   :  { %2032 = vmatpush1.bf16.msra.mxu0 %v2784_v9  ;;  %1821 = vmatprep.subr.bf16.mxu1 %v2789_v10  ;;  %v2856_v9 = vld [vmem:[%s3962_s1 + $0x680] ss:$8 sps:$4 sm:$0xff]   ;;  %v2861_v10 = vld [vmem:[%s3962_s1 + $0x294] ss:$8 sps:$4 sm:$0xff]  }
  0x75   :  { %2033 = vmatprep.subr.bf16.mxu0 %v2792_v11  ;;  %v2864_v11 = vld [vmem:[%s3962_s1 + $0x694] ss:$8 sps:$4 sm:$0xff]  }
  0x77   :  { %1822 = vmatpush1.bf16.msra.mxu1 %v2787_v12  ;;  %v2859_v12 = vld [vmem:[%s3962_s1 + $0x290] ss:$8 sps:$4 sm:$0xff]  }
  0x78   :  { %2034 = vmatpush1.bf16.msra.mxu0 %v2790_v13  ;;  %1823 = vmatprep.subr.bf16.mxu1 %v2795_v14  ;;  %v2862_v13 = vld [vmem:[%s3962_s1 + $0x690] ss:$8 sps:$4 sm:$0xff]   ;;  %v2867_v14 = vld [vmem:[%s3962_s1 + $0x2a4] ss:$8 sps:$4 sm:$0xff]  }
  0x79   :  { %2035 = vmatprep.subr.bf16.mxu0 %v2798_v15  ;;  %v2870_v15 = vld [vmem:[%s3962_s1 + $0x6a4] ss:$8 sps:$4 sm:$0xff]  }
  0x7b   :  { %1824 = vmatpush1.bf16.msra.mxu1 %v2793_v16  ;;  %v2865_v16 = vld [vmem:[%s3962_s1 + $0x2a0] ss:$8 sps:$4 sm:$0xff]  }
  0x7c   :  { %2036 = vmatpush1.bf16.msra.mxu0 %v2796_v17  ;;  %1825 = vmatprep.subr.bf16.mxu1 %v2801_v18  ;;  %v2868_v17 = vld [vmem:[%s3962_s1 + $0x6a0] ss:$8 sps:$4 sm:$0xff]   ;;  %v2873_v18 = vld [vmem:[%s3962_s1 + $0x2b4] ss:$8 sps:$4 sm:$0xff]  }
  0x7d   :  { %2037 = vmatprep.subr.bf16.mxu0 %v2804_v19  ;;  %v2876_v19 = vld [vmem:[%s3962_s1 + $0x6b4] ss:$8 sps:$4 sm:$0xff]  }
  0x7f   :  { %1826 = vmatpush1.bf16.msra.mxu1 %v2799_v20  ;;  %v2871_v20 = vld [vmem:[%s3962_s1 + $0x2b0] ss:$8 sps:$4 sm:$0xff]  }
  0x80   :  { %2038 = vmatpush1.bf16.msra.mxu0 %v2802_v21  ;;  %1848 = vmatprep.subr.bf16.mxu1 %v2807_v22  ;;  %v2874_v21 = vld [vmem:[%s3962_s1 + $0x6b0] ss:$8 sps:$4 sm:$0xff]   ;;  %v2879_v22 = vld [vmem:[%s3962_s1 + $0x2c4] ss:$8 sps:$4 sm:$0xff]  }
  0x81   :  { %2060 = vmatprep.subr.bf16.mxu0 %v2810_v23  ;;  %v2882_v23 = vld [vmem:[%s3962_s1 + $0x6c4] ss:$8 sps:$4 sm:$0xff]  }
  0x82   :  { %1828 = vmatmul.mubr.bf16.vlgmr.msra.gmra.mrb[0].mxu1 %v2263_v27  ;;  %v2888_v27 = vld [vmem:[%s3962_s1 + $0x6d4] ss:$8 sps:$4 sm:$0xff]  }
  0x83   :  { %2040 = vmatmul.mubr.bf16.vlgmr.msra.gmra.mrb[0].mxu0 %v2271_v28  ;;  %1849 = vmatpush1.bf16.msra.mxu1 %v2805_v24  ;;  %v2877_v24 = vld [vmem:[%s3962_s1 + $0x2c0] ss:$8 sps:$4 sm:$0xff]   ;;  %v2883_v28 = vld [vmem:[%s3962_s1 + $0x2d0] ss:$8 sps:$4 sm:$0xff]  }
  0x84   :  { %2061 = vmatpush1.bf16.msra.mxu0 %v2808_v25  ;;  %1850 = vmatprep.subr.bf16.mxu1 %v2813_v30  ;;  %v2880_v25 = vld [vmem:[%s3962_s1 + $0x6c0] ss:$8 sps:$4 sm:$0xff]   ;;  %v2891_v30 = vld [vmem:[%s3962_s1 + $0x2e4] ss:$8 sps:$4 sm:$0xff]  }
  0x85   :  { %2062 = vmatprep.subr.bf16.mxu0 %v2816_v31  ;;  %1837 = vmatprep.mubr.bf16.mxu1 %v2280_v34  ;;  %v2894_v31 = vld [vmem:[%s3962_s1 + $0x6e4] ss:$8 sps:$4 sm:$0xff]   ;;  %v2897_v34 = vld [vmem:[%s3962_s1 + $0x2f4] ss:$8 sps:$4 sm:$0xff]  }
  0x86   :  { %2049 = vmatprep.mubr.bf16.mxu0 %v2288_v35  ;;  %v2900_v35 = vld [vmem:[%s3962_s1 + $0x6f4] ss:$8 sps:$4 sm:$0xff]  }
  0x87   :  { %1851 = vmatpush1.bf16.msra.mxu1 %v2811_v36  ;;  %v2895_v36 = vld [vmem:[%s3962_s1 + $0x2f0] ss:$8 sps:$4 sm:$0xff]  }
  0x88   :  { %2063 = vmatpush1.bf16.msra.mxu0 %v2814_v37  ;;  %1852 = vmatprep.subr.bf16.mxu1 %v2819_v38  ;;  %v2898_v37 = vld [vmem:[%s3962_s1 + $0x6f0] ss:$8 sps:$4 sm:$0xff]   ;;  %v2903_v38 = vld [vmem:[%s3962_s1 + $0x304] ss:$8 sps:$4 sm:$0xff]  }
  0x89   :  { %2064 = vmatprep.subr.bf16.mxu0 %v2822_v39  ;;  %v2906_v39 = vld [vmem:[%s3962_s1 + $0x704] ss:$8 sps:$4 sm:$0xff]  }
  0x8a   :  { %1838 = vmatmul.mubr.bf16.gmra.mrb[4].mxu1 %v2279_v43  ;;  %v2273_v43 = vcombine.low %v3519_v46, %v3524_v47  ;;  %v2909_v46 = vld [vmem:[%s3962_s1 + $0x314] ss:$8 sps:$4 sm:$0xff]  }
  0x8b   :  { %2050 = vmatmul.mubr.bf16.gmra.mrb[4].mxu0 %v2287_v44  ;;  %1853 = vmatpush1.bf16.msra.mxu1 %v2817_v40  ;;  %v32_v40 = vld [vmem:[%s3963_s0 + $0x90] sm:$0xff] }
  0x8c   :  { %2065 = vmatpush1.bf16.msra.mxu0 %v2820_v41  ;;  %1854 = vmatprep.subr.bf16.mxu1 %v2825_v48  ;;  %v2265_v41 = vcombine.low %v3509_v42, %v3514_v45  ;;  %v40_v44 = vld [vmem:[%s3963_s0 + $0xd0] sm:$0xff]  ;;  %v2901_v42 = vld [vmem:[%s3962_s1 + $0x300] ss:$8 sps:$4 sm:$0xff]  }
  0x8d   :  { %2066 = vmatprep.subr.bf16.mxu0 %v2828_v49  ;;  %1880 = vmatprep.mubr.bf16.mxu1 %v2266_v50  ;;  %v36_v48 = vld [vmem:[%s3963_s0 + $0xb0] sm:$0xff]  ;;  %v2904_v45 = vld [vmem:[%s3962_s1 + $0x700] ss:$8 sps:$4 sm:$0xff]   ;;  %v2282_v50 = vcombine.high %v32_v40, %v40_v44 }
  0x8e   :  { %2092 = vmatprep.mubr.bf16.mxu0 %v2274_v51  ;;  %v44_v49 = vld [vmem:[%s3963_s0 + $0xf0] sm:$0xff] }
  0x8f   :  { %1855 = vmatpush1.bf16.msra.mxu1 %v2823_v52  ;;  %v2912_v47 = vld [vmem:[%s3962_s1 + $0x714] ss:$8 sps:$4 sm:$0xff]   ;;  %v2290_v51 = vcombine.high %v36_v48, %v44_v49  ;;  %v2907_v52 = vld [vmem:[%s3962_s1 + $0x310] ss:$8 sps:$4 sm:$0xff]  }
  0x90   :  { %2067 = vmatpush1.bf16.msra.mxu0 %v2826_v53  ;;  %1856 = vmatprep.subr.bf16.mxu1 %v2831_v54  ;;  %v2910_v53 = vld [vmem:[%s3962_s1 + $0x710] ss:$8 sps:$4 sm:$0xff]   ;;  %v2915_v54 = vld [vmem:[%s3962_s1 + $0x324] ss:$8 sps:$4 sm:$0xff]  }
  0x91   :  { %2068 = vmatprep.subr.bf16.mxu0 %v2834_v55  ;;  %v2918_v55 = vld [vmem:[%s3962_s1 + $0x724] ss:$8 sps:$4 sm:$0xff]  }
  0x93   :  { %1857 = vmatpush1.bf16.msra.mxu1 %v2829_v56  ;;  %v3735_v56 = vld [vmem:[%s3963_s0 + $0x18] sm:$0xff] }
  0x94   :  { %2069 = vmatpush1.bf16.msra.mxu0 %v2832_v57  ;;  %1858 = vmatprep.subr.bf16.mxu1 %v2837_v58  ;;  %v2281_v57 = vcombine.low %v32_v40, %v40_v44  ;;  %v2289_v58 = vcombine.low %v36_v48, %v44_v49  ;;  %v2973_v40 = vld [vmem:[%s3962_s1 + $0x3c0] ss:$8 sps:$4 sm:$0xff]   ;;  %v2984_v44 = vld [vmem:[%s3962_s1 + $0x7d4] ss:$8 sps:$4 sm:$0xff]   ;;  %v2979_v48 = vld [vmem:[%s3962_s1 + $0x3d0] ss:$8 sps:$4 sm:$0xff]  }
  0x95   :  { %2070 = vmatprep.subr.bf16.mxu0 %v2840_v59  ;;  %v3740_v59 = vld [vmem:[%s3963_s0 + $0x58] sm:$0xff] }
  0x96   :  { %v2982_v49 = vld [vmem:[%s3962_s1 + $0x7d0] ss:$8 sps:$4 sm:$0xff]  }
  0x97   :  { %1859 = vmatpush1.bf16.msra.mxu1 %v2835_v60  ;;  %v3745_v60 = vld [vmem:[%s3963_s0 + $0x38] sm:$0xff] }
  0x98   :  { %2071 = vmatpush1.bf16.msra.mxu0 %v2838_v61  ;;  %1860 = vmatprep.subr.bf16.mxu1 %v2843_v62  ;;  %v3750_v61 = vld [vmem:[%s3963_s0 + $0x78] sm:$0xff]  ;;  %v2913_v62 = vld [vmem:[%s3962_s1 + $0x320] ss:$8 sps:$4 sm:$0xff]  }
  0x99   :  { %2072 = vmatprep.subr.bf16.mxu0 %v2846_v63  ;;  %v2916_v63 = vld [vmem:[%s3962_s1 + $0x720] ss:$8 sps:$4 sm:$0xff]  }
  0x9b   :  { %1861 = vmatpush1.bf16.msra.mxu1 %v2841_v0  ;;  %v2921_v0 = vld [vmem:[%s3962_s1 + $0x334] ss:$8 sps:$4 sm:$0xff]  }
  0x9c   :  { %2073 = vmatpush1.bf16.msra.mxu0 %v2844_v1  ;;  %1862 = vmatprep.subr.bf16.mxu1 %v2849_v2  ;;  %v2924_v1 = vld [vmem:[%s3962_s1 + $0x734] ss:$8 sps:$4 sm:$0xff]   ;;  %v2268_v2 = vcombine.high %v3735_v56, %v3740_v59 }
  0x9d   :  { %2074 = vmatprep.subr.bf16.mxu0 %v2852_v3  ;;  %v2276_v3 = vcombine.high %v3745_v60, %v3750_v61 }
  0x9f   :  { %1863 = vmatpush1.bf16.msra.mxu1 %v2847_v4  ;;  %v2919_v4 = vld [vmem:[%s3962_s1 + $0x330] ss:$8 sps:$4 sm:$0xff]  }
  0xa0   :  { %2075 = vmatpush1.bf16.msra.mxu0 %v2850_v5  ;;  %1864 = vmatprep.subr.bf16.mxu1 %v2855_v6  ;;  %v2922_v5 = vld [vmem:[%s3962_s1 + $0x730] ss:$8 sps:$4 sm:$0xff]   ;;  %v2927_v6 = vld [vmem:[%s3962_s1 + $0x344] ss:$8 sps:$4 sm:$0xff]  }
  0xa1   :  { %2076 = vmatprep.subr.bf16.mxu0 %v2858_v7  ;;  %v2930_v7 = vld [vmem:[%s3962_s1 + $0x744] ss:$8 sps:$4 sm:$0xff]  }
  0xa3   :  { %1865 = vmatpush1.bf16.msra.mxu1 %v2853_v8  ;;  %v2925_v8 = vld [vmem:[%s3962_s1 + $0x340] ss:$8 sps:$4 sm:$0xff]  }
  0xa4   :  { %2077 = vmatpush1.bf16.msra.mxu0 %v2856_v9  ;;  %1866 = vmatprep.subr.bf16.mxu1 %v2861_v10  ;;  %v2928_v9 = vld [vmem:[%s3962_s1 + $0x740] ss:$8 sps:$4 sm:$0xff]   ;;  %v2933_v10 = vld [vmem:[%s3962_s1 + $0x354] ss:$8 sps:$4 sm:$0xff]  }
  0xa5   :  { %2078 = vmatprep.subr.bf16.mxu0 %v2864_v11  ;;  %v2936_v11 = vld [vmem:[%s3962_s1 + $0x754] ss:$8 sps:$4 sm:$0xff]  }
  0xa7   :  { %1867 = vmatpush1.bf16.msra.mxu1 %v2859_v12  ;;  %v2931_v12 = vld [vmem:[%s3962_s1 + $0x350] ss:$8 sps:$4 sm:$0xff]  }
  0xa8   :  { %2079 = vmatpush1.bf16.msra.mxu0 %v2862_v13  ;;  %1868 = vmatprep.subr.bf16.mxu1 %v2867_v14  ;;  %v2934_v13 = vld [vmem:[%s3962_s1 + $0x750] ss:$8 sps:$4 sm:$0xff]   ;;  %v2939_v14 = vld [vmem:[%s3962_s1 + $0x364] ss:$8 sps:$4 sm:$0xff]  }
  0xa9   :  { %2080 = vmatprep.subr.bf16.mxu0 %v2870_v15  ;;  %v2942_v15 = vld [vmem:[%s3962_s1 + $0x764] ss:$8 sps:$4 sm:$0xff]  }
  0xab   :  { %1869 = vmatpush1.bf16.msra.mxu1 %v2865_v16  ;;  %v2937_v16 = vld [vmem:[%s3962_s1 + $0x360] ss:$8 sps:$4 sm:$0xff]  }
  0xac   :  { %2081 = vmatpush1.bf16.msra.mxu0 %v2868_v17  ;;  %1870 = vmatprep.subr.bf16.mxu1 %v2873_v18  ;;  %v2940_v17 = vld [vmem:[%s3962_s1 + $0x760] ss:$8 sps:$4 sm:$0xff]   ;;  %v2945_v18 = vld [vmem:[%s3962_s1 + $0x374] ss:$8 sps:$4 sm:$0xff]  }
  0xad   :  { %2082 = vmatprep.subr.bf16.mxu0 %v2876_v19  ;;  %v2948_v19 = vld [vmem:[%s3962_s1 + $0x774] ss:$8 sps:$4 sm:$0xff]  }
  0xaf   :  { %1871 = vmatpush1.bf16.msra.mxu1 %v2871_v20  ;;  %v2943_v20 = vld [vmem:[%s3962_s1 + $0x370] ss:$8 sps:$4 sm:$0xff]  }
  0xb0   :  { %2083 = vmatpush1.bf16.msra.mxu0 %v2874_v21  ;;  %1872 = vmatprep.subr.bf16.mxu1 %v2879_v22  ;;  %v2946_v21 = vld [vmem:[%s3962_s1 + $0x770] ss:$8 sps:$4 sm:$0xff]   ;;  %v2951_v22 = vld [vmem:[%s3962_s1 + $0x384] ss:$8 sps:$4 sm:$0xff]  }
  0xb1   :  { %2084 = vmatprep.subr.bf16.mxu0 %v2882_v23  ;;  %v2954_v23 = vld [vmem:[%s3962_s1 + $0x784] ss:$8 sps:$4 sm:$0xff]  }
  0xb3   :  { %1873 = vmatpush1.bf16.msra.mxu1 %v2877_v24  ;;  %v2949_v24 = vld [vmem:[%s3962_s1 + $0x380] ss:$8 sps:$4 sm:$0xff]  }
  0xb4   :  { %2085 = vmatpush1.bf16.msra.mxu0 %v2880_v25  ;;  %1874 = vmatprep.subr.bf16.mxu1 %v2885_v26  ;;  %v2952_v25 = vld [vmem:[%s3962_s1 + $0x780] ss:$8 sps:$4 sm:$0xff]   ;;  %v2957_v26 = vld [vmem:[%s3962_s1 + $0x394] ss:$8 sps:$4 sm:$0xff]  }
  0xb5   :  { %2086 = vmatprep.subr.bf16.mxu0 %v2888_v27  ;;  %v2960_v27 = vld [vmem:[%s3962_s1 + $0x794] ss:$8 sps:$4 sm:$0xff]  }
  0xb7   :  { %1875 = vmatpush1.bf16.msra.mxu1 %v2883_v28  ;;  %v2955_v28 = vld [vmem:[%s3962_s1 + $0x390] ss:$8 sps:$4 sm:$0xff]  }
  0xb8   :  { %2087 = vmatpush1.bf16.msra.mxu0 %v2886_v29  ;;  %1876 = vmatprep.subr.bf16.mxu1 %v2891_v30  ;;  %v2958_v29 = vld [vmem:[%s3962_s1 + $0x790] ss:$8 sps:$4 sm:$0xff]   ;;  %v2963_v30 = vld [vmem:[%s3962_s1 + $0x3a4] ss:$8 sps:$4 sm:$0xff]  }
  0xb9   :  { %2088 = vmatprep.subr.bf16.mxu0 %v2894_v31  ;;  %v2966_v31 = vld [vmem:[%s3962_s1 + $0x7a4] ss:$8 sps:$4 sm:$0xff]  }
  0xbb   :  { %1877 = vmatpush1.bf16.msra.mxu1 %v2889_v32  ;;  %v2961_v32 = vld [vmem:[%s3962_s1 + $0x3a0] ss:$8 sps:$4 sm:$0xff]  }
  0xbc   :  { %2089 = vmatpush1.bf16.msra.mxu0 %v2892_v33  ;;  %1878 = vmatprep.subr.bf16.mxu1 %v2897_v34  ;;  %v2964_v33 = vld [vmem:[%s3962_s1 + $0x7a0] ss:$8 sps:$4 sm:$0xff]   ;;  %v2969_v34 = vld [vmem:[%s3962_s1 + $0x3b4] ss:$8 sps:$4 sm:$0xff]  }
  0xbd   :  { %2090 = vmatprep.subr.bf16.mxu0 %v2900_v35  ;;  %v2972_v35 = vld [vmem:[%s3962_s1 + $0x7b4] ss:$8 sps:$4 sm:$0xff]  }
  0xbf   :  { %1879 = vmatpush1.bf16.msra.mxu1 %v2895_v36  ;;  %v2967_v36 = vld [vmem:[%s3962_s1 + $0x3b0] ss:$8 sps:$4 sm:$0xff]  }
  0xc0   :  { %2091 = vmatpush1.bf16.msra.mxu0 %v2898_v37  ;;  %1901 = vmatprep.subr.bf16.mxu1 %v2903_v38  ;;  %v2970_v37 = vld [vmem:[%s3962_s1 + $0x7b0] ss:$8 sps:$4 sm:$0xff]   ;;  %v2975_v38 = vld [vmem:[%s3962_s1 + $0x3c4] ss:$8 sps:$4 sm:$0xff]  }
  0xc1   :  { %2113 = vmatprep.subr.bf16.mxu0 %v2906_v39  ;;  %v2978_v39 = vld [vmem:[%s3962_s1 + $0x7c4] ss:$8 sps:$4 sm:$0xff]  }
  0xc2   :  { %1881 = vmatmul.mubr.bf16.vlgmr.msra.gmra.mrb[0].mxu1 %v2265_v41  ;;  %v2976_v41 = vld [vmem:[%s3962_s1 + $0x7c0] ss:$8 sps:$4 sm:$0xff]  }
  0xc3   :  { %2093 = vmatmul.mubr.bf16.vlgmr.msra.gmra.mrb[0].mxu0 %v2273_v43  ;;  %1902 = vmatpush1.bf16.msra.mxu1 %v2901_v42  ;;  %v2981_v43 = vld [vmem:[%s3962_s1 + $0x3d4] ss:$8 sps:$4 sm:$0xff]   ;;  %v2987_v42 = vld [vmem:[%s3962_s1 + $0x3e4] ss:$8 sps:$4 sm:$0xff]  }
  0xc4   :  { %2114 = vmatpush1.bf16.msra.mxu0 %v2904_v45  ;;  %1903 = vmatprep.subr.bf16.mxu1 %v2909_v46  ;;  %v2990_v45 = vld [vmem:[%s3962_s1 + $0x7e4] ss:$8 sps:$4 sm:$0xff]   ;;  %v2985_v46 = vld [vmem:[%s3962_s1 + $0x3e0] ss:$8 sps:$4 sm:$0xff]  }
  0xc5   :  { %2115 = vmatprep.subr.bf16.mxu0 %v2912_v47  ;;  %1890 = vmatprep.mubr.bf16.mxu1 %v2282_v50  ;;  %v2988_v47 = vld [vmem:[%s3962_s1 + $0x7e0] ss:$8 sps:$4 sm:$0xff]   ;;  %v2993_v50 = vld [vmem:[%s3962_s1 + $0x3f4] ss:$8 sps:$4 sm:$0xff]  }
  0xc6   :  { %2102 = vmatprep.mubr.bf16.mxu0 %v2290_v51  ;;  %v2996_v51 = vld [vmem:[%s3962_s1 + $0x7f4] ss:$8 sps:$4 sm:$0xff]  }
  0xc7   :  { %1904 = vmatpush1.bf16.msra.mxu1 %v2907_v52  ;;  %v2991_v52 = vld [vmem:[%s3962_s1 + $0x3f0] ss:$8 sps:$4 sm:$0xff]  }
  0xc8   :  { %2116 = vmatpush1.bf16.msra.mxu0 %v2910_v53  ;;  %1905 = vmatprep.subr.bf16.mxu1 %v2915_v54  ;;  %v2994_v53 = vld [vmem:[%s3962_s1 + $0x7f0] ss:$8 sps:$4 sm:$0xff]  }
  0xc9   :  { %2117 = vmatprep.subr.bf16.mxu0 %v2918_v55  ;;  %v33_v54 = vld [vmem:[%s3963_s0 + $0x98] sm:$0xff] }
  0xca   :  { %1891 = vmatmul.mubr.bf16.gmra.mrb[4].mxu1 %v2281_v57  ;;  %v41_v55 = vld [vmem:[%s3963_s0 + $0xd8] sm:$0xff] }
  0xcb   :  { %2103 = vmatmul.mubr.bf16.gmra.mrb[4].mxu0 %v2289_v58  ;;  %1906 = vmatpush1.bf16.msra.mxu1 %v2913_v62  ;;  %v37_v57 = vld [vmem:[%s3963_s0 + $0xb8] sm:$0xff]  ;;  %v2267_v62 = vcombine.low %v3735_v56, %v3740_v59 }
  0xcc   :  { %2118 = vmatpush1.bf16.msra.mxu0 %v2916_v63  ;;  %1907 = vmatprep.subr.bf16.mxu1 %v2921_v0  ;;  %v45_v58 = vld [vmem:[%s3963_s0 + $0xf8] sm:$0xff]  ;;  %v2275_v63 = vcombine.low %v3745_v60, %v3750_v61  ;;  %v2284_v0 = vcombine.high %v33_v54, %v41_v55 }
  0xcd   :  { %2119 = vmatprep.subr.bf16.mxu0 %v2924_v1  ;;  %1933 = vmatprep.mubr.bf16.mxu1 %v2268_v2  ;;  %v2292_v1 = vcombine.high %v37_v57, %v45_v58  ;;  %v2283_v2 = vcombine.low %v33_v54, %v41_v55 }
  0xce   :  { %2145 = vmatprep.mubr.bf16.mxu0 %v2276_v3  ;;  %v2291_v3 = vcombine.low %v37_v57, %v45_v58 }
  0xcf   :  { %1908 = vmatpush1.bf16.msra.mxu1 %v2919_v4 }
  0xd0   :  { %2120 = vmatpush1.bf16.msra.mxu0 %v2922_v5  ;;  %1909 = vmatprep.subr.bf16.mxu1 %v2927_v6 }
  0xd1   :  { %2121 = vmatprep.subr.bf16.mxu0 %v2930_v7 }
  0xd3   :  { %1910 = vmatpush1.bf16.msra.mxu1 %v2925_v8 }
  0xd4   :  { %2122 = vmatpush1.bf16.msra.mxu0 %v2928_v9  ;;  %1911 = vmatprep.subr.bf16.mxu1 %v2933_v10 }
  0xd5   :  { %2123 = vmatprep.subr.bf16.mxu0 %v2936_v11 }
  0xd7   :  { %1912 = vmatpush1.bf16.msra.mxu1 %v2931_v12 }
  0xd8   :  { %2124 = vmatpush1.bf16.msra.mxu0 %v2934_v13  ;;  %1913 = vmatprep.subr.bf16.mxu1 %v2939_v14 }
  0xd9   :  { %2125 = vmatprep.subr.bf16.mxu0 %v2942_v15 }
  0xdb   :  { %1914 = vmatpush1.bf16.msra.mxu1 %v2937_v16 }
  0xdc   :  { %2126 = vmatpush1.bf16.msra.mxu0 %v2940_v17  ;;  %1915 = vmatprep.subr.bf16.mxu1 %v2945_v18 }
  0xdd   :  { %2127 = vmatprep.subr.bf16.mxu0 %v2948_v19 }
  0xdf   :  { %1916 = vmatpush1.bf16.msra.mxu1 %v2943_v20 }
  0xe0   :  { %2128 = vmatpush1.bf16.msra.mxu0 %v2946_v21  ;;  %1917 = vmatprep.subr.bf16.mxu1 %v2951_v22 }
  0xe1   :  { %2129 = vmatprep.subr.bf16.mxu0 %v2954_v23 }
  0xe3   :  { %1918 = vmatpush1.bf16.msra.mxu1 %v2949_v24 }
  0xe4   :  { %2130 = vmatpush1.bf16.msra.mxu0 %v2952_v25  ;;  %1919 = vmatprep.subr.bf16.mxu1 %v2957_v26 }
  0xe5   :  { %2131 = vmatprep.subr.bf16.mxu0 %v2960_v27 }
  0xe7   :  { %1920 = vmatpush1.bf16.msra.mxu1 %v2955_v28 }
  0xe8   :  { %2132 = vmatpush1.bf16.msra.mxu0 %v2958_v29  ;;  %1921 = vmatprep.subr.bf16.mxu1 %v2963_v30 }
  0xe9   :  { %2133 = vmatprep.subr.bf16.mxu0 %v2966_v31 }
  0xeb   :  { %1922 = vmatpush1.bf16.msra.mxu1 %v2961_v32 }
  0xec   :  { %2134 = vmatpush1.bf16.msra.mxu0 %v2964_v33  ;;  %1923 = vmatprep.subr.bf16.mxu1 %v2969_v34 }
  0xed   :  { %2135 = vmatprep.subr.bf16.mxu0 %v2972_v35 }
  0xef   :  { %1924 = vmatpush1.bf16.msra.mxu1 %v2967_v36 }
  0xf0   :  { %2136 = vmatpush1.bf16.msra.mxu0 %v2970_v37  ;;  %1925 = vmatprep.subr.bf16.mxu1 %v2975_v38 }
  0xf1   :  { %2137 = vmatprep.subr.bf16.mxu0 %v2978_v39 }
  0xf3   :  { %1926 = vmatpush1.bf16.msra.mxu1 %v2973_v40 }
  0xf4   :  { %2138 = vmatpush1.bf16.msra.mxu0 %v2976_v41  ;;  %1927 = vmatprep.subr.bf16.mxu1 %v2981_v43 }
  0xf5   :  { %2139 = vmatprep.subr.bf16.mxu0 %v2984_v44 }
  0xf7   :  { %1928 = vmatpush1.bf16.msra.mxu1 %v2979_v48 }
  0xf8   :  { %2140 = vmatpush1.bf16.msra.mxu0 %v2982_v49  ;;  %1929 = vmatprep.subr.bf16.mxu1 %v2987_v42 }
  0xf9   :  { %2141 = vmatprep.subr.bf16.mxu0 %v2990_v45 }
  0xfb   :  { %1930 = vmatpush1.bf16.msra.mxu1 %v2985_v46  ;;  %v2194_v46 = vlaneseq }
  0xfc   :  { %2142 = vmatpush1.bf16.msra.mxu0 %v2988_v47  ;;  %1931 = vmatprep.subr.bf16.mxu1 %v2993_v50 }
  0xfd   :  { %2143 = vmatprep.subr.bf16.mxu0 %v2996_v51  ;;  %v2195_v58 = vshrl.u32 %v2194_v46, 7 }
  0xff   :  { %1932 = vmatpush1.bf16.msra.mxu1 %v2991_v52  ;;  %vm2240_vm0 = vcmp.eq.s32.totalorder %v2195_v58, 0 }
 0x100   :  { %2144 = vmatpush1.bf16.msra.mxu0 %v2994_v53 }
 0x102   :  { %1934 = vmatmul.mubr.bf16.vlgmr.msra.gmra.mrb[0].mxu1 %v2267_v62 }
 0x103   :  { %2146 = vmatmul.mubr.bf16.vlgmr.msra.gmra.mrb[0].mxu0 %v2275_v63  ;;  %1943 = vmatprep.mubr.bf16.mxu1 %v2284_v0 }
 0x104   :  { %2155 = vmatprep.mubr.bf16.mxu0 %v2292_v1 }
 0x10a   :  { %1944 = vmatmul.mubr.bf16.gmra.mrb[4].mxu1 %v2283_v2 }
 0x10b   :  { %2156 = vmatmul.mubr.bf16.gmra.mrb[4].mxu0 %v2291_v3 }
 0x1d5   :  { %v1935_v4 = vpop.f32.mrb[0].mxu1 }
 0x1d6   :  { %v2147_v5 = vpop.f32.mrb[0].mxu0  ;;  %v1937_v7 = vpop.f32.mrb[1].mxu1 }
 0x1d7   :  { %v2557_v6 = vadd.f32 %v2147_v5, %v1935_v4  ;;  %v2149_v56 = vpop.f32.mrb[1].mxu0  ;;  %v1939_v8 = vpop.f32.mrb[2].mxu1 }
 0x1d8   :  { %v2558_v59 = vadd.f32 %v2149_v56, %v1937_v7  ;;  %v2151_v60 = vpop.f32.mrb[2].mxu0  ;;  %v1941_v9 = vpop.f32.mrb[3].mxu1 }
 0x1d9   :  { %v2559_v61 = vadd.f32 %v2151_v60, %v1939_v8  ;;  %v2153_v10 = vpop.f32.mrb[3].mxu0  ;;  %v2214_v13 = vmul.f32 %v2557_v6, %v2557_v6 }
 0x1da   :  { %v2553_v11 = vpack.c.bf16 %v2558_v59, %v2557_v6  ;;  %v2560_v12 = vadd.f32 %v2153_v10, %v1941_v9  ;;  %v2215_v16 = vmul.f32 %v2558_v59, %v2558_v59 }
 0x1db   :  { %v2196_v14 = vadd.f32 %v2559_v61, %v2557_v6  ;;  %v2216_v15 = vmul.f32 %v2559_v61, %v2559_v61 }
 0x1dc   :  { %2190 = vst [vmem:[%s3964_s2] sm:$0xff] %v2553_v11  ;;  %v2554_v17 = vpack.c.bf16 %v2560_v12, %v2559_v61  ;;  %v2205_v18 = vadd.f32 %v2560_v12, %v2558_v59  ;;  %v2217_v19 = vmul.f32 %v2560_v12, %v2560_v12 }
 0x1dd   :  { %v2222_v20 = vadd.f32 %v2216_v15, %v2214_v13  ;;  %v1945_v22 = vpop.f32.mrb[4].mxu1 }
 0x1de   :  { %2191 = vst [vmem:[%s3964_s2 + $0x8] sm:$0xff] %v2554_v17  ;;  %v2231_v21 = vadd.f32 %v2217_v19, %v2215_v16  ;;  %v2157_v23 = vpop.f32.mrb[4].mxu0  ;;  %v1947_v25 = vpop.f32.mrb[5].mxu1 }
 0x1df   :  { %v2561_v24 = vadd.f32 %v2157_v23, %v1945_v22  ;;  %v2159_v26 = vpop.f32.mrb[5].mxu0  ;;  %v1949_v28 = vpop.f32.mrb[6].mxu1 }
 0x1e0   :  { %v2562_v27 = vadd.f32 %v2159_v26, %v1947_v25  ;;  %v2161_v29 = vpop.f32.mrb[6].mxu0  ;;  %v1951_v33 = vpop.f32.mrb[7].mxu1 }
 0x1e1   :  { %v2197_v30 = vadd.f32 %v2561_v24, %v2196_v14  ;;  %v2218_v31 = vmul.f32 %v2561_v24, %v2561_v24  ;;  %v2563_v32 = vadd.f32 %v2161_v29, %v1949_v28  ;;  %v2163_v34 = vpop.f32.mrb[7].mxu0 }
 0x1e2   :  { %v2555_v35 = vpack.c.bf16 %v2562_v27, %v2561_v24  ;;  %v2206_v36 = vadd.f32 %v2562_v27, %v2205_v18  ;;  %v2219_v37 = vmul.f32 %v2562_v27, %v2562_v27  ;;  %v2564_v38 = vadd.f32 %v2163_v34, %v1951_v33 }
 0x1e3   :  { %v2223_v39 = vadd.f32 %v2222_v20, %v2218_v31  ;;  %v2198_v40 = vadd.f32 %v2563_v32, %v2197_v30  ;;  %v2220_v41 = vmul.f32 %v2563_v32, %v2563_v32 }
 0x1e4   :  { %2192 = vst [vmem:[%s3964_s2 + $0x10] sm:$0xff] %v2555_v35  ;;  %v2232_v43 = vadd.f32 %v2231_v21, %v2219_v37  ;;  %v2556_v44 = vpack.c.bf16 %v2564_v38, %v2563_v32  ;;  %v2207_v48 = vadd.f32 %v2564_v38, %v2206_v36  ;;  %v2221_v49 = vmul.f32 %v2564_v38, %v2564_v38 }
 0x1e5   :  { %v2199_v42 = vrot.slane %v2198_v40, 4  ;;  %v2224_v45 = vadd.f32 %v2223_v39, %v2220_v41 }
 0x1e6   :  { %2193 = vst [vmem:[%s3964_s2 + $0x18] sm:$0xff] %v2556_v44  ;;  %v2208_v47 = vrot.slane %v2207_v48, 4  ;;  %v2233_v50 = vadd.f32 %v2232_v43, %v2221_v49 }
 0x1e7   :  { %v2200_v51 = vadd.f32 %v2199_v42, %v2198_v40  ;;  %v2225_v52 = vrot.slane %v2224_v45, 4 }
 0x1e8   :  { %v2209_v53 = vadd.f32 %v2208_v47, %v2207_v48  ;;  %v2234_v54 = vrot.slane %v2233_v50, 4 }
 0x1e9   :  { %v2201_v55 = vrot.slane %v2200_v51, 2  ;;  %v2226_v57 = vadd.f32 %v2225_v52, %v2224_v45 }
 0x1ea   :  { %v2210_v62 = vrot.slane %v2209_v53, 2  ;;  %v2235_v63 = vadd.f32 %v2234_v54, %v2233_v50 }
 0x1eb   :  { %v2202_v0 = vadd.f32 %v2201_v55, %v2200_v51  ;;  %v2227_v1 = vrot.slane %v2226_v57, 2 }
 0x1ec   :  { %v2211_v2 = vadd.f32 %v2210_v62, %v2209_v53  ;;  %v2236_v3 = vrot.slane %v2235_v63, 2 }
 0x1ed   :  { %v2203_v4 = vrot.slane %v2202_v0, 1  ;;  %v2228_v5 = vadd.f32 %v2227_v1, %v2226_v57 }
 0x1ee   :  { %v2212_v6 = vrot.slane %v2211_v2, 1  ;;  %v2237_v7 = vadd.f32 %v2236_v3, %v2235_v63 }
 0x1ef   :  { %v2204_v56 = vadd.f32 %v2203_v4, %v2202_v0  ;;  %v2229_v59 = vrot.slane %v2228_v5, 1 }
 0x1f0   :  { %v2213_v8 = vadd.f32 %v2212_v6, %v2211_v2  ;;  %v2238_v60 = vrot.slane %v2237_v7, 1 }
 0x1f1   :  { %v2230_v61 = vadd.f32 %v2229_v59, %v2228_v5  ;;  %v2241_v9 = vsel %vm2240_vm0, %v2204_v56, 0.0 }
 0x1f2   :  { %2243 = vst [vmem:[%s3965_s3] sm:$0xff] %v2241_v9  ;;  %v2239_v10 = vadd.f32 %v2238_v60, %v2237_v7  ;;  %v2242_v11 = vsel %vm2240_vm0, %v2213_v8, 0.0 }
 0x1f3   :  { %v2245_v12 = vsel %vm2240_vm0, %v2230_v61, 0.0  ;;  %2244 = vst [vmem:[%s3965_s3 + $0x8] sm:$0xff] %v2242_v11 }
 0x1f4   :  { %2247 = vst [vmem:[%s3966_s4] sm:$0xff] %v2245_v12  ;;  %v2246_v13 = vsel %vm2240_vm0, %v2239_v10, 0.0 }
 0x1f5   :  { %2248 = vst [vmem:[%s3966_s4 + $0x8] sm:$0xff] %v2246_v13 }

</bundles_post_ra>
